<compile_context>
chip_gen: v7x
topology: tpu7x:2x2x1
jax: 0.10.0
libtpu: 0.0.40
codegen_flags: <defaults>
</compile_context>

<pallas_src>
import jax
import jax.numpy as jnp
from jax import lax
from jax.experimental import pallas as pl
from jax.experimental.pallas import tpu as pltpu


# ----------------------- host-side weight preparation ----------------------- #

def _upsample_matrix(out_size, in_size):
    """1-D linear-interp matrix U (out,in): y = U @ x (align_corners=True)."""
    if in_size == 1:
        return jnp.ones((out_size, 1), jnp.float32)
    pos = jnp.arange(out_size, dtype=jnp.float32) * (in_size - 1) / (out_size - 1)
    i0 = jnp.clip(jnp.floor(pos).astype(jnp.int32), 0, in_size - 2)
    frac = pos - i0.astype(jnp.float32)
    return (jax.nn.one_hot(i0, in_size, dtype=jnp.float32) * (1.0 - frac)[:, None]
            + jax.nn.one_hot(i0 + 1, in_size, dtype=jnp.float32) * frac[:, None])


def _banded_conv_slabs(w, H, W):
    """w: (3,3,3,Cin,Cout) DHWIO -> (3, Cin*H*W, Cout*H*W) banded slabs.

    slab[kd][(ci,hi,wi), (co,ho,wo)] = w[kd, hi-ho+1, wi-wo+1, ci, co] when the
    tap is in range, else 0 -> bakes kh/kw taps and the H/W zero padding into
    one lane-dense RHS per kd tap.
    """
    k = jnp.arange(3).reshape(3, 1, 1)
    hi = jnp.arange(H).reshape(1, H, 1)
    ho = jnp.arange(H).reshape(1, 1, H)
    a_h = (hi - ho + 1 == k).astype(jnp.float32)            # (3, H, H)
    wi = jnp.arange(W).reshape(1, W, 1)
    wo = jnp.arange(W).reshape(1, 1, W)
    a_w = (wi - wo + 1 == k).astype(jnp.float32)            # (3, W, W)
    cin, cout = w.shape[3], w.shape[4]
    m = jnp.einsum('aij,bkl,qabcd->qcikdjl', a_h, a_w, w)   # (3,Cin,H,W,Cout,H,W)
    return m.reshape(3, cin * H * W, cout * H * W)


def _pointwise_conv_slab(w3, H, W):
    """w3: (Cin, Cout) 1x1x1 conv -> (Cin*H*W, Cout*H*W) block-diagonal slab."""
    cin, cout = w3.shape
    m = jnp.einsum('ij,kl,cd->cikdjl',
                   jnp.eye(H, dtype=jnp.float32),
                   jnp.eye(W, dtype=jnp.float32), w3)
    return m.reshape(cin * H * W, cout * H * W)


def _fused_bias(b, H, W):
    c = b.shape[-1]
    return jnp.repeat(b.reshape(c, 1), H * W, axis=1).reshape(1, c * H * W)


# ------------------------------ Pallas kernel ------------------------------- #

def _dec_block_kernel(dec_ref, enc_ref, ud_ref, uhw_ref,
                      w1u_ref, w1e_ref, b1_ref,
                      w2_ref, b2_ref,
                      w3u_ref, w3e_ref, b3_ref, o_ref):
    f32 = jnp.float32
    D = o_ref.shape[1]

    # --- fused x2 trilinear upsample (align_corners) of the decoder input ---
    dec = dec_ref[0]                                               # (Dd, c_in*Hd*Wd) f32
    up_d = jnp.dot(ud_ref[...], dec, preferred_element_type=f32)   # (D, c_in*Hd*Wd)
    up = jnp.dot(up_d, uhw_ref[...], preferred_element_type=f32)   # (D, c_in*H*W)

    enc = enc_ref[0]                                               # (D, c_out*H*W) bf16
    up_b = up.astype(jnp.bfloat16)                                 # raw input (skip path)
    xr_up = jax.nn.relu(up).astype(jnp.bfloat16)                   # relu1 (up channels)
    xr_enc = jax.nn.relu(enc)                                      # relu1 (enc channels)

    # (D, D) shift matrices for the kd = 0 / 2 depth taps (zero padded in D).
    ii = lax.broadcasted_iota(jnp.int32, (D, D), 0)
    jj = lax.broadcasted_iota(jnp.int32, (D, D), 1)
    t_dn = (jj == ii - 1).astype(f32)        # (t_dn @ p)[d] = p[d-1]
    t_up = (jj == ii + 1).astype(f32)        # (t_up @ p)[d] = p[d+1]

    def conv_depth(tap):
        p0, p1, p2 = tap(0), tap(1), tap(2)
        return (p1
                + jnp.dot(t_dn, p0, preferred_element_type=f32)
                + jnp.dot(t_up, p2, preferred_element_type=f32))

    # --- conv1: relu(x) * W1 (3x3x3, pad 1), concat folded into up/enc slabs ---
    def conv1_tap(k):
        return (jnp.dot(xr_up, w1u_ref[k], preferred_element_type=f32)
                + jnp.dot(xr_enc, w1e_ref[k], preferred_element_type=f32))
    acc1 = conv_depth(conv1_tap) + b1_ref[...]
    mid = jax.nn.relu(acc1).astype(jnp.bfloat16)                   # relu2

    # --- conv2: 3x3x3, pad 1 ---
    def conv2_tap(k):
        return jnp.dot(mid, w2_ref[k], preferred_element_type=f32)
    acc2 = conv_depth(conv2_tap) + b2_ref[...]

    # --- conv3: 1x1x1 skip on the raw (non-relu) input ---
    skip = (jnp.dot(up_b, w3u_ref[...], preferred_element_type=f32)
            + jnp.dot(enc, w3e_ref[...], preferred_element_type=f32)
            + b3_ref[...])

    o_ref[...] = (acc2 + skip)[None, :, :]                         # lane-dense f32 store


# ------------------------------ public wrapper ------------------------------ #

def build_dec_block(params, c_in, c_out, dec_spatial):
    """Precompute lane-dense weight slabs and return a jitted NCDHW forward."""
    w1, b1, w2, b2, w3, b3 = params
    Dd, Hd, Wd = dec_spatial
    D, H, W = 2 * Dd, 2 * Hd, 2 * Wd
    bf16 = jnp.bfloat16

    # upsample interpolation matrices (kept f32; they are tiny)
    u_d = _upsample_matrix(D, Dd)                                   # (D, Dd)
    u_h = _upsample_matrix(H, Hd)
    u_w = _upsample_matrix(W, Wd)
    u_hw = jnp.einsum('cC,ha,wb->cabChw',
                      jnp.eye(c_in, dtype=jnp.float32), u_h, u_w
                      ).reshape(c_in * Hd * Wd, c_in * H * W)

    # banded conv slabs, split along Cin into up / enc pieces (folds the concat)
    m1 = _banded_conv_slabs(w1, H, W)                  # (3, (c_in+c_out)*HW, c_out*HW)
    w1u = m1[:, :c_in * H * W, :].astype(bf16)
    w1e = m1[:, c_in * H * W:, :].astype(bf16)
    w2b = _banded_conv_slabs(w2, H, W).astype(bf16)    # (3, c_out*HW, c_out*HW)
    m3 = _pointwise_conv_slab(w3, H, W)
    w3u = m3[:c_in * H * W, :].astype(bf16)
    w3e = m3[c_in * H * W:, :].astype(bf16)
    b1b = _fused_bias(b1, H, W)
    b2b = _fused_bias(b2, H, W)
    b3b = _fused_bias(b3, H, W)

    kdec = c_in * Hd * Wd        # fused width of the pre-upsample decoder input
    kup = c_in * H * W           # fused width of the upsampled decoder path
    kenc = c_out * H * W         # fused width of the encoder skip input
    kout = c_out * H * W         # fused output width (lane dense, multiple of 128)

    def fwd(dec_ncdhw, enc_ncdhw):
        N = dec_ncdhw.shape[0]
        # NCDHW -> (N, D, C*H*W); only contiguous H*W blocks move.
        dec_f = dec_ncdhw.transpose(0, 2, 1, 3, 4).reshape(N, Dd, kdec)
        enc_f = enc_ncdhw.transpose(0, 2, 1, 3, 4).reshape(N, D, kenc).astype(bf16)

        out = pl.pallas_call(
            _dec_block_kernel,
            out_shape=jax.ShapeDtypeStruct((N, D, kout), jnp.float32),
            grid_spec=pltpu.PrefetchScalarGridSpec(
                num_scalar_prefetch=0,
                grid=(N,),
                in_specs=[
                    pl.BlockSpec((1, Dd, kdec), lambda n: (n, 0, 0)),
                    pl.BlockSpec((1, D, kenc), lambda n: (n, 0, 0)),
                    pl.BlockSpec((D, Dd), lambda n: (0, 0)),
                    pl.BlockSpec((kdec, kup), lambda n: (0, 0)),
                    pl.BlockSpec((3, kup, kout), lambda n: (0, 0, 0)),
                    pl.BlockSpec((3, kenc, kout), lambda n: (0, 0, 0)),
                    pl.BlockSpec((1, kout), lambda n: (0, 0)),
                    pl.BlockSpec((3, kout, kout), lambda n: (0, 0, 0)),
                    pl.BlockSpec((1, kout), lambda n: (0, 0)),
                    pl.BlockSpec((kup, kout), lambda n: (0, 0)),
                    pl.BlockSpec((kenc, kout), lambda n: (0, 0)),
                    pl.BlockSpec((1, kout), lambda n: (0, 0)),
                ],
                out_specs=pl.BlockSpec((1, D, kout), lambda n: (n, 0, 0)),
            ),
            compiler_params=pltpu.CompilerParams(
                dimension_semantics=("parallel",),
                vmem_limit_bytes=64 * 1024 * 1024),
        )(dec_f, enc_f, u_d, u_hw, w1u, w1e, b1b, w2b, b2b, w3u, w3e, b3b)

        return out.reshape(N, D, c_out, H, W).transpose(0, 2, 1, 3, 4)  # NCDHW

    return jax.jit(fwd)


# ---------------------------- pure-JAX references ---------------------------- #

def _linear_upsample_axis(x, axis, out_size):
    in_size = x.shape[axis]
    if in_size == 1:
        return jnp.repeat(x, out_size, axis=axis)
    pos = jnp.arange(out_size, dtype=jnp.float32) * (in_size - 1) / (out_size - 1)
    i0 = jnp.clip(jnp.floor(pos).astype(jnp.int32), 0, in_size - 2)
    frac = pos - i0.astype(jnp.float32)
    x0 = jnp.take(x, i0, axis=axis)
    x1 = jnp.take(x, i0 + 1, axis=axis)
    bshape = [1] * x.ndim
    bshape[axis] = out_size
    frac = frac.reshape(bshape)
    return x0 * (1.0 - frac) + x1 * frac


def upsample_trilinear_x2_ncdhw(x):
    _, _, D, H, W = x.shape
    x = _linear_upsample_axis(x, 2, 2 * D)
    x = _linear_upsample_axis(x, 3, 2 * H)
    x = _linear_upsample_axis(x, 4, 2 * W)
    return x


def _conv3d_ref(x_ndhwc, w, b, pad):
    out = lax.conv_general_dilated(
        x_ndhwc, w, window_strides=(1, 1, 1), padding=[(pad, pad)] * 3,
        dimension_numbers=("NDHWC", "DHWIO", "NDHWC"))
    return out + b.reshape(1, 1, 1, 1, -1)


def dec_block_ref(dec, enc, params, match_kernel_precision=False):
    """XLA reference.  With match_kernel_precision=True the weights and conv
    activations go through the same bf16 rounding points as the Pallas kernel,
    so the comparison tolerance can be tight (only accumulation-order noise)."""
    w1, b1, w2, b2, w3, b3 = params
    rnd = ((lambda a: a.astype(jnp.bfloat16).astype(jnp.float32))
           if match_kernel_precision else (lambda a: a))
    up = upsample_trilinear_x2_ncdhw(dec)
    up = jnp.transpose(up, (0, 2, 3, 4, 1))
    enc_l = jnp.transpose(enc, (0, 2, 3, 4, 1))
    x = jnp.concatenate([rnd(up), rnd(enc_l)], axis=-1)
    h = jax.nn.relu(x)
    h = _conv3d_ref(h, rnd(w1), b1, 1)
    h = rnd(jax.nn.relu(h))
    h = _conv3d_ref(h, rnd(w2), b2, 1)
    s = _conv3d_ref(x, rnd(w3.reshape(1, 1, 1, *w3.shape)), b3, 0)
    y = h + s
    return jnp.transpose(y, (0, 4, 1, 2, 3))


# ----------------------------------- main ------------------------------------ #

if __name__ == "__main__":
    key = jax.random.PRNGKey(0)
    ks = jax.random.split(key, 8)

    N = 2
    c_in, c_out = 8, 4            # dec_block(c_in, c_out); nn_kernel = 3
    Dd, Hd, Wd = 4, 4, 4          # decoder-input spatial (enc_out is 2x)
    cin_tot = c_in + c_out

    dec_inp = jax.random.normal(ks[0], (N, c_in, Dd, Hd, Wd), jnp.float32)
    enc_out = jax.random.normal(ks[1], (N, c_out, 2 * Dd, 2 * Hd, 2 * Wd),
                                jnp.float32)

    # deterministic synthetic parameters (DHWIO conv weights, biases as (1, C))
    w1 = 0.1 * jax.random.normal(ks[2], (3, 3, 3, cin_tot, c_out), jnp.float32)
    b1 = 0.1 * jax.random.normal(ks[3], (1, c_out), jnp.float32)
    w2 = 0.1 * jax.random.normal(ks[4], (3, 3, 3, c_out, c_out), jnp.float32)
    b2 = 0.1 * jax.random.normal(ks[5], (1, c_out), jnp.float32)
    w3 = 0.1 * jax.random.normal(ks[6], (cin_tot, c_out), jnp.float32)
    b3 = 0.1 * jax.random.normal(ks[7], (1, c_out), jnp.float32)
    params = (w1, b1, w2, b2, w3, b3)

    fwd = build_dec_block(params, c_in, c_out, (Dd, Hd, Wd))
    out = jax.block_until_ready(fwd(dec_inp, enc_out))
    assert out.shape == (N, c_out, 2 * Dd, 2 * Hd, 2 * Wd), out.shape

    # tight check vs an XLA reference that mirrors the kernel's bf16 rounding
    ref_m = jax.block_until_ready(
        dec_block_ref(dec_inp, enc_out, params, match_kernel_precision=True))
    assert jnp.allclose(out, ref_m, atol=5e-3, rtol=5e-3), (
        float(jnp.max(jnp.abs(out - ref_m))))

    # loose sanity check vs the pure-f32 reference (bounds the total bf16 effect)
    ref_f = jax.block_until_ready(dec_block_ref(dec_inp, enc_out, params))
    assert jnp.allclose(out, ref_f, atol=1e-1, rtol=1e-1), (
        float(jnp.max(jnp.abs(out - ref_f))))

    print("KERNEL_OK")
</pallas_src>

<mosaic_0001>
module attributes {stable_mosaic.version = 11 : i64} {
  func.func @_dec_block_kernel(%arg0: i32, %arg1: memref<1x4x128xf32, #tpu.memory_space<vmem>>, %arg2: memref<1x8x256xbf16, #tpu.memory_space<vmem>>, %arg3: memref<8x4xf32, #tpu.memory_space<vmem>>, %arg4: memref<128x512xf32, #tpu.memory_space<vmem>>, %arg5: memref<3x512x256xbf16, #tpu.memory_space<vmem>>, %arg6: memref<3x256x256xbf16, #tpu.memory_space<vmem>>, %arg7: memref<1x256xf32, #tpu.memory_space<vmem>>, %arg8: memref<3x256x256xbf16, #tpu.memory_space<vmem>>, %arg9: memref<1x256xf32, #tpu.memory_space<vmem>>, %arg10: memref<512x256xbf16, #tpu.memory_space<vmem>>, %arg11: memref<256x256xbf16, #tpu.memory_space<vmem>>, %arg12: memref<1x256xf32, #tpu.memory_space<vmem>>, %arg13: memref<1x8x256xf32, #tpu.memory_space<vmem>>) attributes {dimension_semantics = [#tpu.dimension_semantics<parallel>], iteration_bounds = array<i64: 2>, scalar_prefetch = 0 : i64, scratch_operands = 0 : i64, tpu.core_type = #tpu.core_type<tc>, window_params = [{transform_indices = @transform_0, window_bounds = array<i64: 1, 4, 128>}, {transform_indices = @transform_1, window_bounds = array<i64: 1, 8, 256>}, {pipeline_mode = #tpu.pipeline_mode<synchronous>, transform_indices = @transform_2, window_bounds = array<i64: 8, 4>}, {pipeline_mode = #tpu.pipeline_mode<synchronous>, transform_indices = @transform_3, window_bounds = array<i64: 128, 512>}, {pipeline_mode = #tpu.pipeline_mode<synchronous>, transform_indices = @transform_4, window_bounds = array<i64: 3, 512, 256>}, {pipeline_mode = #tpu.pipeline_mode<synchronous>, transform_indices = @transform_5, window_bounds = array<i64: 3, 256, 256>}, {pipeline_mode = #tpu.pipeline_mode<synchronous>, transform_indices = @transform_6, window_bounds = array<i64: 1, 256>}, {pipeline_mode = #tpu.pipeline_mode<synchronous>, transform_indices = @transform_7, window_bounds = array<i64: 3, 256, 256>}, {pipeline_mode = #tpu.pipeline_mode<synchronous>, transform_indices = @transform_8, window_bounds = array<i64: 1, 256>}, {pipeline_mode = #tpu.pipeline_mode<synchronous>, transform_indices = @transform_9, window_bounds = array<i64: 512, 256>}, {pipeline_mode = #tpu.pipeline_mode<synchronous>, transform_indices = @transform_10, window_bounds = array<i64: 256, 256>}, {pipeline_mode = #tpu.pipeline_mode<synchronous>, transform_indices = @transform_11, window_bounds = array<i64: 1, 256>}, {transform_indices = @transform_12, window_bounds = array<i64: 1, 8, 256>}]} {
    %c0 = arith.constant 0 : index
    %c0_0 = arith.constant 0 : index
    %c0_1 = arith.constant 0 : index
    %0 = vector.load %arg1[%c0, %c0_0, %c0_1] : memref<1x4x128xf32, #tpu.memory_space<vmem>>, vector<1x4x128xf32>
    %1 = vector.shape_cast %0 : vector<1x4x128xf32> to vector<4x128xf32>
    %c0_2 = arith.constant 0 : index
    %c0_3 = arith.constant 0 : index
    %2 = vector.load %arg3[%c0_2, %c0_3] : memref<8x4xf32, #tpu.memory_space<vmem>>, vector<8x4xf32>
    %cst = arith.constant dense<0.000000e+00> : vector<8x128xf32>
    %3 = tpu.matmul %2, %1, %cst {dimension_numbers = #tpu.dot_dimension_numbers<[1], [0], [0], [1], [0, 0, 1, 1], [], []>} : vector<8x4xf32>, vector<4x128xf32>, vector<8x128xf32> -> vector<8x128xf32>
    %c0_4 = arith.constant 0 : index
    %c0_5 = arith.constant 0 : index
    %4 = vector.load %arg4[%c0_4, %c0_5] : memref<128x512xf32, #tpu.memory_space<vmem>>, vector<128x512xf32>
    %cst_6 = arith.constant dense<0.000000e+00> : vector<8x512xf32>
    %5 = tpu.matmul %3, %4, %cst_6 {dimension_numbers = #tpu.dot_dimension_numbers<[1], [0], [0], [1], [0, 0, 1, 1], [], []>} : vector<8x128xf32>, vector<128x512xf32>, vector<8x512xf32> -> vector<8x512xf32>
    %c0_7 = arith.constant 0 : index
    %c0_8 = arith.constant 0 : index
    %c0_9 = arith.constant 0 : index
    %6 = vector.load %arg2[%c0_7, %c0_8, %c0_9] : memref<1x8x256xbf16, #tpu.memory_space<vmem>>, vector<1x8x256xbf16>
    %7 = vector.shape_cast %6 : vector<1x8x256xbf16> to vector<8x256xbf16>
    %8 = arith.truncf %5 : vector<8x512xf32> to vector<8x512xbf16>
    %cst_10 = arith.constant 0.000000e+00 : f32
    %9 = vector.broadcast %cst_10 : f32 to vector<8x512xf32>
    %10 = arith.maximumf %5, %9 : vector<8x512xf32>
    %11 = arith.truncf %10 : vector<8x512xf32> to vector<8x512xbf16>
    %cst_11 = arith.constant 0.000000e+00 : bf16
    %12 = vector.broadcast %cst_11 : bf16 to vector<8x256xbf16>
    %13 = arith.maximumf %7, %12 : vector<8x256xbf16>
    %14 = tpu.iota {dimensions = array<i32: 0>} : vector<8x8xi32>
    %15 = tpu.iota {dimensions = array<i32: 1>} : vector<8x8xi32>
    %c1_i32 = arith.constant 1 : i32
    %16 = vector.broadcast %c1_i32 : i32 to vector<8x8xi32>
    %17 = arith.subi %14, %16 : vector<8x8xi32>
    %18 = arith.cmpi eq, %15, %17 : vector<8x8xi32>
    %19 = arith.extui %18 : vector<8x8xi1> to vector<8x8xi32>
    %20 = arith.sitofp %19 : vector<8x8xi32> to vector<8x8xf32>
    %c1_i32_12 = arith.constant 1 : i32
    %21 = vector.broadcast %c1_i32_12 : i32 to vector<8x8xi32>
    %22 = arith.addi %14, %21 : vector<8x8xi32>
    %23 = arith.cmpi eq, %15, %22 : vector<8x8xi32>
    %24 = arith.extui %23 : vector<8x8xi1> to vector<8x8xi32>
    %25 = arith.sitofp %24 : vector<8x8xi32> to vector<8x8xf32>
    %c0_13 = arith.constant 0 : index
    %c0_14 = arith.constant 0 : index
    %c0_15 = arith.constant 0 : index
    %26 = vector.load %arg5[%c0_13, %c0_14, %c0_15] : memref<3x512x256xbf16, #tpu.memory_space<vmem>>, vector<1x512x256xbf16>
    %27 = vector.shape_cast %26 : vector<1x512x256xbf16> to vector<512x256xbf16>
    %cst_16 = arith.constant dense<0.000000e+00> : vector<8x256xf32>
    %28 = tpu.matmul %11, %27, %cst_16 {dimension_numbers = #tpu.dot_dimension_numbers<[1], [0], [0], [1], [0, 0, 1, 1], [], []>} : vector<8x512xbf16>, vector<512x256xbf16>, vector<8x256xf32> -> vector<8x256xf32>
    %c0_17 = arith.constant 0 : index
    %c0_18 = arith.constant 0 : index
    %c0_19 = arith.constant 0 : index
    %29 = vector.load %arg6[%c0_17, %c0_18, %c0_19] : memref<3x256x256xbf16, #tpu.memory_space<vmem>>, vector<1x256x256xbf16>
    %30 = vector.shape_cast %29 : vector<1x256x256xbf16> to vector<256x256xbf16>
    %cst_20 = arith.constant dense<0.000000e+00> : vector<8x256xf32>
    %31 = tpu.matmul %13, %30, %cst_20 {dimension_numbers = #tpu.dot_dimension_numbers<[1], [0], [0], [1], [0, 0, 1, 1], [], []>} : vector<8x256xbf16>, vector<256x256xbf16>, vector<8x256xf32> -> vector<8x256xf32>
    %32 = arith.addf %28, %31 : vector<8x256xf32>
    %c1 = arith.constant 1 : index
    %c0_21 = arith.constant 0 : index
    %c0_22 = arith.constant 0 : index
    %33 = vector.load %arg5[%c1, %c0_21, %c0_22] : memref<3x512x256xbf16, #tpu.memory_space<vmem>>, vector<1x512x256xbf16>
    %34 = vector.shape_cast %33 : vector<1x512x256xbf16> to vector<512x256xbf16>
    %cst_23 = arith.constant dense<0.000000e+00> : vector<8x256xf32>
    %35 = tpu.matmul %11, %34, %cst_23 {dimension_numbers = #tpu.dot_dimension_numbers<[1], [0], [0], [1], [0, 0, 1, 1], [], []>} : vector<8x512xbf16>, vector<512x256xbf16>, vector<8x256xf32> -> vector<8x256xf32>
    %c1_24 = arith.constant 1 : index
    %c0_25 = arith.constant 0 : index
    %c0_26 = arith.constant 0 : index
    %36 = vector.load %arg6[%c1_24, %c0_25, %c0_26] : memref<3x256x256xbf16, #tpu.memory_space<vmem>>, vector<1x256x256xbf16>
    %37 = vector.shape_cast %36 : vector<1x256x256xbf16> to vector<256x256xbf16>
    %cst_27 = arith.constant dense<0.000000e+00> : vector<8x256xf32>
    %38 = tpu.matmul %13, %37, %cst_27 {dimension_numbers = #tpu.dot_dimension_numbers<[1], [0], [0], [1], [0, 0, 1, 1], [], []>} : vector<8x256xbf16>, vector<256x256xbf16>, vector<8x256xf32> -> vector<8x256xf32>
    %39 = arith.addf %35, %38 : vector<8x256xf32>
    %c2 = arith.constant 2 : index
    %c0_28 = arith.constant 0 : index
    %c0_29 = arith.constant 0 : index
    %40 = vector.load %arg5[%c2, %c0_28, %c0_29] : memref<3x512x256xbf16, #tpu.memory_space<vmem>>, vector<1x512x256xbf16>
    %41 = vector.shape_cast %40 : vector<1x512x256xbf16> to vector<512x256xbf16>
    %cst_30 = arith.constant dense<0.000000e+00> : vector<8x256xf32>
    %42 = tpu.matmul %11, %41, %cst_30 {dimension_numbers = #tpu.dot_dimension_numbers<[1], [0], [0], [1], [0, 0, 1, 1], [], []>} : vector<8x512xbf16>, vector<512x256xbf16>, vector<8x256xf32> -> vector<8x256xf32>
    %c2_31 = arith.constant 2 : index
    %c0_32 = arith.constant 0 : index
    %c0_33 = arith.constant 0 : index
    %43 = vector.load %arg6[%c2_31, %c0_32, %c0_33] : memref<3x256x256xbf16, #tpu.memory_space<vmem>>, vector<1x256x256xbf16>
    %44 = vector.shape_cast %43 : vector<1x256x256xbf16> to vector<256x256xbf16>
    %cst_34 = arith.constant dense<0.000000e+00> : vector<8x256xf32>
    %45 = tpu.matmul %13, %44, %cst_34 {dimension_numbers = #tpu.dot_dimension_numbers<[1], [0], [0], [1], [0, 0, 1, 1], [], []>} : vector<8x256xbf16>, vector<256x256xbf16>, vector<8x256xf32> -> vector<8x256xf32>
    %46 = arith.addf %42, %45 : vector<8x256xf32>
    %cst_35 = arith.constant dense<0.000000e+00> : vector<8x256xf32>
    %47 = tpu.matmul %20, %32, %cst_35 {dimension_numbers = #tpu.dot_dimension_numbers<[1], [0], [0], [1], [0, 0, 1, 1], [], []>} : vector<8x8xf32>, vector<8x256xf32>, vector<8x256xf32> -> vector<8x256xf32>
    %48 = arith.addf %39, %47 : vector<8x256xf32>
    %cst_36 = arith.constant dense<0.000000e+00> : vector<8x256xf32>
    %49 = tpu.matmul %25, %46, %cst_36 {dimension_numbers = #tpu.dot_dimension_numbers<[1], [0], [0], [1], [0, 0, 1, 1], [], []>} : vector<8x8xf32>, vector<8x256xf32>, vector<8x256xf32> -> vector<8x256xf32>
    %50 = arith.addf %48, %49 : vector<8x256xf32>
    %c0_37 = arith.constant 0 : index
    %c0_38 = arith.constant 0 : index
    %51 = vector.load %arg7[%c0_37, %c0_38] : memref<1x256xf32, #tpu.memory_space<vmem>>, vector<1x256xf32>
    %52 = vector.broadcast %51 : vector<1x256xf32> to vector<8x256xf32>
    %53 = arith.addf %50, %52 : vector<8x256xf32>
    %cst_39 = arith.constant 0.000000e+00 : f32
    %54 = vector.broadcast %cst_39 : f32 to vector<8x256xf32>
    %55 = arith.maximumf %53, %54 : vector<8x256xf32>
    %56 = arith.truncf %55 : vector<8x256xf32> to vector<8x256xbf16>
    %c0_40 = arith.constant 0 : index
    %c0_41 = arith.constant 0 : index
    %c0_42 = arith.constant 0 : index
    %57 = vector.load %arg8[%c0_40, %c0_41, %c0_42] : memref<3x256x256xbf16, #tpu.memory_space<vmem>>, vector<1x256x256xbf16>
    %58 = vector.shape_cast %57 : vector<1x256x256xbf16> to vector<256x256xbf16>
    %cst_43 = arith.constant dense<0.000000e+00> : vector<8x256xf32>
    %59 = tpu.matmul %56, %58, %cst_43 {dimension_numbers = #tpu.dot_dimension_numbers<[1], [0], [0], [1], [0, 0, 1, 1], [], []>} : vector<8x256xbf16>, vector<256x256xbf16>, vector<8x256xf32> -> vector<8x256xf32>
    %c1_44 = arith.constant 1 : index
    %c0_45 = arith.constant 0 : index
    %c0_46 = arith.constant 0 : index
    %60 = vector.load %arg8[%c1_44, %c0_45, %c0_46] : memref<3x256x256xbf16, #tpu.memory_space<vmem>>, vector<1x256x256xbf16>
    %61 = vector.shape_cast %60 : vector<1x256x256xbf16> to vector<256x256xbf16>
    %cst_47 = arith.constant dense<0.000000e+00> : vector<8x256xf32>
    %62 = tpu.matmul %56, %61, %cst_47 {dimension_numbers = #tpu.dot_dimension_numbers<[1], [0], [0], [1], [0, 0, 1, 1], [], []>} : vector<8x256xbf16>, vector<256x256xbf16>, vector<8x256xf32> -> vector<8x256xf32>
    %c2_48 = arith.constant 2 : index
    %c0_49 = arith.constant 0 : index
    %c0_50 = arith.constant 0 : index
    %63 = vector.load %arg8[%c2_48, %c0_49, %c0_50] : memref<3x256x256xbf16, #tpu.memory_space<vmem>>, vector<1x256x256xbf16>
    %64 = vector.shape_cast %63 : vector<1x256x256xbf16> to vector<256x256xbf16>
    %cst_51 = arith.constant dense<0.000000e+00> : vector<8x256xf32>
    %65 = tpu.matmul %56, %64, %cst_51 {dimension_numbers = #tpu.dot_dimension_numbers<[1], [0], [0], [1], [0, 0, 1, 1], [], []>} : vector<8x256xbf16>, vector<256x256xbf16>, vector<8x256xf32> -> vector<8x256xf32>
    %cst_52 = arith.constant dense<0.000000e+00> : vector<8x256xf32>
    %66 = tpu.matmul %20, %59, %cst_52 {dimension_numbers = #tpu.dot_dimension_numbers<[1], [0], [0], [1], [0, 0, 1, 1], [], []>} : vector<8x8xf32>, vector<8x256xf32>, vector<8x256xf32> -> vector<8x256xf32>
    %67 = arith.addf %62, %66 : vector<8x256xf32>
    %cst_53 = arith.constant dense<0.000000e+00> : vector<8x256xf32>
    %68 = tpu.matmul %25, %65, %cst_53 {dimension_numbers = #tpu.dot_dimension_numbers<[1], [0], [0], [1], [0, 0, 1, 1], [], []>} : vector<8x8xf32>, vector<8x256xf32>, vector<8x256xf32> -> vector<8x256xf32>
    %69 = arith.addf %67, %68 : vector<8x256xf32>
    %c0_54 = arith.constant 0 : index
    %c0_55 = arith.constant 0 : index
    %70 = vector.load %arg9[%c0_54, %c0_55] : memref<1x256xf32, #tpu.memory_space<vmem>>, vector<1x256xf32>
    %71 = vector.broadcast %70 : vector<1x256xf32> to vector<8x256xf32>
    %72 = arith.addf %69, %71 : vector<8x256xf32>
    %c0_56 = arith.constant 0 : index
    %c0_57 = arith.constant 0 : index
    %73 = vector.load %arg10[%c0_56, %c0_57] : memref<512x256xbf16, #tpu.memory_space<vmem>>, vector<512x256xbf16>
    %cst_58 = arith.constant dense<0.000000e+00> : vector<8x256xf32>
    %74 = tpu.matmul %8, %73, %cst_58 {dimension_numbers = #tpu.dot_dimension_numbers<[1], [0], [0], [1], [0, 0, 1, 1], [], []>} : vector<8x512xbf16>, vector<512x256xbf16>, vector<8x256xf32> -> vector<8x256xf32>
    %c0_59 = arith.constant 0 : index
    %c0_60 = arith.constant 0 : index
    %75 = vector.load %arg11[%c0_59, %c0_60] : memref<256x256xbf16, #tpu.memory_space<vmem>>, vector<256x256xbf16>
    %cst_61 = arith.constant dense<0.000000e+00> : vector<8x256xf32>
    %76 = tpu.matmul %7, %75, %cst_61 {dimension_numbers = #tpu.dot_dimension_numbers<[1], [0], [0], [1], [0, 0, 1, 1], [], []>} : vector<8x256xbf16>, vector<256x256xbf16>, vector<8x256xf32> -> vector<8x256xf32>
    %77 = arith.addf %74, %76 : vector<8x256xf32>
    %c0_62 = arith.constant 0 : index
    %c0_63 = arith.constant 0 : index
    %78 = vector.load %arg12[%c0_62, %c0_63] : memref<1x256xf32, #tpu.memory_space<vmem>>, vector<1x256xf32>
    %79 = vector.broadcast %78 : vector<1x256xf32> to vector<8x256xf32>
    %80 = arith.addf %77, %79 : vector<8x256xf32>
    %81 = arith.addf %72, %80 : vector<8x256xf32>
    %82 = vector.shape_cast %81 : vector<8x256xf32> to vector<1x8x256xf32>
    %c0_64 = arith.constant 0 : index
    %c0_65 = arith.constant 0 : index
    %c0_66 = arith.constant 0 : index
    %83 = vector.load %arg13[%c0_64, %c0_65, %c0_66] : memref<1x8x256xf32, #tpu.memory_space<vmem>>, vector<1x8x256xf32>
    tpu.vector_store %arg13[%c0_64, %c0_65, %c0_66], %82 {strides = array<i32>} : memref<1x8x256xf32, #tpu.memory_space<vmem>>, vector<1x8x256xf32>,
    return
  }
  func.func @transform_0(%arg0: i32) -> (i32, i32, i32) {
    %c0_i32 = arith.constant 0 : i32
    %c0_i32_0 = arith.constant 0 : i32
    %c0_i32_1 = arith.constant 0 : i32
    return %arg0, %c0_i32, %c0_i32_0 : i32, i32, i32
  }
  func.func @transform_1(%arg0: i32) -> (i32, i32, i32) {
    %c0_i32 = arith.constant 0 : i32
    %c0_i32_0 = arith.constant 0 : i32
    %c0_i32_1 = arith.constant 0 : i32
    return %arg0, %c0_i32, %c0_i32_0 : i32, i32, i32
  }
  func.func @transform_2(%arg0: i32) -> (i32, i32) {
    %c0_i32 = arith.constant 0 : i32
    %c0_i32_0 = arith.constant 0 : i32
    %c0_i32_1 = arith.constant 0 : i32
    return %c0_i32, %c0_i32_0 : i32, i32
  }
  func.func @transform_3(%arg0: i32) -> (i32, i32) {
    %c0_i32 = arith.constant 0 : i32
    %c0_i32_0 = arith.constant 0 : i32
    %c0_i32_1 = arith.constant 0 : i32
    return %c0_i32, %c0_i32_0 : i32, i32
  }
  func.func @transform_4(%arg0: i32) -> (i32, i32, i32) {
    %c0_i32 = arith.constant 0 : i32
    %c0_i32_0 = arith.constant 0 : i32
    %c0_i32_1 = arith.constant 0 : i32
    %c0_i32_2 = arith.constant 0 : i32
    return %c0_i32, %c0_i32_0, %c0_i32_1 : i32, i32, i32
  }
  func.func @transform_5(%arg0: i32) -> (i32, i32, i32) {
    %c0_i32 = arith.constant 0 : i32
    %c0_i32_0 = arith.constant 0 : i32
    %c0_i32_1 = arith.constant 0 : i32
    %c0_i32_2 = arith.constant 0 : i32
    return %c0_i32, %c0_i32_0, %c0_i32_1 : i32, i32, i32
  }
  func.func @transform_6(%arg0: i32) -> (i32, i32) {
    %c0_i32 = arith.constant 0 : i32
    %c0_i32_0 = arith.constant 0 : i32
    %c0_i32_1 = arith.constant 0 : i32
    return %c0_i32, %c0_i32_0 : i32, i32
  }
  func.func @transform_7(%arg0: i32) -> (i32, i32, i32) {
    %c0_i32 = arith.constant 0 : i32
    %c0_i32_0 = arith.constant 0 : i32
    %c0_i32_1 = arith.constant 0 : i32
    %c0_i32_2 = arith.constant 0 : i32
    return %c0_i32, %c0_i32_0, %c0_i32_1 : i32, i32, i32
  }
  func.func @transform_8(%arg0: i32) -> (i32, i32) {
    %c0_i32 = arith.constant 0 : i32
    %c0_i32_0 = arith.constant 0 : i32
    %c0_i32_1 = arith.constant 0 : i32
    return %c0_i32, %c0_i32_0 : i32, i32
  }
  func.func @transform_9(%arg0: i32) -> (i32, i32) {
    %c0_i32 = arith.constant 0 : i32
    %c0_i32_0 = arith.constant 0 : i32
    %c0_i32_1 = arith.constant 0 : i32
    return %c0_i32, %c0_i32_0 : i32, i32
  }
  func.func @transform_10(%arg0: i32) -> (i32, i32) {
    %c0_i32 = arith.constant 0 : i32
    %c0_i32_0 = arith.constant 0 : i32
    %c0_i32_1 = arith.constant 0 : i32
    return %c0_i32, %c0_i32_0 : i32, i32
  }
  func.func @transform_11(%arg0: i32) -> (i32, i32) {
    %c0_i32 = arith.constant 0 : i32
    %c0_i32_0 = arith.constant 0 : i32
    %c0_i32_1 = arith.constant 0 : i32
    return %c0_i32, %c0_i32_0 : i32, i32
  }
  func.func @transform_12(%arg0: i32) -> (i32, i32, i32) {
    %c0_i32 = arith.constant 0 : i32
    %c0_i32_0 = arith.constant 0 : i32
    %c0_i32_1 = arith.constant 0 : i32
    return %arg0, %c0_i32, %c0_i32_0 : i32, i32, i32
  }
}

</mosaic_0001>

<bundles_post_ra>
// kernel: fwd.1
= control target key start
LH: loop header
LB: loop body
LE: loop exit
PB: predicated region body
PF: predicated region fallthrough
CT: control target
= control target key end

     0   :  { %s7580_s0 = inlined_call_operand.hbm [shape: f32[2,4,128], index: 0, kind: input, shape index: {}]   ;;  %s7581_s1 = inlined_call_operand.hbm [shape: bf16[2,8,256], index: 1, kind: input, shape index: {}]   ;;  %s7582_s2 = inlined_call_operand.hbm [shape: f32[8,4], index: 2, kind: input, shape index: {}]   ;;  %s7583_s3 = inlined_call_operand.hbm [shape: f32[128,512], index: 3, kind: input, shape index: {}]   ;;  %s7584_s4 = inlined_call_operand.hbm [shape: bf16[3,512,256], index: 4, kind: input, shape index: {}]   ;;  %s7585_s5 = inlined_call_operand.hbm [shape: bf16[3,256,256], index: 5, kind: input, shape index: {}]   ;;  %s7586_s6 = inlined_call_operand.hbm [shape: f32[1,256], index: 6, kind: input, shape index: {}]   ;;  %s7587_s7 = inlined_call_operand.hbm [shape: bf16[3,256,256], index: 7, kind: input, shape index: {}]   ;;  %s7588_s8 = inlined_call_operand.hbm [shape: f32[1,256], index: 8, kind: input, shape index: {}]   ;;  %s7589_s9 = inlined_call_operand.hbm [shape: bf16[512,256], index: 9, kind: input, shape index: {}]   ;;  %s7590_s10 = inlined_call_operand.hbm [shape: bf16[256,256], index: 10, kind: input, shape index: {}]   ;;  %s7591_s11 = inlined_call_operand.hbm [shape: f32[1,256], index: 11, kind: input, shape index: {}]   ;;  %s7592_s12 = inlined_call_operand.hbm [shape: f32[2,8,256], index: 12, kind: output, shape index: {}]  }
   0x1   :  { %7601 = sst [smem:[#allocation33_spill]] %s7580_s0 }
   0x2   :  { %7602 = sst [smem:[#allocation34_spill]] %s7581_s1 }
   0x3   :  { %7603 = sst [smem:[#allocation35_spill]] %s7582_s2 }
   0x4   :  { %7604 = sst [smem:[#allocation36_spill]] %s7583_s3 }
   0x5   :  { %7605 = sst [smem:[#allocation37_spill]] %s7584_s4 }
   0x6   :  { %7606 = sst [smem:[#allocation38_spill]] %s7585_s5 }
   0x7   :  { %7607 = sst [smem:[#allocation39_spill]] %s7586_s6 }
   0x8   :  { %7608 = sst [smem:[#allocation40_spill]] %s7587_s7 }
   0x9   :  { %7609 = sst [smem:[#allocation41_spill]] %s7592_s12 }
   0xa   :  { %17 = vsyncpa [#allocation3], 0 }
   0xb   :  { %19 = vsyncpa [#allocation3 + $0x1], 0 }
   0xc   :  { %20 = vsyncpa [#allocation6], 0 }
   0xd   :  { %22 = vsyncpa [#allocation6 + $0x1], 0 }
   0xe   :  { %23 = vsyncpa [#allocation9], 0 }
   0xf   :  { %24 = vsyncpa [#allocation12], 0 }
  0x10   :  { %25 = vsyncpa [#allocation15], 0 }
  0x11   :  { %26 = vsyncpa [#allocation18], 0 }
  0x12   :  { %27 = vsyncpa [#allocation21], 0 }
  0x13   :  { %28 = vsyncpa [#allocation4], 0 }
  0x14   :  { %30 = vsyncpa [#allocation4 + $0x1], 0  ;;  %s7012_s21 = smov 0   ;;  %s7014_s22 = smov 0  }
  0x15   :  { %s7016_s23 = smov 0   ;;  %s7018_s24 = smov 0  }
  0x16 LB: > { %s6927_s25 = smov [#allocation7]   ;;  %s7033_s27 = sadd.s32 4294967295, %s6925_s24   ;;  %s6925_s24 = sphi %s7018_s24, %s7652_s24   ;;  %s6921_s23 = sphi %s7016_s23, %s7651_s23   ;;  %s6917_s22 = sphi %s7014_s22, %s7650_s22   ;;  %s6913_s21 = sphi %s7012_s21, %s7649_s21  }
  0x17   : > { %s342_s26 = sshll.u32 %s6927_s25, 4  ;;  %p4983_p0 = scmp.ge.s32.totalorder %s6925_s24, 1  ;;  %s343_s26 = int_to_ptr.vmem [resolvable:$true] %s342_s26 }
  0x18   : > { %p7593_p1 = scmp.eq.s32.totalorder %s7033_s27, 0  ;;  %p329_p2 = scmp.lt.s32.totalorder %s6925_s24, 3 }
  0x19   : > { %s6928_s29 = smov [#allocation8]   ;;  %s6929_s14 = smov [#allocation11]  }
  0x1a   : > { %p7038_p3 = pnand %p4983_p0, %p329_p2  ;;  %s352_s30 = sshll.u32 %s6928_s29, 4  ;;  %s7045_s30 = int_to_ptr.vmem [resolvable:$true] %s352_s30 }
  0x1b   : > { %s7053_s15 = sshll.u32 %s6929_s14, 4  ;;  %s7613_s2 = sld [smem:[#allocation35_spill]]  ;;  %s379_s15 = int_to_ptr.vmem [resolvable:$true] %s7053_s15 }
  0x1c   : > { %s7610_s28 = scalar_select %p7038_p3, 1, 0 }
  0x1d   : > { %p5655_p5 = pneg %p7038_p3 }
  0x1e   : > { %7611 = sst [smem:[#allocation32_spill]] %s7610_s28 }
  0x1f   : > { %p7049_p6 = pnand %p5655_p5, %p7593_p1 }
  0x21   : > { %s6491_s18 = scalar_lea.hbm %s7613_s2, 128  ;;  %p7063_p8 = pneg %p7049_p6 }
  0x22   : > { %p6492_p7 = scmp.ne.s32.totalorder %s7613_s2, %s6491_s18  ;;  %p6498_p11 = scmp.lt.u32.totalorder %s6491_s18, %s7613_s2 }
  0x24   : > { %p6494_p9 = pnand %p7063_p8, %p6492_p7 }
  0x26   : > { %p6495_p10 = pneg %p6494_p9 }
  0x28   : > { %p6500_p12 = pnand %p6498_p11, %p6495_p10 }
  0x2a   : > { %6503 = shalt.err (!%p6500_p12)
}
  0x2b   : > { %s6504_s16 = scalar_lea.vmem %s343_s26, 128  ;;  %p6512_p5 = scmp.lt.s32.totalorder %s343_s26, %s343_s26 }
  0x2c   : > { %p6505_p13 = scmp.ne.s32.totalorder %s343_s26, %s6504_s16  ;;  %p6513_p4 = scmp.lt.s32.totalorder %s6504_s16, %s6504_s16 }
  0x2e   : > { %p6507_p0 = pnand %p6505_p13, %p7063_p8  ;;  %p6514_p1 = por %p6513_p4, %p6512_p5 }
  0x30   : > { %p6508_p2 = pneg %p6507_p0 }
  0x32   : > { %p6515_p3 = pnand %p6514_p1, %p6508_p2 }
  0x34   : > { %6518 = shalt.err (!%p6515_p3)
}
  0x35   : > { %5658 = dma.hbm_to_vmem [thread:$0]  (!%p7049_p6), %s7613_s2, 128, %s343_s26, [#allocation6]  }
  0x36   : > { %s7615_s3 = sld [smem:[#allocation36_spill]] }
  0x3c   : > { %s6519_s29 = scalar_lea.hbm %s7615_s3, 8192 }
  0x3d   : > { %p6520_p7 = scmp.ne.s32.totalorder %s7615_s3, %s6519_s29  ;;  %p6526_p1 = scmp.lt.u32.totalorder %s6519_s29, %s7615_s3 }
  0x3f   : > { %p6522_p9 = pnand %p6520_p7, %p7063_p8 }
  0x41   : > { %p6523_p4 = pneg %p6522_p9 }
  0x43   : > { %p6528_p3 = pnand %p6526_p1, %p6523_p4 }
  0x45   : > { %6531 = shalt.err (!%p6528_p3)
}
  0x46   : > { %s6532_s26 = scalar_lea.vmem %s7045_s30, 8192  ;;  %p6540_p13 = scmp.lt.s32.totalorder %s7045_s30, %s7045_s30 }
  0x47   : > { %p6533_p10 = scmp.ne.s32.totalorder %s7045_s30, %s6532_s26  ;;  %p6541_p0 = scmp.lt.s32.totalorder %s6532_s26, %s6532_s26 }
  0x49   : > { %p6535_p11 = pnand %p6533_p10, %p7063_p8  ;;  %p6542_p2 = por %p6541_p0, %p6540_p13 }
  0x4b   : > { %p6536_p12 = pneg %p6535_p11 }
  0x4d   : > { %p6543_p5 = pnand %p6542_p2, %p6536_p12 }
  0x4f   : > { %6546 = shalt.err (!%p6543_p5)
}
  0x50   : > { %s6930_s12 = smov 512   ;;  %s6931_s28 = smov 32  }
  0x51   : > { %5661 = dma.hbm_to_vmem [thread:$0]  (!%p7049_p6), %s7615_s3, 8192, %s7045_s30, [#allocation9], %s6930_s12, %s6930_s12, %s6931_s28  }
  0x52   : > { %s7616_s5 = sld [smem:[#allocation38_spill]] }
  0x58   : > { %s6547_s29 = scalar_lea.hbm %s7616_s5, 12288 }
  0x59   : > { %p6548_p7 = scmp.ne.s32.totalorder %s7616_s5, %s6547_s29  ;;  %p6554_p1 = scmp.lt.u32.totalorder %s6547_s29, %s7616_s5 }
  0x5b   : > { %p6550_p9 = pnand %p6548_p7, %p7063_p8 }
  0x5d   : > { %p6551_p4 = pneg %p6550_p9 }
  0x5f   : > { %p6556_p3 = pnand %p6554_p1, %p6551_p4 }
  0x61   : > { %6559 = shalt.err (!%p6556_p3)
}
  0x62   : > { %s6560_s17 = scalar_lea.vmem %s379_s15, 12288  ;;  %p6568_p13 = scmp.lt.s32.totalorder %s379_s15, %s379_s15 }
  0x63   : > { %p6561_p10 = scmp.ne.s32.totalorder %s379_s15, %s6560_s17  ;;  %p6569_p0 = scmp.lt.s32.totalorder %s6560_s17, %s6560_s17 }
  0x65   : > { %p6563_p11 = pnand %p6561_p10, %p7063_p8  ;;  %p6570_p2 = por %p6569_p0, %p6568_p13 }
  0x67   : > { %p6564_p12 = pneg %p6563_p11 }
  0x69   : > { %p6571_p5 = pnand %p6570_p2, %p6564_p12 }
  0x6b   : > { %6574 = shalt.err (!%p6571_p5)
}
  0x6c   : > { %s6932_s30 = smov 128   ;;  %s6933_s12 = smov 8  }
  0x6d   : > { %5667 = dma.hbm_to_vmem [thread:$0]  (!%p7049_p6), %s7616_s5, 12288, %s379_s15, [#allocation12], %s6932_s30, %s6932_s30, %s6933_s12  }
  0x6e   : > { %s6934_s19 = smov [#allocation14]   ;;  %s6935_s20 = smov [#allocation17]  }
  0x6f   : > { %s402_s18 = sshll.u32 %s6934_s19, 4  ;;  %s426_s29 = sshll.u32 %s6935_s20, 4  ;;  %s403_s18 = int_to_ptr.vmem [resolvable:$true] %s402_s18  ;;  %s427_s29 = int_to_ptr.vmem [resolvable:$true] %s426_s29 }
  0x70   : > { %s7617_s7 = sld [smem:[#allocation40_spill]] }
  0x76   : > { %s6575_s26 = scalar_lea.hbm %s7617_s7, 12288 }
  0x77   : > { %p6576_p7 = scmp.ne.s32.totalorder %s7617_s7, %s6575_s26  ;;  %p6582_p1 = scmp.lt.u32.totalorder %s6575_s26, %s7617_s7 }
  0x79   : > { %p6578_p9 = pnand %p6576_p7, %p7063_p8 }
  0x7b   : > { %p6579_p4 = pneg %p6578_p9 }
  0x7d   : > { %p6584_p3 = pnand %p6582_p1, %p6579_p4 }
  0x7f   : > { %6587 = shalt.err (!%p6584_p3)
}
  0x80   : > { %s6588_s15 = scalar_lea.vmem %s403_s18, 12288  ;;  %p6596_p13 = scmp.lt.s32.totalorder %s403_s18, %s403_s18 }
  0x81   : > { %p6589_p10 = scmp.ne.s32.totalorder %s403_s18, %s6588_s15  ;;  %p6597_p0 = scmp.lt.s32.totalorder %s6588_s15, %s6588_s15 }
  0x83   : > { %p6591_p11 = pnand %p6589_p10, %p7063_p8  ;;  %p6598_p2 = por %p6597_p0, %p6596_p13 }
  0x85   : > { %p6592_p12 = pneg %p6591_p11 }
  0x87   : > { %p6599_p5 = pnand %p6598_p2, %p6592_p12 }
  0x89   : > { %6602 = shalt.err (!%p6599_p5)
}
  0x8a   : > { %5673 = dma.hbm_to_vmem [thread:$0]  (!%p7049_p6), %s7617_s7, 12288, %s403_s18, [#allocation15], %s6932_s30, %s6932_s30, %s6933_s12  }
  0x8b   : > { %s6603_s28 = scalar_lea.hbm %s7589_s9, 8192 }
  0x8c   : > { %p6604_p7 = scmp.ne.s32.totalorder %s7589_s9, %s6603_s28  ;;  %p6610_p1 = scmp.lt.u32.totalorder %s6603_s28, %s7589_s9 }
  0x8e   : > { %p6606_p9 = pnand %p6604_p7, %p7063_p8 }
  0x90   : > { %p6607_p4 = pneg %p6606_p9 }
  0x92   : > { %p6612_p3 = pnand %p6610_p1, %p6607_p4 }
  0x94   : > { %6615 = shalt.err (!%p6612_p3)
}
  0x95   : > { %s6616_s26 = scalar_lea.vmem %s427_s29, 8192  ;;  %p6624_p13 = scmp.lt.s32.totalorder %s427_s29, %s427_s29 }
  0x96   : > { %p6617_p10 = scmp.ne.s32.totalorder %s427_s29, %s6616_s26  ;;  %p6625_p0 = scmp.lt.s32.totalorder %s6616_s26, %s6616_s26 }
  0x98   : > { %p6619_p11 = pnand %p6617_p10, %p7063_p8  ;;  %p6626_p2 = por %p6625_p0, %p6624_p13 }
  0x9a   : > { %p6620_p12 = pneg %p6619_p11 }
  0x9c   : > { %p6627_p5 = pnand %p6626_p2, %p6620_p12 }
  0x9e   : > { %6630 = shalt.err (!%p6627_p5)
}
  0x9f   : > { %5679 = dma.hbm_to_vmem [thread:$0]  (!%p7049_p6), %s7589_s9, 8192, %s427_s29, [#allocation18], %s6932_s30, %s6932_s30, %s6933_s12  }
  0xa0   : > { %s6936_s15 = smov [#allocation10]   ;;  %s6937_s1 = smov [#allocation13]  }
  0xa1   : > { %s365_s0 = sshll.u32 %s6936_s15, 4  ;;  %s392_s3 = sshll.u32 %s6937_s1, 4  ;;  %s366_s0 = int_to_ptr.vmem [resolvable:$true] %s365_s0  ;;  %s393_s3 = int_to_ptr.vmem [resolvable:$true] %s392_s3 }
  0xa2   : > { %s7618_s4 = sld [smem:[#allocation37_spill]] }
  0xa8   : > { %s6631_s19 = scalar_lea.hbm %s7618_s4, 24576 }
  0xa9   : > { %p6632_p7 = scmp.ne.s32.totalorder %s7618_s4, %s6631_s19  ;;  %p6638_p1 = scmp.lt.u32.totalorder %s6631_s19, %s7618_s4 }
  0xab   : > { %p6634_p9 = pnand %p6632_p7, %p7063_p8 }
  0xad   : > { %p6635_p4 = pneg %p6634_p9 }
  0xaf   : > { %p6640_p3 = pnand %p6638_p1, %p6635_p4 }
  0xb1   : > { %6643 = shalt.err (!%p6640_p3)
}
  0xb2   : > { %s6644_s29 = scalar_lea.vmem %s366_s0, 24576  ;;  %p6652_p13 = scmp.lt.s32.totalorder %s366_s0, %s366_s0 }
  0xb3   : > { %p6645_p10 = scmp.ne.s32.totalorder %s366_s0, %s6644_s29  ;;  %p6653_p0 = scmp.lt.s32.totalorder %s6644_s29, %s6644_s29 }
  0xb5   : > { %p6647_p11 = pnand %p6645_p10, %p7063_p8  ;;  %p6654_p2 = por %p6653_p0, %p6652_p13 }
  0xb7   : > { %p6648_p12 = pneg %p6647_p11 }
  0xb9   : > { %p6655_p5 = pnand %p6654_p2, %p6648_p12 }
  0xbb   : > { %6658 = shalt.err (!%p6655_p5)
}
  0xbc   : > { %5664 = dma.hbm_to_vmem [thread:$0]  (!%p7049_p6), %s7618_s4, 24576, %s366_s0, [#allocation9], %s6932_s30, %s6932_s30, %s6933_s12  }
  0xbd   : > { %s7619_s6 = sld [smem:[#allocation39_spill]] }
  0xc3   : > { %s6659_s2 = scalar_lea.hbm %s7619_s6, 32 }
  0xc4   : > { %p6660_p7 = scmp.ne.s32.totalorder %s7619_s6, %s6659_s2  ;;  %p6666_p1 = scmp.lt.u32.totalorder %s6659_s2, %s7619_s6 }
  0xc6   : > { %p6662_p9 = pnand %p6660_p7, %p7063_p8 }
  0xc8   : > { %p6663_p4 = pneg %p6662_p9 }
  0xca   : > { %p6668_p3 = pnand %p6666_p1, %p6663_p4 }
  0xcc   : > { %6671 = shalt.err (!%p6668_p3)
}
  0xcd   : > { %s6672_s16 = scalar_lea.vmem %s393_s3, 32  ;;  %p6680_p13 = scmp.lt.s32.totalorder %s393_s3, %s393_s3 }
  0xce   : > { %p6673_p10 = scmp.ne.s32.totalorder %s393_s3, %s6672_s16  ;;  %p6681_p0 = scmp.lt.s32.totalorder %s6672_s16, %s6672_s16 }
  0xd0   : > { %p6675_p11 = pnand %p6673_p10, %p7063_p8  ;;  %p6682_p2 = por %p6681_p0, %p6680_p13 }
  0xd2   : > { %p6676_p12 = pneg %p6675_p11 }
  0xd4   : > { %p6683_p5 = pnand %p6682_p2, %p6676_p12 }
  0xd6   : > { %6686 = shalt.err (!%p6683_p5)
}
  0xd7   : > { %5670 = dma.hbm_to_vmem [thread:$0]  (!%p7049_p6), %s7619_s6, 32, %s393_s3, [#allocation12]  }
  0xd8   : > { %s6938_s29 = smov [#allocation16]   ;;  %s6939_s17 = smov [#allocation19]  }
  0xd9   : > { %s416_s18 = sshll.u32 %s6938_s29, 4  ;;  %s439_s15 = sshll.u32 %s6939_s17, 4  ;;  %s417_s18 = int_to_ptr.vmem [resolvable:$true] %s416_s18  ;;  %s440_s15 = int_to_ptr.vmem [resolvable:$true] %s439_s15 }
  0xda   : > { %s6687_s28 = scalar_lea.hbm %s7588_s8, 32 }
  0xdb   : > { %p6688_p7 = scmp.ne.s32.totalorder %s7588_s8, %s6687_s28  ;;  %p6694_p1 = scmp.lt.u32.totalorder %s6687_s28, %s7588_s8 }
  0xdd   : > { %p6690_p9 = pnand %p6688_p7, %p7063_p8 }
  0xdf   : > { %p6691_p4 = pneg %p6690_p9 }
  0xe1   : > { %p6696_p3 = pnand %p6694_p1, %p6691_p4 }
  0xe3   : > { %6699 = shalt.err (!%p6696_p3)
}
  0xe4   : > { %s6700_s3 = scalar_lea.vmem %s417_s18, 32  ;;  %p6708_p13 = scmp.lt.s32.totalorder %s417_s18, %s417_s18 }
  0xe5   : > { %p6701_p10 = scmp.ne.s32.totalorder %s417_s18, %s6700_s3  ;;  %p6709_p0 = scmp.lt.s32.totalorder %s6700_s3, %s6700_s3 }
  0xe7   : > { %p6703_p11 = pnand %p6701_p10, %p7063_p8  ;;  %p6710_p2 = por %p6709_p0, %p6708_p13 }
  0xe9   : > { %p6704_p12 = pneg %p6703_p11 }
  0xeb   : > { %p6711_p5 = pnand %p6710_p2, %p6704_p12 }
  0xed   : > { %6714 = shalt.err (!%p6711_p5)
}
  0xee   : > { %5676 = dma.hbm_to_vmem [thread:$0]  (!%p7049_p6), %s7588_s8, 32, %s417_s18, [#allocation15]  }
  0xef   : > { %s6715_s1 = scalar_lea.hbm %s7590_s10, 4096 }
  0xf0   : > { %p6716_p7 = scmp.ne.s32.totalorder %s7590_s10, %s6715_s1  ;;  %p6722_p1 = scmp.lt.u32.totalorder %s6715_s1, %s7590_s10 }
  0xf2   : > { %p6718_p9 = pnand %p6716_p7, %p7063_p8 }
  0xf4   : > { %p6719_p4 = pneg %p6718_p9 }
  0xf6   : > { %p6724_p3 = pnand %p6722_p1, %p6719_p4 }
  0xf8   : > { %6727 = shalt.err (!%p6724_p3)
}
  0xf9   : > { %s6728_s14 = scalar_lea.vmem %s440_s15, 4096  ;;  %p6736_p13 = scmp.lt.s32.totalorder %s440_s15, %s440_s15 }
  0xfa   : > { %p6729_p10 = scmp.ne.s32.totalorder %s440_s15, %s6728_s14  ;;  %p6737_p0 = scmp.lt.s32.totalorder %s6728_s14, %s6728_s14 }
  0xfc   : > { %p6731_p11 = pnand %p6729_p10, %p7063_p8  ;;  %p6738_p2 = por %p6737_p0, %p6736_p13 }
  0xfe   : > { %p6732_p12 = pneg %p6731_p11 }
 0x100   : > { %p6739_p5 = pnand %p6738_p2, %p6732_p12 }
 0x102   : > { %6742 = shalt.err (!%p6739_p5)
}
 0x103   : > { %5682 = dma.hbm_to_vmem [thread:$0]  (!%p7049_p6), %s7590_s10, 4096, %s440_s15, [#allocation18], %s6932_s30, %s6932_s30, %s6933_s12  }
 0x104   : > { %s6940_s3 = smov [#allocation20]   ;;  %s6743_s17 = scalar_lea.hbm %s7591_s11, 32 }
 0x105   : > { %s453_s0 = sshll.u32 %s6940_s3, 4  ;;  %p6744_p7 = scmp.ne.s32.totalorder %s7591_s11, %s6743_s17  ;;  %s454_s0 = int_to_ptr.vmem [resolvable:$true] %s453_s0 }
 0x106   : > { %p6750_p1 = scmp.lt.u32.totalorder %s6743_s17, %s7591_s11 }
 0x107   : > { %p6746_p9 = pnand %p6744_p7, %p7063_p8 }
 0x109   : > { %p6747_p4 = pneg %p6746_p9 }
 0x10b   : > { %p6752_p3 = pnand %p6750_p1, %p6747_p4 }
 0x10d   : > { %6755 = shalt.err (!%p6752_p3)
}
 0x10e   : > { %s6756_s30 = scalar_lea.vmem %s454_s0, 32  ;;  %p6764_p13 = scmp.lt.s32.totalorder %s454_s0, %s454_s0 }
 0x10f   : > { %p6757_p10 = scmp.ne.s32.totalorder %s454_s0, %s6756_s30  ;;  %p6765_p0 = scmp.lt.s32.totalorder %s6756_s30, %s6756_s30 }
 0x111   : > { %p6759_p11 = pnand %p6757_p10, %p7063_p8  ;;  %p6766_p2 = por %p6765_p0, %p6764_p13 }
 0x113   : > { %p6760_p12 = pneg %p6759_p11 }
 0x115   : > { %p6767_p5 = pnand %p6766_p2, %p6760_p12 }
 0x117   : > { %6770 = shalt.err (!%p6767_p5)
}
 0x118   : > { %5685 = dma.hbm_to_vmem [thread:$0]  (!%p7049_p6), %s7591_s11, 32, %s454_s0, [#allocation21]  }
 0x119   : > { %s4982_s25 = sadd.s32 4294967294, %s6925_s24   ;;  %s7264_s13 = sadd.s32 1, %s6925_s24  }
 0x11a   : > { %s40_s20 = ssub.s32 %s6925_s24, %s7264_s13  ;;  %s43_s14 = sadd.s32 1, %s6921_s23 }
 0x11b   : > { %p41_p8 = scmp.eq.s32.totalorder %s40_s20, 0  ;;  %p50_p7 = scmp.ne.s32.totalorder %s6921_s23, %s6917_s22 }
 0x11c   : > { %p51_p9 = scmp.eq.s32.totalorder %s6925_s24, 0  ;;  %p56_p4 = scmp.ne.s32.totalorder %s6917_s22, %s6913_s21 }
 0x11d   : > { %s7275_s18 = scalar_select %p41_p8, %s6921_s23, %s43_s14  }
 0x11e   : > { %p7277_p1 = por %p51_p9, %p50_p7  ;;  %p7621_p3 = scmp.eq.s32.totalorder %s7033_s27, 0 }
 0x11f   : > { %p316_p10 = scmp.eq.s32.totalorder %s7033_s27, 1  ;;  %p322_p11 = scmp.eq.s32.totalorder %s4982_s25, 1 }
 0x120   : > { %p7283_p6 = por %p7621_p3, %p56_p4  ;;  %p5707_p12 = scmp.lt.s32.totalorder %s6925_s24, 2 }
 0x121   : > { %s7290_s0 = sand.u32 1, %s6921_s23   ;;  %p7292_p13 = por %p316_p10, %p50_p7 }
 0x122   : > { %s7622_s3 = scalar_select %p7283_p6, 1, 0 }
 0x123   : > { %s7623_s26 = scalar_select %p7292_p13, 1, 0 }
 0x124   : > { %p7296_p0 = por %p322_p11, %p56_p4  ;;  %s4995_s17 = sshll.u32 %s7290_s0, 2 }
 0x125   : > { %s4996_s1 = sshll.u32 %s6925_s24, 6  ;;  %s7625_s19 = sld [smem:[#allocation33_spill]] }
 0x126   : > { %s7624_s29 = scalar_select %p7296_p0, 1, 0 }
 0x127   : > { %s468_s12 = scalar_lea.vmem [#allocation2], %s4995_s17  ;;  %p7311_p2 = pnand %p5707_p12, %p7277_p1 }
 0x128   : > { %s475_s15 = sshll.u32 %s468_s12, 4  ;;  %s465_s2 = scalar_lea.sflag [#allocation3], %s7290_s0  ;;  %s7307_s15 = int_to_ptr.vmem [resolvable:$true] %s475_s15 }
 0x129   : > { %p6773_p8 = pneg %p7311_p2 }
 0x12b   : > { %s7305_s30 = scalar_lea.hbm %s7625_s19, %s4996_s1  ;;  %s6776_s16 = scalar_lea.hbm %s7625_s19, 128 }
 0x12c   : > { %s6771_s1 = scalar_lea.hbm %s7305_s30, 64  ;;  %p6777_p4 = scmp.lt.u32.totalorder %s7305_s30, %s7625_s19 }
 0x12d   : > { %p6772_p5 = scmp.ne.s32.totalorder %s7305_s30, %s6771_s1  ;;  %p6778_p1 = scmp.lt.u32.totalorder %s6776_s16, %s6771_s1 }
 0x12e   : > { %p6780_p10 = scmp.lt.u32.totalorder %s6771_s1, %s7305_s30 }
 0x12f   : > { %p6774_p7 = pnand %p6773_p8, %p6772_p5  ;;  %p6779_p3 = por %p6778_p1, %p6777_p4 }
 0x131   : > { %p6775_p9 = pneg %p6774_p7  ;;  %p6781_p11 = por %p6780_p10, %p6779_p3 }
 0x133   : > { %p6782_p12 = pnand %p6781_p11, %p6775_p9 }
 0x135   : > { %6785 = shalt.err (!%p6782_p12)
}
 0x136   : > { %s6786_s20 = scalar_lea.vmem %s7307_s15, 64  ;;  %s6941_s17 = smov [#allocation2]  }
 0x137   : > { %p6787_p5 = scmp.ne.s32.totalorder %s7307_s15, %s6786_s20  ;;  %s6791_s28 = sshll.u32 %s6941_s17, 4  ;;  %s6792_s28 = int_to_ptr.vmem [resolvable:$false] %s6791_s28 }
 0x138   : > { %s6793_s4 = scalar_lea.vmem %s6792_s28, 128  ;;  %p6794_p13 = scmp.lt.s32.totalorder %s7307_s15, %s6792_s28 }
 0x139   : > { %p6789_p7 = pnand %p6787_p5, %p6773_p8  ;;  %p6795_p4 = scmp.lt.s32.totalorder %s6793_s4, %s6786_s20 }
 0x13b   : > { %p6790_p0 = pneg %p6789_p7  ;;  %p6796_p1 = por %p6795_p4, %p6794_p13 }
 0x13d   : > { %p6797_p3 = pnand %p6796_p1, %p6790_p0 }
 0x13f   : > { %6800 = shalt.err (!%p6797_p3)
}
 0x140   : > { %5689 = dma.hbm_to_vmem [thread:$0]  (!%p7311_p2), %s7305_s30, 64, %s7307_s15, %s465_s2  }
 0x141   : > { %s5512_s1 = sshll.u32 %s6925_s24, 7  ;;  %s7627_s17 = sld [smem:[#allocation34_spill]] }
 0x142   : > { %s7628_s28 = sshll.u32 %s7290_s0, 3  ;;  %s7629_s5 = sand.u32 1, %s6925_s24  }
 0x143   : > { %s486_s20 = scalar_lea.vmem [#allocation5], %s7628_s28  ;;  %s483_s6 = scalar_lea.sflag [#allocation6], %s7629_s5 }
 0x144   : > { %s494_s4 = sshll.u32 %s486_s20, 4  ;;  %s495_s4 = int_to_ptr.vmem [resolvable:$true] %s494_s4 }
 0x147   : > { %s7347_s14 = scalar_lea.hbm %s7627_s17, %s5512_s1  ;;  %s6806_s2 = scalar_lea.hbm %s7627_s17, 256 }
 0x148   : > { %s6801_s7 = scalar_lea.hbm %s7347_s14, 128  ;;  %p6807_p10 = scmp.lt.u32.totalorder %s7347_s14, %s7627_s17 }
 0x149   : > { %p6802_p13 = scmp.ne.s32.totalorder %s7347_s14, %s6801_s7  ;;  %p6808_p11 = scmp.lt.u32.totalorder %s6806_s2, %s6801_s7 }
 0x14a   : > { %p6810_p5 = scmp.lt.u32.totalorder %s6801_s7, %s7347_s14 }
 0x14b   : > { %p6804_p0 = pnand %p6802_p13, %p6773_p8  ;;  %p6809_p12 = por %p6808_p11, %p6807_p10 }
 0x14d   : > { %p6805_p9 = pneg %p6804_p0  ;;  %p6811_p7 = por %p6810_p5, %p6809_p12 }
 0x14f   : > { %p6812_p4 = pnand %p6811_p7, %p6805_p9 }
 0x151   : > { %6815 = shalt.err (!%p6812_p4)
}
 0x152   : > { %s6816_s5 = scalar_lea.vmem %s495_s4, 128  ;;  %s6942_s16 = smov [#allocation5]  }
 0x153   : > { %p6817_p1 = scmp.ne.s32.totalorder %s495_s4, %s6816_s5  ;;  %s6821_s12 = sshll.u32 %s6942_s16, 4  ;;  %s6822_s12 = int_to_ptr.vmem [resolvable:$false] %s6821_s12 }
 0x154   : > { %s6823_s28 = scalar_lea.vmem %s6822_s12, 256  ;;  %p6824_p0 = scmp.lt.s32.totalorder %s495_s4, %s6822_s12 }
 0x155   : > { %p6819_p3 = pnand %p6817_p1, %p6773_p8  ;;  %p6825_p6 = scmp.lt.s32.totalorder %s6823_s28, %s6816_s5 }
 0x157   : > { %p6820_p13 = pneg %p6819_p3  ;;  %p6826_p10 = por %p6825_p6, %p6824_p0 }
 0x159   : > { %p6827_p11 = pnand %p6826_p10, %p6820_p13 }
 0x15b   : > { %6830 = shalt.err (!%p6827_p11)
}
 0x15c   : > { %5692 = dma.hbm_to_vmem [thread:$0]  (!%p7311_p2), %s7347_s14, 128, %s495_s4, %s483_s6  }
 0x15d   : > { %s7630_s7 = sld [smem:[#allocation32_spill]] }
 0x163   : > { %p7631_p9 = scmp.ne.s32.totalorder %s7630_s7, 0 }
 0x164   : > { %s7375_s20 = sand.u32 (!%p7631_p9), 1, %s6917_s22   ;;  %p7632_p8 = scmp.ne.s32.totalorder (!%p7631_p9), %s7622_s3, 0 }
 0x165   : > { %503 = sbr.rel (%p7631_p9) target bundleno = 2154 (0x86a), region = 68  ;;  %s5001_s30 = sshll.u32 (!%p7631_p9), %s7375_s20, 2 }
 0x166   : > { %s506_s15 = scalar_lea.sflag (!%p7631_p9), [#allocation3], %s7375_s20  ;;  %s509_s2 = scalar_lea.vmem (!%p7631_p9), [#allocation2], %s5001_s30 }
 0x16c   : > { %6876 = dma.done.wait (%p7632_p8), %s506_s15, 64  }
 0x16d   : > { %6878 = vsyncadd (%p7632_p8), %s506_s15, 4294967232  ;;  %s514_s6 = sand.u32 1, %s7033_s27   ;;  %s5002_s25 = sshll.u32 %s7375_s20, 3 }
 0x16e   : > { %s515_s14 = scalar_lea.sflag [#allocation6], %s514_s6  ;;  %s7385_s4 = scalar_lea.vmem [#allocation5], %s5002_s25 }
 0x16f   : > { %6880 = dma.done.wait (%p7632_p8), %s515_s14, 128  }
 0x170   : > { %6882 = vsyncadd (%p7632_p8), %s515_s14, 4294967168  ;;  %p7633_p6 = scmp.eq.s32.totalorder %s7033_s27, 0 }
 0x172   : > { %6884 = dma.done.wait (%p7633_p6), [#allocation6], 128   ;;  %p7634_p2 = pmov %p7633_p6 }
 0x174   : > { %6886 = vsyncadd (%p7634_p2), [#allocation6], 4294967168  ;;  %p7635_p12 = pmov %p7634_p2 }
 0x175   : > { %p7636_p5 = pmov %p7634_p2 }
 0x176   : > { %6888 = dma.done.wait (%p7635_p12), [#allocation9], 32768  }
 0x177   : > { %6890 = vsyncadd (%p7636_p5), [#allocation9], 4294934528  ;;  %p7637_p7 = pmov %p7634_p2 }
 0x178   : > { %p7638_p4 = pmov %p7634_p2 }
 0x179   : > { %6892 = dma.done.wait (%p7637_p7), [#allocation12], 12320  }
 0x17a   : > { %6894 = vsyncadd (%p7638_p4), [#allocation12], 4294954976  ;;  %p7639_p1 = pmov %p7634_p2 }
 0x17c   : > { %6896 = dma.done.wait (%p7639_p1), [#allocation15], 12320   ;;  %p7640_p3 = pmov %p7639_p1 }
 0x17d   : > { %p7641_p13 = pmov %p7639_p1 }
 0x17e   : > { %6898 = vsyncadd (%p7640_p3), [#allocation15], 4294954976 }
 0x17f   : > { %6900 = dma.done.wait (%p7641_p13), [#allocation18], 12288   ;;  %p7642_p0 = pmov %p7639_p1 }
 0x181   : > { %6902 = vsyncadd (%p7642_p0), [#allocation18], 4294955008  ;;  %p7643_p10 = pmov %p7642_p0 }
 0x182   : > { %p7644_p11 = pmov %p7642_p0 }
 0x183   : > { %6904 = dma.done.wait (%p7643_p10), [#allocation21], 32  }
 0x184   : > { %6906 = vsyncadd (%p7644_p11), [#allocation21], 4294967264  ;;  %v6943_v0 = vmov 0.0   ;;  %vm6944_vm0 = vmmov 0   ;;  %vm611_vm1 = vcmask 1043456   ;;  %vm607_vm2 = vcmask 31744  }
 0x185   : > { %5516 = vmatprep.subr.mxu0 %v6943_v0  ;;  %5518 = vmatprep.mubr.msk.f32.mxu0 %vm6944_vm0, %v6943_v0  ;;  %v605_v1 = vld [vmem:[%s509_s2] sm:$0xf]  ;;  %v606_v2 = vld [vmem:[#allocation7] sm:$0xff]  ;;  %v686_v3 = vld [vmem:[#allocation8 + $0x8] sm:$0xff]  ;;  %vm3025_vm4 = vcmask 64512   ;;  %s5013_s3 = sshll.u32 %s7375_s20, 4 }
 0x186   : > { %5517 = vmatpush3.msk.msra.mxu0 %vm611_vm1, %v605_v1  ;;  %v690_v4 = vld [vmem:[#allocation8 + $0x28] sm:$0xff]  ;;  %v685_v5 = vld [vmem:[#allocation8] sm:$0xff]  ;;  %v688_v51 = vld [vmem:[#allocation8 + $0x18] sm:$0xff]  ;;  %s5513_s0 = sshll.u32 %s7033_s27, 8  ;;  %s603_s1 = scalar_lea.vmem [#allocation22], %s5013_s3 }
 0x187   : > { %v689_v6 = vld [vmem:[#allocation8 + $0x20] sm:$0xff]  ;;  %5519 = vmatmul.mubr.msk.f32.vlgmr.msra.gmra.mrb[0].mxu0 %vm607_vm2, %v606_v2  ;;  %v5521_v7 = vpack.c.bf16 %v690_v4, %v686_v3  ;;  %v694_v9 = vld [vmem:[#allocation8 + $0x48] sm:$0xff]  ;;  %v692_v52 = vld [vmem:[#allocation8 + $0x38] sm:$0xff]  ;;  %s4794_s5 = sshll.u32 %s603_s1, 4  ;;  %s7645_s28 = sld [smem:[#allocation41_spill]]  ;;  %s7538_s5 = int_to_ptr.vmem [resolvable:$true] %s4794_s5 }
 0x188   : > { %v5523_v8 = vpack.c.bf16 %v689_v6, %v685_v5  ;;  %v698_v10 = vld [vmem:[#allocation8 + $0x68] sm:$0xff]  ;;  %v693_v11 = vld [vmem:[#allocation8 + $0x40] sm:$0xff]  ;;  %813 = vmatprep.mubr.f32.mxu0 %v6943_v0  ;;  %v5553_v53 = vpack.c.bf16 %v692_v52, %v688_v51  ;;  %v5774_v56 = vld [vmem:[#allocation11 + $0x14] ss:$8 sps:$4 sm:$0xff]   ;;  %s4780_s30 = scalar_lea.sflag [#allocation4], %s7375_s20  ;;  %s6831_s27 = scalar_lea.vmem %s7538_s5, 256 }
 0x189   : > { %v5525_v12 = vpack.c.bf16 %v698_v10, %v694_v9  ;;  %v697_v13 = vld [vmem:[#allocation8 + $0x60] sm:$0xff]  ;;  %v702_v14 = vld [vmem:[#allocation8 + $0x88] sm:$0xff]  ;;  %5522 = vmatprep.subr.bf16.mxu0 %v5521_v7  ;;  %v5779_v57 = vld [vmem:[#allocation11 + $0x10] ss:$8 sps:$4 sm:$0xff]   ;;  %p6832_p9 = scmp.ne.s32.totalorder %s7538_s5, %s6831_s27  ;;  %p7646_p8 = scmp.ne.s32.totalorder %s7623_s26, 0 }
 0x18a   : > { %v706_v15 = vld [vmem:[#allocation8 + $0xa8] sm:$0xff]  ;;  %5524 = vmatpush1.bf16.msra.mxu0 %v5523_v8  ;;  %v5527_v16 = vpack.c.bf16 %v697_v13, %v693_v11  ;;  %v701_v18 = vld [vmem:[#allocation8 + $0x80] sm:$0xff]  ;;  %v5786_v60 = vld [vmem:[#allocation11 + $0x34] ss:$8 sps:$4 sm:$0xff]   ;;  %s6946_s15 = smov [#allocation22]  }
 0x18b   : > { %5526 = vmatprep.subr.bf16.mxu0 %v5525_v12  ;;  %v5529_v17 = vpack.c.bf16 %v706_v15, %v702_v14  ;;  %v705_v19 = vld [vmem:[#allocation8 + $0xa0] sm:$0xff]  ;;  %v710_v20 = vld [vmem:[#allocation8 + $0xc8] sm:$0xff]  ;;  %v5791_v61 = vld [vmem:[#allocation11 + $0x30] ss:$8 sps:$4 sm:$0xff]   ;;  %p6833_p6 = pnand %p6832_p9, %p7646_p8  ;;  %s6835_s2 = sshll.u32 %s6946_s15, 4  ;;  %s6836_s2 = int_to_ptr.vmem [resolvable:$false] %s6835_s2 }
 0x18c   : > { %v714_v21 = vld [vmem:[#allocation8 + $0xe8] sm:$0xff]  ;;  %v5531_v22 = vpack.c.bf16 %v705_v19, %v701_v18  ;;  %v709_v24 = vld [vmem:[#allocation8 + $0xc0] sm:$0xff]  ;;  %v5798_v1 = vld [vmem:[#allocation11 + $0x54] ss:$8 sps:$4 sm:$0xff]   ;;  %s6837_s6 = scalar_lea.vmem %s6836_s2, 512  ;;  %p6838_p12 = scmp.lt.s32.totalorder %s7538_s5, %s6836_s2 }
 0x18d   : > { %v5533_v23 = vpack.c.bf16 %v714_v21, %v710_v20  ;;  %v713_v25 = vld [vmem:[#allocation8 + $0xe0] sm:$0xff]  ;;  %v718_v26 = vld [vmem:[#allocation8 + $0x108] sm:$0xff]  ;;  %v5803_v2 = vld [vmem:[#allocation11 + $0x50] ss:$8 sps:$4 sm:$0xff]   ;;  %s7536_s7 = scalar_lea.hbm %s7645_s28, %s5513_s0  ;;  %p6834_p2 = pneg %p6833_p6 }
 0x18e   : > { %5528 = vmatpush1.bf16.msra.mxu0 %v5527_v16  ;;  %v722_v27 = vld [vmem:[#allocation8 + $0x128] sm:$0xff]  ;;  %v717_v28 = vld [vmem:[#allocation8 + $0x100] sm:$0xff]  ;;  %v5535_v30 = vpack.c.bf16 %v713_v25, %v709_v24  ;;  %v5810_v5 = vld [vmem:[#allocation11 + $0x74] ss:$8 sps:$4 sm:$0xff]   ;;  %v6945_v25 = vmov 0   ;;  %p6839_p5 = scmp.lt.s32.totalorder %s6837_s6, %s6831_s27 }
 0x18f   : > { %5530 = vmatprep.subr.bf16.mxu0 %v5529_v17  ;;  %v721_v29 = vld [vmem:[#allocation8 + $0x120] sm:$0xff]  ;;  %v726_v31 = vld [vmem:[#allocation8 + $0x148] sm:$0xff]  ;;  %v5537_v33 = vpack.c.bf16 %v722_v27, %v718_v26  ;;  %v5815_v6 = vld [vmem:[#allocation11 + $0x70] ss:$8 sps:$4 sm:$0xff]  }
 0x190   : > { %v730_v32 = vld [vmem:[#allocation8 + $0x168] sm:$0xff]  ;;  %v725_v34 = vld [vmem:[#allocation8 + $0x140] sm:$0xff]  ;;  %v5539_v36 = vpack.c.bf16 %v721_v29, %v717_v28  ;;  %v5822_v9 = vld [vmem:[#allocation11 + $0x94] ss:$8 sps:$4 sm:$0xff]   ;;  %p6840_p7 = por %p6839_p5, %p6838_p12 }
 0x191   : > { %v729_v35 = vld [vmem:[#allocation8 + $0x160] sm:$0xff]  ;;  %v734_v37 = vld [vmem:[#allocation8 + $0x188] sm:$0xff]  ;;  %v5541_v39 = vpack.c.bf16 %v730_v32, %v726_v31  ;;  %v5827_v10 = vld [vmem:[#allocation11 + $0x90] ss:$8 sps:$4 sm:$0xff]  }
 0x192   : > { %5532 = vmatpush1.bf16.msra.mxu0 %v5531_v22  ;;  %v738_v38 = vld [vmem:[#allocation8 + $0x1a8] sm:$0xff]  ;;  %v733_v40 = vld [vmem:[#allocation8 + $0x180] sm:$0xff]  ;;  %v5543_v42 = vpack.c.bf16 %v729_v35, %v725_v34  ;;  %v5834_v13 = vld [vmem:[#allocation11 + $0xb4] ss:$8 sps:$4 sm:$0xff]   ;;  %p6841_p4 = pnand %p6840_p7, %p6834_p2 }
 0x193   : > { %5534 = vmatprep.subr.bf16.mxu0 %v5533_v23  ;;  %v737_v41 = vld [vmem:[#allocation8 + $0x1a0] sm:$0xff]  ;;  %v742_v43 = vld [vmem:[#allocation8 + $0x1c8] sm:$0xff]  ;;  %v5545_v45 = vpack.c.bf16 %v738_v38, %v734_v37  ;;  %v5839_v14 = vld [vmem:[#allocation11 + $0xb0] ss:$8 sps:$4 sm:$0xff]  }
 0x194   : > { %v746_v44 = vld [vmem:[#allocation8 + $0x1e8] sm:$0xff]  ;;  %v741_v46 = vld [vmem:[#allocation8 + $0x1c0] sm:$0xff]  ;;  %v5547_v48 = vpack.c.bf16 %v737_v41, %v733_v40  ;;  %v5846_v17 = vld [vmem:[#allocation11 + $0xd4] ss:$8 sps:$4 sm:$0xff]  }
 0x195   : > { %v745_v47 = vld [vmem:[#allocation8 + $0x1e0] sm:$0xff]  ;;  %v5549_v49 = vpack.c.bf16 %v746_v44, %v742_v43  ;;  %v5851_v18 = vld [vmem:[#allocation11 + $0xd0] ss:$8 sps:$4 sm:$0xff]   ;;  %v5858_v21 = vld [vmem:[#allocation11 + $0xf4] ss:$8 sps:$4 sm:$0xff]  }
 0x196   : > { %5536 = vmatpush1.bf16.msra.mxu0 %v5535_v30  ;;  %v5551_v50 = vpack.c.bf16 %v745_v47, %v741_v46  ;;  %v5768_v54 = vld [vmem:[#allocation11 + $0x4] ss:$8 sps:$4 sm:$0xff]   ;;  %v5773_v55 = vld [vmem:[#allocation11] ss:$8 sps:$4 sm:$0xff]   ;;  %v5863_v22 = vld [vmem:[#allocation11 + $0xf0] ss:$8 sps:$4 sm:$0xff]  }
 0x197   : > { %5538 = vmatprep.subr.bf16.mxu0 %v5537_v33  ;;  %1180 = vmatprep.subr.bf16.mxu1 %v5768_v54  ;;  %v5780_v58 = vld [vmem:[#allocation11 + $0x24] ss:$8 sps:$4 sm:$0xff]   ;;  %v5785_v59 = vld [vmem:[#allocation11 + $0x20] ss:$8 sps:$4 sm:$0xff]   ;;  %v5872_v30 = vld [vmem:[#allocation10 + $0x14] ss:$8 sps:$4 sm:$0xff]  }
 0x198   : > { %1181 = vmatpush1.bf16.msra.mxu1 %v5773_v55  ;;  %v5792_v62 = vld [vmem:[#allocation11 + $0x44] ss:$8 sps:$4 sm:$0xff]   ;;  %v5797_v63 = vld [vmem:[#allocation11 + $0x40] ss:$8 sps:$4 sm:$0xff]   ;;  %v5870_v31 = vld [vmem:[#allocation10 + $0x10] ss:$8 sps:$4 sm:$0xff]  }
 0x199   : > { %1182 = vmatprep.subr.bf16.mxu1 %v5774_v56  ;;  %v5804_v3 = vld [vmem:[#allocation11 + $0x64] ss:$8 sps:$4 sm:$0xff]   ;;  %v5809_v4 = vld [vmem:[#allocation11 + $0x60] ss:$8 sps:$4 sm:$0xff]   ;;  %v5884_v34 = vld [vmem:[#allocation10 + $0x34] ss:$8 sps:$4 sm:$0xff]  }
 0x19a   : > { %5540 = vmatpush1.bf16.msra.mxu0 %v5539_v36  ;;  %v5816_v7 = vld [vmem:[#allocation11 + $0x84] ss:$8 sps:$4 sm:$0xff]   ;;  %v5821_v8 = vld [vmem:[#allocation11 + $0x80] ss:$8 sps:$4 sm:$0xff]   ;;  %v5882_v35 = vld [vmem:[#allocation10 + $0x30] ss:$8 sps:$4 sm:$0xff]  }
 0x19b   : > { %5542 = vmatprep.subr.bf16.mxu0 %v5541_v39  ;;  %v5828_v11 = vld [vmem:[#allocation11 + $0xa4] ss:$8 sps:$4 sm:$0xff]   ;;  %v5833_v12 = vld [vmem:[#allocation11 + $0xa0] ss:$8 sps:$4 sm:$0xff]   ;;  %v5896_v38 = vld [vmem:[#allocation10 + $0x54] ss:$8 sps:$4 sm:$0xff]  }
 0x19c   : > { %1183 = vmatpush1.bf16.msra.mxu1 %v5779_v57  ;;  %v5840_v15 = vld [vmem:[#allocation11 + $0xc4] ss:$8 sps:$4 sm:$0xff]   ;;  %v5845_v16 = vld [vmem:[#allocation11 + $0xc0] ss:$8 sps:$4 sm:$0xff]   ;;  %v5894_v39 = vld [vmem:[#allocation10 + $0x50] ss:$8 sps:$4 sm:$0xff]  }
 0x19d   : > { %1184 = vmatprep.subr.bf16.mxu1 %v5780_v58  ;;  %v5852_v19 = vld [vmem:[#allocation11 + $0xe4] ss:$8 sps:$4 sm:$0xff]   ;;  %v5857_v20 = vld [vmem:[#allocation11 + $0xe0] ss:$8 sps:$4 sm:$0xff]   ;;  %v691_v43 = vld [vmem:[#allocation8 + $0x30] sm:$0xff] }
 0x19e   : > { %5544 = vmatpush1.bf16.msra.mxu0 %v5543_v42  ;;  %v891_v23 = vld [vmem:[%s7385_s4] sm:$0xff]  ;;  %v696_v44 = vld [vmem:[#allocation8 + $0x58] sm:$0xff] }
 0x19f   : > { %5546 = vmatprep.subr.bf16.mxu0 %v5545_v45  ;;  %v5866_v24 = vld [vmem:[#allocation10 + $0x4] ss:$8 sps:$4 sm:$0xff]   ;;  %v904_v26 = vmax.bf16 %v6945_v25, %v891_v23  ;;  %v5864_v27 = vld [vmem:[#allocation10] ss:$8 sps:$4 sm:$0xff]   ;;  %v687_v42 = vld [vmem:[#allocation8 + $0x10] sm:$0xff] }
 0x1a0   : > { %1185 = vmatpush1.bf16.msra.mxu1 %v5785_v59  ;;  %v5878_v32 = vld [vmem:[#allocation10 + $0x24] ss:$8 sps:$4 sm:$0xff]   ;;  %v5876_v33 = vld [vmem:[#allocation10 + $0x20] ss:$8 sps:$4 sm:$0xff]   ;;  %v700_v45 = vld [vmem:[#allocation8 + $0x78] sm:$0xff] }
 0x1a1   : > { %1186 = vmatprep.subr.bf16.mxu1 %v5786_v60  ;;  %v7419_v28 = vcombine.high %v904_v26, %v904_v26  ;;  %v7421_v29 = vcombine.low %v904_v26, %v904_v26  ;;  %v5890_v36 = vld [vmem:[#allocation10 + $0x44] ss:$8 sps:$4 sm:$0xff]   ;;  %v5888_v37 = vld [vmem:[#allocation10 + $0x40] ss:$8 sps:$4 sm:$0xff]   ;;  %v5908_v46 = vld [vmem:[#allocation10 + $0x74] ss:$8 sps:$4 sm:$0xff]  }
 0x1a2   : > { %5548 = vmatpush1.bf16.msra.mxu0 %v5547_v48  ;;  %v5902_v40 = vld [vmem:[#allocation10 + $0x64] ss:$8 sps:$4 sm:$0xff]   ;;  %v5900_v41 = vld [vmem:[#allocation10 + $0x60] ss:$8 sps:$4 sm:$0xff]   ;;  %v5906_v47 = vld [vmem:[#allocation10 + $0x70] ss:$8 sps:$4 sm:$0xff]  }
 0x1a3   : > { %5550 = vmatprep.subr.bf16.mxu0 %v5549_v49  ;;  %1212 = vmatprep.mubr.bf16.mxu1 %v7419_v28  ;;  %v695_v48 = vld [vmem:[#allocation8 + $0x50] sm:$0xff]  ;;  %v5555_v49 = vpack.c.bf16 %v691_v43, %v687_v42  ;;  %v704_v51 = vld [vmem:[#allocation8 + $0x98] sm:$0xff]  ;;  %v5912_v54 = vld [vmem:[#allocation10 + $0x80] ss:$8 sps:$4 sm:$0xff]  }
 0x1a4   : > { %1187 = vmatpush1.bf16.msra.mxu1 %v5791_v61  ;;  %v708_v52 = vld [vmem:[#allocation8 + $0xb8] sm:$0xff]  ;;  %v5914_v55 = vld [vmem:[#allocation10 + $0x84] ss:$8 sps:$4 sm:$0xff]   ;;  %v703_v59 = vld [vmem:[#allocation8 + $0x90] sm:$0xff] }
 0x1a5   : > { %1188 = vmatprep.subr.bf16.mxu1 %v5792_v62  ;;  %v5920_v60 = vld [vmem:[#allocation10 + $0x94] ss:$8 sps:$4 sm:$0xff]   ;;  %v5561_v61 = vpack.c.bf16 %v708_v52, %v704_v51  ;;  %v5936_v26 = vld [vmem:[#allocation10 + $0xc0] ss:$8 sps:$4 sm:$0xff]   ;;  %v5788_v51 = vld [vmem:[#allocation11 + $0x130] ss:$8 sps:$4 sm:$0xff]  }
 0x1a6   : > { %5552 = vmatpush1.bf16.msra.mxu0 %v5551_v50  ;;  %v699_v50 = vld [vmem:[#allocation8 + $0x70] sm:$0xff]  ;;  %v740_v25 = vld [vmem:[#allocation8 + $0x1b8] sm:$0xff]  ;;  %v5948_v42 = vld [vmem:[#allocation10 + $0xe0] ss:$8 sps:$4 sm:$0xff]  }
 0x1a7   : > { %5554 = vmatprep.subr.bf16.mxu0 %v5553_v53  ;;  %v5557_v53 = vpack.c.bf16 %v700_v45, %v696_v44  ;;  %v5559_v58 = vpack.c.bf16 %v699_v50, %v695_v48  ;;  %v707_v62 = vld [vmem:[#allocation8 + $0xb0] sm:$0xff]  ;;  %v5772_v44 = vld [vmem:[#allocation11 + $0x104] ss:$8 sps:$4 sm:$0xff]   ;;  %v5770_v45 = vld [vmem:[#allocation11 + $0x100] ss:$8 sps:$4 sm:$0xff]  }
 0x1a8   : > { %1189 = vmatpush1.bf16.msra.mxu1 %v5797_v63  ;;  %v712_v63 = vld [vmem:[#allocation8 + $0xd8] sm:$0xff]  ;;  %v731_v23 = vld [vmem:[#allocation8 + $0x170] sm:$0xff]  ;;  %v5784_v48 = vld [vmem:[#allocation11 + $0x124] ss:$8 sps:$4 sm:$0xff]  }
 0x1a9   : > { %1190 = vmatprep.subr.bf16.mxu1 %v5798_v1  ;;  %v716_v1 = vld [vmem:[#allocation8 + $0xf8] sm:$0xff]  ;;  %v5796_v52 = vld [vmem:[#allocation11 + $0x144] ss:$8 sps:$4 sm:$0xff]  }
 0x1aa   : > { %v5790_v50 = vld [vmem:[#allocation11 + $0x134] ss:$8 sps:$4 sm:$0xff]  }
 0x1ac   : > { %1191 = vmatpush1.bf16.msra.mxu1 %v5803_v2  ;;  %v5918_v2 = vld [vmem:[#allocation10 + $0x90] ss:$8 sps:$4 sm:$0xff]  }
 0x1ad   : > { %1192 = vmatprep.subr.bf16.mxu1 %v5804_v3  ;;  %v5563_v3 = vpack.c.bf16 %v707_v62, %v703_v59  ;;  %v5812_v59 = vld [vmem:[#allocation11 + $0x170] ss:$8 sps:$4 sm:$0xff]   ;;  %v5826_v62 = vld [vmem:[#allocation11 + $0x194] ss:$8 sps:$4 sm:$0xff]  }
 0x1b0   : > { %1193 = vmatpush1.bf16.msra.mxu1 %v5809_v4  ;;  %v5926_v4 = vld [vmem:[#allocation10 + $0xa4] ss:$8 sps:$4 sm:$0xff]  }
 0x1b1   : > { %1194 = vmatprep.subr.bf16.mxu1 %v5810_v5  ;;  %v5565_v5 = vpack.c.bf16 %v716_v1, %v712_v63  ;;  %v5824_v63 = vld [vmem:[#allocation11 + $0x190] ss:$8 sps:$4 sm:$0xff]   ;;  %v5832_v1 = vld [vmem:[#allocation11 + $0x1a4] ss:$8 sps:$4 sm:$0xff]  }
 0x1b4   : > { %1195 = vmatpush1.bf16.msra.mxu1 %v5815_v6  ;;  %v711_v6 = vld [vmem:[#allocation8 + $0xd0] sm:$0xff] }
 0x1b5   : > { %1196 = vmatprep.subr.bf16.mxu1 %v5816_v7  ;;  %v715_v7 = vld [vmem:[#allocation8 + $0xf0] sm:$0xff] }
 0x1b8   : > { %1197 = vmatpush1.bf16.msra.mxu1 %v5821_v8  ;;  %v720_v8 = vld [vmem:[#allocation8 + $0x118] sm:$0xff] }
 0x1b9   : > { %1198 = vmatprep.subr.bf16.mxu1 %v5822_v9  ;;  %v724_v9 = vld [vmem:[#allocation8 + $0x138] sm:$0xff] }
 0x1bc   : > { %1199 = vmatpush1.bf16.msra.mxu1 %v5827_v10  ;;  %v5924_v10 = vld [vmem:[#allocation10 + $0xa0] ss:$8 sps:$4 sm:$0xff]  }
 0x1bd   : > { %1200 = vmatprep.subr.bf16.mxu1 %v5828_v11  ;;  %v5567_v11 = vpack.c.bf16 %v715_v7, %v711_v6  ;;  %v5842_v6 = vld [vmem:[#allocation11 + $0x1c0] ss:$8 sps:$4 sm:$0xff]   ;;  %v5850_v7 = vld [vmem:[#allocation11 + $0x1d4] ss:$8 sps:$4 sm:$0xff]  }
 0x1c0   : > { %1201 = vmatpush1.bf16.msra.mxu1 %v5833_v12  ;;  %v5932_v12 = vld [vmem:[#allocation10 + $0xb4] ss:$8 sps:$4 sm:$0xff]  }
 0x1c1   : > { %1202 = vmatprep.subr.bf16.mxu1 %v5834_v13  ;;  %v5569_v13 = vpack.c.bf16 %v724_v9, %v720_v8  ;;  %v5848_v8 = vld [vmem:[#allocation11 + $0x1d0] ss:$8 sps:$4 sm:$0xff]   ;;  %v5856_v9 = vld [vmem:[#allocation11 + $0x1e4] ss:$8 sps:$4 sm:$0xff]  }
 0x1c4   : > { %1203 = vmatpush1.bf16.msra.mxu1 %v5839_v14  ;;  %v719_v14 = vld [vmem:[#allocation8 + $0x110] sm:$0xff] }
 0x1c5   : > { %1204 = vmatprep.subr.bf16.mxu1 %v5840_v15  ;;  %v723_v15 = vld [vmem:[#allocation8 + $0x130] sm:$0xff] }
 0x1c8   : > { %1205 = vmatpush1.bf16.msra.mxu1 %v5845_v16  ;;  %v728_v16 = vld [vmem:[#allocation8 + $0x158] sm:$0xff] }
 0x1c9   : > { %1206 = vmatprep.subr.bf16.mxu1 %v5846_v17  ;;  %v732_v17 = vld [vmem:[#allocation8 + $0x178] sm:$0xff] }
 0x1cc   : > { %1207 = vmatpush1.bf16.msra.mxu1 %v5851_v18  ;;  %v5930_v18 = vld [vmem:[#allocation10 + $0xb0] ss:$8 sps:$4 sm:$0xff]  }
 0x1cd   : > { %1208 = vmatprep.subr.bf16.mxu1 %v5852_v19  ;;  %v5571_v19 = vpack.c.bf16 %v723_v15, %v719_v14  ;;  %v5962_v14 = vld [vmem:[#allocation10 + $0x104] ss:$8 sps:$4 sm:$0xff]   ;;  %v5860_v15 = vld [vmem:[#allocation11 + $0x1f0] ss:$8 sps:$4 sm:$0xff]  }
 0x1d0   : > { %1209 = vmatpush1.bf16.msra.mxu1 %v5857_v20  ;;  %v5938_v20 = vld [vmem:[#allocation10 + $0xc4] ss:$8 sps:$4 sm:$0xff]  }
 0x1d1   : > { %1210 = vmatprep.subr.bf16.mxu1 %v5858_v21  ;;  %v5573_v21 = vpack.c.bf16 %v732_v17, %v728_v16  ;;  %v5869_v16 = vld [vmem:[#allocation10 + $0x204] ss:$8 sps:$4 sm:$0xff]   ;;  %v5867_v17 = vld [vmem:[#allocation10 + $0x200] ss:$8 sps:$4 sm:$0xff]  }
 0x1d4   : > { %1211 = vmatpush1.bf16.msra.mxu1 %v5863_v22  ;;  %v727_v22 = vld [vmem:[#allocation8 + $0x150] sm:$0xff] }
 0x1d5   : > { %1541 = vmatprep.subr.bf16.mxu1 %v5866_v24  ;;  %v736_v24 = vld [vmem:[#allocation8 + $0x198] sm:$0xff] }
 0x1d7   : > { %1213 = vmatmul.mubr.bf16.vlgmr.msra.gmra.mrb[0].mxu1 %v7421_v29 }
 0x1d8   : > { %1542 = vmatpush1.bf16.msra.mxu1 %v5864_v27  ;;  %v5575_v27 = vpack.c.bf16 %v731_v23, %v727_v22  ;;  %v5887_v22 = vld [vmem:[#allocation10 + $0x234] ss:$8 sps:$4 sm:$0xff]   ;;  %v5885_v23 = vld [vmem:[#allocation10 + $0x230] ss:$8 sps:$4 sm:$0xff]  }
 0x1d9   : > { %1543 = vmatprep.subr.bf16.mxu1 %v5872_v30  ;;  %v5944_v30 = vld [vmem:[#allocation10 + $0xd4] ss:$8 sps:$4 sm:$0xff]  }
 0x1dc   : > { %1544 = vmatpush1.bf16.msra.mxu1 %v5870_v31  ;;  %v5577_v31 = vpack.c.bf16 %v740_v25, %v736_v24  ;;  %v5893_v24 = vld [vmem:[#allocation10 + $0x244] ss:$8 sps:$4 sm:$0xff]   ;;  %v5891_v25 = vld [vmem:[#allocation10 + $0x240] ss:$8 sps:$4 sm:$0xff]  }
 0x1dd   : > { %1545 = vmatprep.subr.bf16.mxu1 %v5878_v32  ;;  %v735_v32 = vld [vmem:[#allocation8 + $0x190] sm:$0xff] }
 0x1e0   : > { %1546 = vmatpush1.bf16.msra.mxu1 %v5876_v33  ;;  %v739_v33 = vld [vmem:[#allocation8 + $0x1b0] sm:$0xff] }
 0x1e1   : > { %1547 = vmatprep.subr.bf16.mxu1 %v5884_v34  ;;  %v744_v34 = vld [vmem:[#allocation8 + $0x1d8] sm:$0xff] }
 0x1e4   : > { %1548 = vmatpush1.bf16.msra.mxu1 %v5882_v35  ;;  %v748_v35 = vld [vmem:[#allocation8 + $0x1f8] sm:$0xff] }
 0x1e5   : > { %1549 = vmatprep.subr.bf16.mxu1 %v5890_v36  ;;  %v5942_v36 = vld [vmem:[#allocation10 + $0xd0] ss:$8 sps:$4 sm:$0xff]  }
 0x1e8   : > { %1550 = vmatpush1.bf16.msra.mxu1 %v5888_v37  ;;  %v5579_v37 = vpack.c.bf16 %v739_v33, %v735_v32  ;;  %v5911_v32 = vld [vmem:[#allocation10 + $0x274] ss:$8 sps:$4 sm:$0xff]   ;;  %v5909_v33 = vld [vmem:[#allocation10 + $0x270] ss:$8 sps:$4 sm:$0xff]  }
 0x1e9   : > { %1551 = vmatprep.subr.bf16.mxu1 %v5896_v38  ;;  %v5950_v38 = vld [vmem:[#allocation10 + $0xe4] ss:$8 sps:$4 sm:$0xff]  }
 0x1ec   : > { %1552 = vmatpush1.bf16.msra.mxu1 %v5894_v39  ;;  %v5581_v39 = vpack.c.bf16 %v748_v35, %v744_v34  ;;  %v5917_v34 = vld [vmem:[#allocation10 + $0x284] ss:$8 sps:$4 sm:$0xff]   ;;  %v5915_v35 = vld [vmem:[#allocation10 + $0x280] ss:$8 sps:$4 sm:$0xff]  }
 0x1ed   : > { %1553 = vmatprep.subr.bf16.mxu1 %v5902_v40  ;;  %v743_v40 = vld [vmem:[#allocation8 + $0x1d0] sm:$0xff] }
 0x1f0   : > { %1554 = vmatpush1.bf16.msra.mxu1 %v5900_v41  ;;  %v747_v41 = vld [vmem:[#allocation8 + $0x1f0] sm:$0xff] }
 0x1f1   : > { %1555 = vmatprep.subr.bf16.mxu1 %v5908_v46  ;;  %v5583_v43 = vpack.c.bf16 %v747_v41, %v743_v40  ;;  %v5778_v46 = vld [vmem:[#allocation11 + $0x114] ss:$8 sps:$4 sm:$0xff]   ;;  %v5933_v41 = vld [vmem:[#allocation10 + $0x2b0] ss:$8 sps:$4 sm:$0xff]  }
 0x1f2   : > { %v5935_v40 = vld [vmem:[#allocation10 + $0x2b4] ss:$8 sps:$4 sm:$0xff]  }
 0x1f4   : > { %1556 = vmatpush1.bf16.msra.mxu1 %v5906_v47  ;;  %v5776_v47 = vld [vmem:[#allocation11 + $0x110] ss:$8 sps:$4 sm:$0xff]  }
 0x1f5   : > { %1557 = vmatprep.subr.bf16.mxu1 %v5914_v55  ;;  %v5800_v55 = vld [vmem:[#allocation11 + $0x150] ss:$8 sps:$4 sm:$0xff]  }
 0x1f8   : > { %1558 = vmatpush1.bf16.msra.mxu1 %v5912_v54  ;;  %v5802_v54 = vld [vmem:[#allocation11 + $0x154] ss:$8 sps:$4 sm:$0xff]  }
 0x1f9   : > { %1559 = vmatprep.subr.bf16.mxu1 %v5920_v60  ;;  %v5820_v60 = vld [vmem:[#allocation11 + $0x184] ss:$8 sps:$4 sm:$0xff]  }
 0x1fc   : > { %1560 = vmatpush1.bf16.msra.mxu1 %v5918_v2  ;;  %v5830_v2 = vld [vmem:[#allocation11 + $0x1a0] ss:$8 sps:$4 sm:$0xff]  }
 0x1fd   : > { %1561 = vmatprep.subr.bf16.mxu1 %v5926_v4  ;;  %v5836_v4 = vld [vmem:[#allocation11 + $0x1b0] ss:$8 sps:$4 sm:$0xff]  }
 0x200   : > { %1562 = vmatpush1.bf16.msra.mxu1 %v5924_v10  ;;  %v5956_v10 = vld [vmem:[#allocation10 + $0xf4] ss:$8 sps:$4 sm:$0xff]  }
 0x201   : > { %1563 = vmatprep.subr.bf16.mxu1 %v5932_v12  ;;  %v5954_v12 = vld [vmem:[#allocation10 + $0xf0] ss:$8 sps:$4 sm:$0xff]  }
 0x204   : > { %1564 = vmatpush1.bf16.msra.mxu1 %v5930_v18  ;;  %v5875_v18 = vld [vmem:[#allocation10 + $0x214] ss:$8 sps:$4 sm:$0xff]  }
 0x205   : > { %1565 = vmatprep.subr.bf16.mxu1 %v5938_v20  ;;  %v5881_v20 = vld [vmem:[#allocation10 + $0x224] ss:$8 sps:$4 sm:$0xff]  }
 0x208   : > { %1566 = vmatpush1.bf16.msra.mxu1 %v5936_v26  ;;  %v5899_v26 = vld [vmem:[#allocation10 + $0x254] ss:$8 sps:$4 sm:$0xff]  }
 0x209   : > { %1567 = vmatprep.subr.bf16.mxu1 %v5944_v30  ;;  %v5905_v30 = vld [vmem:[#allocation10 + $0x264] ss:$8 sps:$4 sm:$0xff]  }
 0x20c   : > { %1568 = vmatpush1.bf16.msra.mxu1 %v5942_v36  ;;  %v5923_v36 = vld [vmem:[#allocation10 + $0x294] ss:$8 sps:$4 sm:$0xff]  }
 0x20d   : > { %1569 = vmatprep.subr.bf16.mxu1 %v5950_v38  ;;  %v5929_v38 = vld [vmem:[#allocation10 + $0x2a4] ss:$8 sps:$4 sm:$0xff]  }
 0x210   : > { %1570 = vmatpush1.bf16.msra.mxu1 %v5948_v42  ;;  %v5941_v42 = vld [vmem:[#allocation10 + $0x2c4] ss:$8 sps:$4 sm:$0xff]  }
 0x211   : > { %1571 = vmatprep.subr.bf16.mxu1 %v5956_v10  ;;  %v5984_v10 = vld [vmem:[#allocation10 + $0x140] ss:$8 sps:$4 sm:$0xff]  }
 0x214   : > { %1572 = vmatpush1.bf16.msra.mxu1 %v5954_v12  ;;  %v5992_v12 = vld [vmem:[#allocation10 + $0x154] ss:$8 sps:$4 sm:$0xff]  }
 0x215   : > { %1582 = vmatprep.subr.bf16.mxu1 %v5962_v14  ;;  %v5990_v14 = vld [vmem:[#allocation10 + $0x150] ss:$8 sps:$4 sm:$0xff]  }
 0x25a   : > { %v7425_v56 = vpop.f32.mrb[0].mxu0 }
 0x25b   : > { %v5520_v57 = vpop.f32.mrb[1].mxu0  ;;  %814 = vmatmul.mubr.f32.vlgmr.msra.gmra.mrb[2].mxu0 %v7425_v56 }
 0x25c   : > { %5556 = vmatpush1.bf16.msra.mxu0 %v5555_v49  ;;  %884 = vmatprep.mubr.f32.mxu0 %v6943_v0  ;;  %v5782_v49 = vld [vmem:[#allocation11 + $0x120] ss:$8 sps:$4 sm:$0xff]  }
 0x25d   : > { %5558 = vmatprep.subr.bf16.mxu0 %v5557_v53  ;;  %v5794_v53 = vld [vmem:[#allocation11 + $0x140] ss:$8 sps:$4 sm:$0xff]  }
 0x25e   : > { %v5806_v57 = vld [vmem:[#allocation11 + $0x160] ss:$8 sps:$4 sm:$0xff]  }
 0x260   : > { %5560 = vmatpush1.bf16.msra.mxu0 %v5559_v58  ;;  %v5814_v58 = vld [vmem:[#allocation11 + $0x174] ss:$8 sps:$4 sm:$0xff]  }
 0x261   : > { %5562 = vmatprep.subr.bf16.mxu0 %v5561_v61  ;;  %v5818_v61 = vld [vmem:[#allocation11 + $0x180] ss:$8 sps:$4 sm:$0xff]  }
 0x264   : > { %5564 = vmatpush1.bf16.msra.mxu0 %v5563_v3  ;;  %v5838_v3 = vld [vmem:[#allocation11 + $0x1b4] ss:$8 sps:$4 sm:$0xff]  }
 0x265   : > { %5566 = vmatprep.subr.bf16.mxu0 %v5565_v5  ;;  %v5844_v5 = vld [vmem:[#allocation11 + $0x1c4] ss:$8 sps:$4 sm:$0xff]  }
 0x268   : > { %5568 = vmatpush1.bf16.msra.mxu0 %v5567_v11  ;;  %v5854_v11 = vld [vmem:[#allocation11 + $0x1e0] ss:$8 sps:$4 sm:$0xff]  }
 0x269   : > { %5570 = vmatprep.subr.bf16.mxu0 %v5569_v13  ;;  %v5862_v13 = vld [vmem:[#allocation11 + $0x1f4] ss:$8 sps:$4 sm:$0xff]  }
 0x26c   : > { %5572 = vmatpush1.bf16.msra.mxu0 %v5571_v19  ;;  %v5873_v19 = vld [vmem:[#allocation10 + $0x210] ss:$8 sps:$4 sm:$0xff]  }
 0x26d   : > { %5574 = vmatprep.subr.bf16.mxu0 %v5573_v21  ;;  %v5879_v21 = vld [vmem:[#allocation10 + $0x220] ss:$8 sps:$4 sm:$0xff]  }
 0x270   : > { %5576 = vmatpush1.bf16.msra.mxu0 %v5575_v27  ;;  %v5897_v27 = vld [vmem:[#allocation10 + $0x250] ss:$8 sps:$4 sm:$0xff]  }
 0x271   : > { %5578 = vmatprep.subr.bf16.mxu0 %v5577_v31  ;;  %v5903_v31 = vld [vmem:[#allocation10 + $0x260] ss:$8 sps:$4 sm:$0xff]  }
 0x274   : > { %5580 = vmatpush1.bf16.msra.mxu0 %v5579_v37  ;;  %v5921_v37 = vld [vmem:[#allocation10 + $0x290] ss:$8 sps:$4 sm:$0xff]  }
 0x275   : > { %5582 = vmatprep.subr.bf16.mxu0 %v5581_v39  ;;  %v5927_v39 = vld [vmem:[#allocation10 + $0x2a0] ss:$8 sps:$4 sm:$0xff]  }
 0x278   : > { %5584 = vmatpush1.bf16.msra.mxu0 %v5583_v43  ;;  %v5939_v43 = vld [vmem:[#allocation10 + $0x2c0] ss:$8 sps:$4 sm:$0xff]  }
 0x279   : > { %1881 = vmatprep.subr.bf16.mxu0 %v5772_v44  ;;  %v5947_v44 = vld [vmem:[#allocation10 + $0x2d4] ss:$8 sps:$4 sm:$0xff]  }
 0x27b   : > { %885 = vmatmul.mubr.f32.vlgmr.msra.gmra.mrb[4].mxu0 %v7425_v56  ;;  %v5808_v56 = vld [vmem:[#allocation11 + $0x164] ss:$8 sps:$4 sm:$0xff]  }
 0x27c   : > { %1882 = vmatpush1.bf16.msra.mxu0 %v5770_v45  ;;  %1913 = vmatprep.mubr.bf16.mxu0 %v7419_v28  ;;  %v5945_v45 = vld [vmem:[#allocation10 + $0x2d0] ss:$8 sps:$4 sm:$0xff]  }
 0x27d   : > { %1883 = vmatprep.subr.bf16.mxu0 %v5778_v46  ;;  %v5953_v46 = vld [vmem:[#allocation10 + $0x2e4] ss:$8 sps:$4 sm:$0xff]  }
 0x280   : > { %1884 = vmatpush1.bf16.msra.mxu0 %v5776_v47  ;;  %v5951_v47 = vld [vmem:[#allocation10 + $0x2e0] ss:$8 sps:$4 sm:$0xff]  }
 0x281   : > { %1885 = vmatprep.subr.bf16.mxu0 %v5784_v48  ;;  %v5959_v48 = vld [vmem:[#allocation10 + $0x2f4] ss:$8 sps:$4 sm:$0xff]  }
 0x284   : > { %1886 = vmatpush1.bf16.msra.mxu0 %v5782_v49  ;;  %v5957_v49 = vld [vmem:[#allocation10 + $0x2f0] ss:$8 sps:$4 sm:$0xff]  }
 0x285   : > { %1887 = vmatprep.subr.bf16.mxu0 %v5790_v50  ;;  %v5965_v50 = vld [vmem:[#allocation10 + $0x304] ss:$8 sps:$4 sm:$0xff]  }
 0x288   : > { %1888 = vmatpush1.bf16.msra.mxu0 %v5788_v51 }
 0x289   : > { %1889 = vmatprep.subr.bf16.mxu0 %v5796_v52 }
 0x28c   : > { %1890 = vmatpush1.bf16.msra.mxu0 %v5794_v53 }
 0x28d   : > { %1891 = vmatprep.subr.bf16.mxu0 %v5802_v54 }
 0x290   : > { %1892 = vmatpush1.bf16.msra.mxu0 %v5800_v55 }
 0x291   : > { %1893 = vmatprep.subr.bf16.mxu0 %v5808_v56  ;;  %v5960_v56 = vld [vmem:[#allocation10 + $0x100] ss:$8 sps:$4 sm:$0xff]  }
 0x294   : > { %1894 = vmatpush1.bf16.msra.mxu0 %v5806_v57  ;;  %v5963_v57 = vld [vmem:[#allocation10 + $0x300] ss:$8 sps:$4 sm:$0xff]  }
 0x295   : > { %1895 = vmatprep.subr.bf16.mxu0 %v5814_v58 }
 0x298   : > { %1896 = vmatpush1.bf16.msra.mxu0 %v5812_v59  ;;  %v5968_v59 = vld [vmem:[#allocation10 + $0x114] ss:$8 sps:$4 sm:$0xff]  }
 0x299   : > { %1897 = vmatprep.subr.bf16.mxu0 %v5820_v60  ;;  %v5971_v60 = vld [vmem:[#allocation10 + $0x314] ss:$8 sps:$4 sm:$0xff]  }
 0x29c   : > { %1898 = vmatpush1.bf16.msra.mxu0 %v5818_v61  ;;  %v5966_v61 = vld [vmem:[#allocation10 + $0x110] ss:$8 sps:$4 sm:$0xff]  }
 0x29d   : > { %1899 = vmatprep.subr.bf16.mxu0 %v5826_v62  ;;  %v5969_v62 = vld [vmem:[#allocation10 + $0x310] ss:$8 sps:$4 sm:$0xff]  }
 0x2a0   : > { %1900 = vmatpush1.bf16.msra.mxu0 %v5824_v63  ;;  %v5974_v63 = vld [vmem:[#allocation10 + $0x124] ss:$8 sps:$4 sm:$0xff]  }
 0x2a1   : > { %1901 = vmatprep.subr.bf16.mxu0 %v5832_v1  ;;  %v5977_v1 = vld [vmem:[#allocation10 + $0x324] ss:$8 sps:$4 sm:$0xff]  }
 0x2a4   : > { %1902 = vmatpush1.bf16.msra.mxu0 %v5830_v2  ;;  %v5972_v2 = vld [vmem:[#allocation10 + $0x120] ss:$8 sps:$4 sm:$0xff]  }
 0x2a5   : > { %1903 = vmatprep.subr.bf16.mxu0 %v5838_v3  ;;  %v5975_v3 = vld [vmem:[#allocation10 + $0x320] ss:$8 sps:$4 sm:$0xff]  }
 0x2a8   : > { %1904 = vmatpush1.bf16.msra.mxu0 %v5836_v4  ;;  %v5980_v4 = vld [vmem:[#allocation10 + $0x134] ss:$8 sps:$4 sm:$0xff]  }
 0x2a9   : > { %1905 = vmatprep.subr.bf16.mxu0 %v5844_v5  ;;  %v5983_v5 = vld [vmem:[#allocation10 + $0x334] ss:$8 sps:$4 sm:$0xff]  }
 0x2ac   : > { %1906 = vmatpush1.bf16.msra.mxu0 %v5842_v6  ;;  %v5978_v6 = vld [vmem:[#allocation10 + $0x130] ss:$8 sps:$4 sm:$0xff]  }
 0x2ad   : > { %1907 = vmatprep.subr.bf16.mxu0 %v5850_v7  ;;  %v5981_v7 = vld [vmem:[#allocation10 + $0x330] ss:$8 sps:$4 sm:$0xff]  }
 0x2b0   : > { %1908 = vmatpush1.bf16.msra.mxu0 %v5848_v8  ;;  %v5986_v8 = vld [vmem:[#allocation10 + $0x144] ss:$8 sps:$4 sm:$0xff]  }
 0x2b1   : > { %1909 = vmatprep.subr.bf16.mxu0 %v5856_v9  ;;  %v5989_v9 = vld [vmem:[#allocation10 + $0x344] ss:$8 sps:$4 sm:$0xff]  }
 0x2b4   : > { %1910 = vmatpush1.bf16.msra.mxu0 %v5854_v11  ;;  %v5987_v11 = vld [vmem:[#allocation10 + $0x340] ss:$8 sps:$4 sm:$0xff]  }
 0x2b5   : > { %1911 = vmatprep.subr.bf16.mxu0 %v5862_v13  ;;  %v5995_v13 = vld [vmem:[#allocation10 + $0x354] ss:$8 sps:$4 sm:$0xff]  }
 0x2b8   : > { %1912 = vmatpush1.bf16.msra.mxu0 %v5860_v15  ;;  %v5993_v15 = vld [vmem:[#allocation10 + $0x350] ss:$8 sps:$4 sm:$0xff]  }
 0x2b9   : > { %2242 = vmatprep.subr.bf16.mxu0 %v5869_v16  ;;  %v5998_v16 = vld [vmem:[#allocation10 + $0x164] ss:$8 sps:$4 sm:$0xff]  }
 0x2bb   : > { %1914 = vmatmul.mubr.bf16.vlgmr.msra.gmra.mrb[8].mxu0 %v7421_v29 }
 0x2bc   : > { %2243 = vmatpush1.bf16.msra.mxu0 %v5867_v17  ;;  %v6001_v17 = vld [vmem:[#allocation10 + $0x364] ss:$8 sps:$4 sm:$0xff]  }
 0x2bd   : > { %2244 = vmatprep.subr.bf16.mxu0 %v5875_v18  ;;  %v5996_v18 = vld [vmem:[#allocation10 + $0x160] ss:$8 sps:$4 sm:$0xff]  }
 0x2c0   : > { %2245 = vmatpush1.bf16.msra.mxu0 %v5873_v19  ;;  %v5999_v19 = vld [vmem:[#allocation10 + $0x360] ss:$8 sps:$4 sm:$0xff]  }
 0x2c1   : > { %2246 = vmatprep.subr.bf16.mxu0 %v5881_v20  ;;  %v6004_v20 = vld [vmem:[#allocation10 + $0x174] ss:$8 sps:$4 sm:$0xff]  }
 0x2c4   : > { %2247 = vmatpush1.bf16.msra.mxu0 %v5879_v21  ;;  %v6007_v21 = vld [vmem:[#allocation10 + $0x374] ss:$8 sps:$4 sm:$0xff]  }
 0x2c5   : > { %2248 = vmatprep.subr.bf16.mxu0 %v5887_v22 }
 0x2c8   : > { %2249 = vmatpush1.bf16.msra.mxu0 %v5885_v23  ;;  %v6002_v23 = vld [vmem:[#allocation10 + $0x170] ss:$8 sps:$4 sm:$0xff]  }
 0x2c9   : > { %2250 = vmatprep.subr.bf16.mxu0 %v5893_v24  ;;  %v6005_v24 = vld [vmem:[#allocation10 + $0x370] ss:$8 sps:$4 sm:$0xff]  }
 0x2cc   : > { %2251 = vmatpush1.bf16.msra.mxu0 %v5891_v25 }
 0x2cd   : > { %2252 = vmatprep.subr.bf16.mxu0 %v5899_v26  ;;  %v6010_v26 = vld [vmem:[#allocation10 + $0x184] ss:$8 sps:$4 sm:$0xff]  }
 0x2d0   : > { %2253 = vmatpush1.bf16.msra.mxu0 %v5897_v27  ;;  %v6013_v27 = vld [vmem:[#allocation10 + $0x384] ss:$8 sps:$4 sm:$0xff]  }
 0x2d1   : > { %2254 = vmatprep.subr.bf16.mxu0 %v5905_v30 }
 0x2d4   : > { %2255 = vmatpush1.bf16.msra.mxu0 %v5903_v31 }
 0x2d5   : > { %2256 = vmatprep.subr.bf16.mxu0 %v5911_v32  ;;  %v6008_v32 = vld [vmem:[#allocation10 + $0x180] ss:$8 sps:$4 sm:$0xff]  }
 0x2d8   : > { %2257 = vmatpush1.bf16.msra.mxu0 %v5909_v33  ;;  %v6011_v33 = vld [vmem:[#allocation10 + $0x380] ss:$8 sps:$4 sm:$0xff]  }
 0x2d9   : > { %2258 = vmatprep.subr.bf16.mxu0 %v5917_v34  ;;  %v6016_v34 = vld [vmem:[#allocation10 + $0x194] ss:$8 sps:$4 sm:$0xff]  }
 0x2dc   : > { %2259 = vmatpush1.bf16.msra.mxu0 %v5915_v35  ;;  %v6019_v35 = vld [vmem:[#allocation10 + $0x394] ss:$8 sps:$4 sm:$0xff]  }
 0x2dd   : > { %2260 = vmatprep.subr.bf16.mxu0 %v5923_v36  ;;  %v6014_v36 = vld [vmem:[#allocation10 + $0x190] ss:$8 sps:$4 sm:$0xff]  }
 0x2e0   : > { %2261 = vmatpush1.bf16.msra.mxu0 %v5921_v37  ;;  %v6017_v37 = vld [vmem:[#allocation10 + $0x390] ss:$8 sps:$4 sm:$0xff]  }
 0x2e1   : > { %2262 = vmatprep.subr.bf16.mxu0 %v5929_v38  ;;  %v6022_v38 = vld [vmem:[#allocation10 + $0x1a4] ss:$8 sps:$4 sm:$0xff]  }
 0x2e4   : > { %2263 = vmatpush1.bf16.msra.mxu0 %v5927_v39  ;;  %v6025_v39 = vld [vmem:[#allocation10 + $0x3a4] ss:$8 sps:$4 sm:$0xff]  }
 0x2e5   : > { %2264 = vmatprep.subr.bf16.mxu0 %v5935_v40  ;;  %v6020_v40 = vld [vmem:[#allocation10 + $0x1a0] ss:$8 sps:$4 sm:$0xff]  }
 0x2e8   : > { %2265 = vmatpush1.bf16.msra.mxu0 %v5933_v41  ;;  %v6023_v41 = vld [vmem:[#allocation10 + $0x3a0] ss:$8 sps:$4 sm:$0xff]  }
 0x2e9   : > { %2266 = vmatprep.subr.bf16.mxu0 %v5941_v42  ;;  %v6028_v42 = vld [vmem:[#allocation10 + $0x1b4] ss:$8 sps:$4 sm:$0xff]  }
 0x2ec   : > { %2267 = vmatpush1.bf16.msra.mxu0 %v5939_v43  ;;  %v6031_v43 = vld [vmem:[#allocation10 + $0x3b4] ss:$8 sps:$4 sm:$0xff]  }
 0x2ed   : > { %2268 = vmatprep.subr.bf16.mxu0 %v5947_v44  ;;  %v6026_v44 = vld [vmem:[#allocation10 + $0x1b0] ss:$8 sps:$4 sm:$0xff]  }
 0x2f0   : > { %2269 = vmatpush1.bf16.msra.mxu0 %v5945_v45  ;;  %v6029_v45 = vld [vmem:[#allocation10 + $0x3b0] ss:$8 sps:$4 sm:$0xff]  }
 0x2f1   : > { %2270 = vmatprep.subr.bf16.mxu0 %v5953_v46  ;;  %v6034_v46 = vld [vmem:[#allocation10 + $0x1c4] ss:$8 sps:$4 sm:$0xff]  }
 0x2f4   : > { %2271 = vmatpush1.bf16.msra.mxu0 %v5951_v47  ;;  %v6037_v47 = vld [vmem:[#allocation10 + $0x3c4] ss:$8 sps:$4 sm:$0xff]  }
 0x2f5   : > { %2272 = vmatprep.subr.bf16.mxu0 %v5959_v48  ;;  %v6032_v48 = vld [vmem:[#allocation10 + $0x1c0] ss:$8 sps:$4 sm:$0xff]  }
 0x2f8   : > { %2273 = vmatpush1.bf16.msra.mxu0 %v5957_v49  ;;  %v6035_v49 = vld [vmem:[#allocation10 + $0x3c0] ss:$8 sps:$4 sm:$0xff]  }
 0x2f9   : > { %2283 = vmatprep.subr.bf16.mxu0 %v5965_v50  ;;  %v6040_v50 = vld [vmem:[#allocation10 + $0x1d4] ss:$8 sps:$4 sm:$0xff]  }
 0x32e   : > { %v7432_v51 = vpop.f32.mrb[2].mxu0 }
 0x32f   : > { %v896_v52 = vmax.f32 %v7432_v51, 0.0  ;;  %v7435_v53 = vpop.f32.mrb[3].mxu0 }
 0x330   : > { %v897_v54 = vmax.f32 %v7435_v53, 0.0 }
 0x331   : > { %v7440_v58 = vpack.c.bf16 %v896_v52, %v896_v52  ;;  %v6043_v52 = vld [vmem:[#allocation10 + $0x3d4] ss:$8 sps:$4 sm:$0xff]  }
 0x332   : > { %v7438_v55 = vpack.c.bf16 %v897_v54, %v897_v54  ;;  %v6038_v54 = vld [vmem:[#allocation10 + $0x1d0] ss:$8 sps:$4 sm:$0xff]  }
 0x334   : > { %1573 = vmatprep.mubr.bf16.mxu1 %v7438_v55  ;;  %2274 = vmatprep.mubr.bf16.mxu0 %v7438_v55 }
 0x335   : > { %1574 = vmatmul.mubr.bf16.vlgmr.msra.gmra.mrb[0].mxu1 %v7440_v58  ;;  %2275 = vmatmul.mubr.bf16.vlgmr.msra.gmra.mrb[8].mxu0 %v7440_v58 }
 0x336   : > { %1583 = vmatpush1.bf16.msra.mxu1 %v5960_v56  ;;  %2284 = vmatpush1.bf16.msra.mxu0 %v5963_v57  ;;  %v6041_v56 = vld [vmem:[#allocation10 + $0x3d0] ss:$8 sps:$4 sm:$0xff]   ;;  %v6046_v57 = vld [vmem:[#allocation10 + $0x1e4] ss:$8 sps:$4 sm:$0xff]  }
 0x337   : > { %1584 = vmatprep.subr.bf16.mxu1 %v5968_v59  ;;  %2285 = vmatprep.subr.bf16.mxu0 %v5971_v60  ;;  %v6049_v59 = vld [vmem:[#allocation10 + $0x3e4] ss:$8 sps:$4 sm:$0xff]   ;;  %v6044_v60 = vld [vmem:[#allocation10 + $0x1e0] ss:$8 sps:$4 sm:$0xff]  }
 0x33a   : > { %1585 = vmatpush1.bf16.msra.mxu1 %v5966_v61  ;;  %2286 = vmatpush1.bf16.msra.mxu0 %v5969_v62  ;;  %v6047_v61 = vld [vmem:[#allocation10 + $0x3e0] ss:$8 sps:$4 sm:$0xff]   ;;  %v6052_v62 = vld [vmem:[#allocation10 + $0x1f4] ss:$8 sps:$4 sm:$0xff]  }
 0x33b   : > { %1586 = vmatprep.subr.bf16.mxu1 %v5974_v63  ;;  %2287 = vmatprep.subr.bf16.mxu0 %v5977_v1  ;;  %v6055_v63 = vld [vmem:[#allocation10 + $0x3f4] ss:$8 sps:$4 sm:$0xff]   ;;  %v6050_v1 = vld [vmem:[#allocation10 + $0x1f0] ss:$8 sps:$4 sm:$0xff]  }
 0x33e   : > { %1587 = vmatpush1.bf16.msra.mxu1 %v5972_v2  ;;  %2288 = vmatpush1.bf16.msra.mxu0 %v5975_v3  ;;  %v6053_v2 = vld [vmem:[#allocation10 + $0x3f0] ss:$8 sps:$4 sm:$0xff]  }
 0x33f   : > { %1588 = vmatprep.subr.bf16.mxu1 %v5980_v4  ;;  %2289 = vmatprep.subr.bf16.mxu0 %v5983_v5  ;;  %v6058_v4 = vld [vmem:[#allocation11 + $0x204] ss:$8 sps:$4 sm:$0xff]   ;;  %v6056_v5 = vld [vmem:[#allocation11 + $0x200] ss:$8 sps:$4 sm:$0xff]  }
 0x342   : > { %1589 = vmatpush1.bf16.msra.mxu1 %v5978_v6  ;;  %2290 = vmatpush1.bf16.msra.mxu0 %v5981_v7  ;;  %v6061_v7 = vld [vmem:[#allocation11 + $0x214] ss:$8 sps:$4 sm:$0xff]  }
 0x343   : > { %1590 = vmatprep.subr.bf16.mxu1 %v5986_v8  ;;  %2291 = vmatprep.subr.bf16.mxu0 %v5989_v9  ;;  %v6059_v8 = vld [vmem:[#allocation11 + $0x210] ss:$8 sps:$4 sm:$0xff]   ;;  %v6064_v9 = vld [vmem:[#allocation11 + $0x224] ss:$8 sps:$4 sm:$0xff]  }
 0x346   : > { %1591 = vmatpush1.bf16.msra.mxu1 %v5984_v10  ;;  %2292 = vmatpush1.bf16.msra.mxu0 %v5987_v11  ;;  %v6062_v10 = vld [vmem:[#allocation11 + $0x220] ss:$8 sps:$4 sm:$0xff]   ;;  %v6067_v11 = vld [vmem:[#allocation11 + $0x234] ss:$8 sps:$4 sm:$0xff]  }
 0x347   : > { %1592 = vmatprep.subr.bf16.mxu1 %v5992_v12  ;;  %2293 = vmatprep.subr.bf16.mxu0 %v5995_v13  ;;  %v6065_v12 = vld [vmem:[#allocation11 + $0x230] ss:$8 sps:$4 sm:$0xff]   ;;  %v6070_v13 = vld [vmem:[#allocation11 + $0x244] ss:$8 sps:$4 sm:$0xff]  }
 0x34a   : > { %1593 = vmatpush1.bf16.msra.mxu1 %v5990_v14  ;;  %2294 = vmatpush1.bf16.msra.mxu0 %v5993_v15  ;;  %v6068_v14 = vld [vmem:[#allocation11 + $0x240] ss:$8 sps:$4 sm:$0xff]   ;;  %v6073_v15 = vld [vmem:[#allocation11 + $0x254] ss:$8 sps:$4 sm:$0xff]  }
 0x34b   : > { %1594 = vmatprep.subr.bf16.mxu1 %v5998_v16  ;;  %2295 = vmatprep.subr.bf16.mxu0 %v6001_v17  ;;  %v6071_v16 = vld [vmem:[#allocation11 + $0x250] ss:$8 sps:$4 sm:$0xff]   ;;  %v6074_v17 = vld [vmem:[#allocation11 + $0x260] ss:$8 sps:$4 sm:$0xff]  }
 0x34e   : > { %v7446_v22 = vpop.f32.mrb[4].mxu0  ;;  %1595 = vmatpush1.bf16.msra.mxu1 %v5996_v18  ;;  %2296 = vmatpush1.bf16.msra.mxu0 %v5999_v19  ;;  %v6079_v18 = vld [vmem:[#allocation11 + $0x274] ss:$8 sps:$4 sm:$0xff]   ;;  %v6077_v19 = vld [vmem:[#allocation11 + $0x270] ss:$8 sps:$4 sm:$0xff]  }
 0x34f   : > { %v7448_v25 = vpop.f32.mrb[5].mxu0  ;;  %1596 = vmatprep.subr.bf16.mxu1 %v6004_v20  ;;  %2297 = vmatprep.subr.bf16.mxu0 %v6007_v21  ;;  %v898_v3 = vmax.f32 %v7446_v22, 0.0  ;;  %v6082_v20 = vld [vmem:[#allocation11 + $0x284] ss:$8 sps:$4 sm:$0xff]   ;;  %v6080_v21 = vld [vmem:[#allocation11 + $0x280] ss:$8 sps:$4 sm:$0xff]  }
 0x350   : > { %v899_v30 = vmax.f32 %v7448_v25, 0.0 }
 0x351   : > { %v7456_v6 = vpack.c.bf16 %v898_v3, %v898_v3  ;;  %v6137_v3 = vld [vmem:[#allocation10 + $0x4b0] ss:$8 sps:$4 sm:$0xff]  }
 0x352   : > { %v7451_v31 = vpack.c.bf16 %v899_v30, %v899_v30  ;;  %1597 = vmatpush1.bf16.msra.mxu1 %v6002_v23  ;;  %2298 = vmatpush1.bf16.msra.mxu0 %v6005_v24  ;;  %v6085_v23 = vld [vmem:[#allocation11 + $0x294] ss:$8 sps:$4 sm:$0xff]   ;;  %v6083_v24 = vld [vmem:[#allocation11 + $0x290] ss:$8 sps:$4 sm:$0xff]  }
 0x353   : > { %1598 = vmatprep.subr.bf16.mxu1 %v6010_v26  ;;  %2299 = vmatprep.subr.bf16.mxu0 %v6013_v27  ;;  %v6088_v26 = vld [vmem:[#allocation11 + $0x2a4] ss:$8 sps:$4 sm:$0xff]   ;;  %v6086_v27 = vld [vmem:[#allocation11 + $0x2a0] ss:$8 sps:$4 sm:$0xff]   ;;  %v6091_v30 = vld [vmem:[#allocation11 + $0x2b4] ss:$8 sps:$4 sm:$0xff]  }
 0x354   : > { %1614 = vmatprep.mubr.bf16.mxu1 %v7451_v31  ;;  %2315 = vmatprep.mubr.bf16.mxu0 %v7451_v31 }
 0x356   : > { %1599 = vmatpush1.bf16.msra.mxu1 %v6008_v32  ;;  %2300 = vmatpush1.bf16.msra.mxu0 %v6011_v33  ;;  %v6089_v32 = vld [vmem:[#allocation11 + $0x2b0] ss:$8 sps:$4 sm:$0xff]   ;;  %v6094_v33 = vld [vmem:[#allocation11 + $0x2c4] ss:$8 sps:$4 sm:$0xff]  }
 0x357   : > { %1600 = vmatprep.subr.bf16.mxu1 %v6016_v34  ;;  %2301 = vmatprep.subr.bf16.mxu0 %v6019_v35  ;;  %v6092_v34 = vld [vmem:[#allocation11 + $0x2c0] ss:$8 sps:$4 sm:$0xff]   ;;  %v6097_v35 = vld [vmem:[#allocation11 + $0x2d4] ss:$8 sps:$4 sm:$0xff]  }
 0x35a   : > { %1601 = vmatpush1.bf16.msra.mxu1 %v6014_v36  ;;  %2302 = vmatpush1.bf16.msra.mxu0 %v6017_v37  ;;  %v6095_v36 = vld [vmem:[#allocation11 + $0x2d0] ss:$8 sps:$4 sm:$0xff]   ;;  %v6100_v37 = vld [vmem:[#allocation11 + $0x2e4] ss:$8 sps:$4 sm:$0xff]  }
 0x35b   : > { %1602 = vmatprep.subr.bf16.mxu1 %v6022_v38  ;;  %2303 = vmatprep.subr.bf16.mxu0 %v6025_v39  ;;  %v6098_v38 = vld [vmem:[#allocation11 + $0x2e0] ss:$8 sps:$4 sm:$0xff]   ;;  %v6103_v39 = vld [vmem:[#allocation11 + $0x2f4] ss:$8 sps:$4 sm:$0xff]  }
 0x35e   : > { %1603 = vmatpush1.bf16.msra.mxu1 %v6020_v40  ;;  %2304 = vmatpush1.bf16.msra.mxu0 %v6023_v41  ;;  %v6101_v40 = vld [vmem:[#allocation11 + $0x2f0] ss:$8 sps:$4 sm:$0xff]   ;;  %v6106_v41 = vld [vmem:[#allocation10 + $0x404] ss:$8 sps:$4 sm:$0xff]  }
 0x35f   : > { %1604 = vmatprep.subr.bf16.mxu1 %v6028_v42  ;;  %2305 = vmatprep.subr.bf16.mxu0 %v6031_v43  ;;  %v6104_v42 = vld [vmem:[#allocation10 + $0x400] ss:$8 sps:$4 sm:$0xff]   ;;  %v6109_v43 = vld [vmem:[#allocation10 + $0x414] ss:$8 sps:$4 sm:$0xff]  }
 0x362   : > { %1605 = vmatpush1.bf16.msra.mxu1 %v6026_v44  ;;  %2306 = vmatpush1.bf16.msra.mxu0 %v6029_v45  ;;  %v6107_v44 = vld [vmem:[#allocation10 + $0x410] ss:$8 sps:$4 sm:$0xff]   ;;  %v6112_v45 = vld [vmem:[#allocation10 + $0x424] ss:$8 sps:$4 sm:$0xff]  }
 0x363   : > { %1606 = vmatprep.subr.bf16.mxu1 %v6034_v46  ;;  %2307 = vmatprep.subr.bf16.mxu0 %v6037_v47  ;;  %v6110_v46 = vld [vmem:[#allocation10 + $0x420] ss:$8 sps:$4 sm:$0xff]   ;;  %v6115_v47 = vld [vmem:[#allocation10 + $0x434] ss:$8 sps:$4 sm:$0xff]  }
 0x366   : > { %1607 = vmatpush1.bf16.msra.mxu1 %v6032_v48  ;;  %2308 = vmatpush1.bf16.msra.mxu0 %v6035_v49  ;;  %v6113_v48 = vld [vmem:[#allocation10 + $0x430] ss:$8 sps:$4 sm:$0xff]   ;;  %v6118_v49 = vld [vmem:[#allocation10 + $0x444] ss:$8 sps:$4 sm:$0xff]  }
 0x367   : > { %1608 = vmatprep.subr.bf16.mxu1 %v6040_v50  ;;  %2309 = vmatprep.subr.bf16.mxu0 %v6043_v52  ;;  %v6116_v50 = vld [vmem:[#allocation10 + $0x440] ss:$8 sps:$4 sm:$0xff]   ;;  %v6121_v52 = vld [vmem:[#allocation10 + $0x454] ss:$8 sps:$4 sm:$0xff]  }
 0x36a   : > { %1609 = vmatpush1.bf16.msra.mxu1 %v6038_v54  ;;  %2310 = vmatpush1.bf16.msra.mxu0 %v6041_v56  ;;  %v6124_v54 = vld [vmem:[#allocation10 + $0x464] ss:$8 sps:$4 sm:$0xff]   ;;  %v6127_v56 = vld [vmem:[#allocation10 + $0x474] ss:$8 sps:$4 sm:$0xff]  }
 0x36b   : > { %1610 = vmatprep.subr.bf16.mxu1 %v6046_v57  ;;  %2311 = vmatprep.subr.bf16.mxu0 %v6049_v59  ;;  %v6125_v57 = vld [vmem:[#allocation10 + $0x470] ss:$8 sps:$4 sm:$0xff]   ;;  %v6130_v59 = vld [vmem:[#allocation10 + $0x484] ss:$8 sps:$4 sm:$0xff]  }
 0x36e   : > { %1611 = vmatpush1.bf16.msra.mxu1 %v6044_v60  ;;  %2312 = vmatpush1.bf16.msra.mxu0 %v6047_v61  ;;  %v6128_v60 = vld [vmem:[#allocation10 + $0x480] ss:$8 sps:$4 sm:$0xff]   ;;  %v6133_v61 = vld [vmem:[#allocation10 + $0x494] ss:$8 sps:$4 sm:$0xff]  }
 0x36f   : > { %1612 = vmatprep.subr.bf16.mxu1 %v6052_v62  ;;  %2313 = vmatprep.subr.bf16.mxu0 %v6055_v63  ;;  %v6131_v62 = vld [vmem:[#allocation10 + $0x490] ss:$8 sps:$4 sm:$0xff]   ;;  %v6136_v63 = vld [vmem:[#allocation10 + $0x4a4] ss:$8 sps:$4 sm:$0xff]  }
 0x372   : > { %1613 = vmatpush1.bf16.msra.mxu1 %v6050_v1  ;;  %2314 = vmatpush1.bf16.msra.mxu0 %v6053_v2  ;;  %v6134_v1 = vld [vmem:[#allocation10 + $0x4a0] ss:$8 sps:$4 sm:$0xff]   ;;  %v6139_v2 = vld [vmem:[#allocation10 + $0x4b4] ss:$8 sps:$4 sm:$0xff]  }
 0x373   : > { %2582 = vmatprep.subr.bf16.mxu1 %v6058_v4  ;;  %v6142_v4 = vld [vmem:[#allocation10 + $0x4c4] ss:$8 sps:$4 sm:$0xff]  }
 0x375   : > { %1615 = vmatmul.mubr.bf16.vlgmr.msra.gmra.mrb[0].mxu1 %v7456_v6  ;;  %2316 = vmatmul.mubr.bf16.vlgmr.msra.gmra.mrb[8].mxu0 %v7456_v6 }
 0x376   : > { %2583 = vmatpush1.bf16.msra.mxu1 %v6056_v5  ;;  %2614 = vmatprep.mubr.bf16.mxu1 %v7419_v28  ;;  %v6076_v28 = vld [vmem:[#allocation11 + $0x264] ss:$8 sps:$4 sm:$0xff]   ;;  %v6140_v5 = vld [vmem:[#allocation10 + $0x4c0] ss:$8 sps:$4 sm:$0xff]  }
 0x377   : > { %2584 = vmatprep.subr.bf16.mxu1 %v6061_v7  ;;  %3093 = vmatprep.mubr.f32.mxu0 %v6943_v0  ;;  %v6145_v7 = vld [vmem:[#allocation10 + $0x4d4] ss:$8 sps:$4 sm:$0xff]  }
 0x37a   : > { %2585 = vmatpush1.bf16.msra.mxu1 %v6059_v8  ;;  %v6143_v8 = vld [vmem:[#allocation10 + $0x4d0] ss:$8 sps:$4 sm:$0xff]  }
 0x37b   : > { %2586 = vmatprep.subr.bf16.mxu1 %v6064_v9  ;;  %v6148_v9 = vld [vmem:[#allocation10 + $0x4e4] ss:$8 sps:$4 sm:$0xff]  }
 0x37e   : > { %2587 = vmatpush1.bf16.msra.mxu1 %v6062_v10  ;;  %v6146_v10 = vld [vmem:[#allocation10 + $0x4e0] ss:$8 sps:$4 sm:$0xff]  }
 0x37f   : > { %2588 = vmatprep.subr.bf16.mxu1 %v6067_v11  ;;  %v6151_v11 = vld [vmem:[#allocation10 + $0x4f4] ss:$8 sps:$4 sm:$0xff]  }
 0x382   : > { %2589 = vmatpush1.bf16.msra.mxu1 %v6065_v12  ;;  %v6149_v12 = vld [vmem:[#allocation10 + $0x4f0] ss:$8 sps:$4 sm:$0xff]  }
 0x383   : > { %2590 = vmatprep.subr.bf16.mxu1 %v6070_v13  ;;  %v6154_v13 = vld [vmem:[#allocation10 + $0x504] ss:$8 sps:$4 sm:$0xff]  }
 0x386   : > { %2591 = vmatpush1.bf16.msra.mxu1 %v6068_v14  ;;  %v6152_v14 = vld [vmem:[#allocation10 + $0x500] ss:$8 sps:$4 sm:$0xff]  }
 0x387   : > { %2592 = vmatprep.subr.bf16.mxu1 %v6073_v15  ;;  %v6157_v15 = vld [vmem:[#allocation10 + $0x514] ss:$8 sps:$4 sm:$0xff]  }
 0x38a   : > { %2593 = vmatpush1.bf16.msra.mxu1 %v6071_v16  ;;  %v6155_v16 = vld [vmem:[#allocation10 + $0x510] ss:$8 sps:$4 sm:$0xff]  }
 0x38b   : > { %2594 = vmatprep.subr.bf16.mxu1 %v6076_v28  ;;  %v6160_v28 = vld [vmem:[#allocation10 + $0x524] ss:$8 sps:$4 sm:$0xff]  }
 0x38e   : > { %2595 = vmatpush1.bf16.msra.mxu1 %v6074_v17  ;;  %v6158_v17 = vld [vmem:[#allocation10 + $0x520] ss:$8 sps:$4 sm:$0xff]  }
 0x38f   : > { %2596 = vmatprep.subr.bf16.mxu1 %v6079_v18  ;;  %v6163_v18 = vld [vmem:[#allocation10 + $0x534] ss:$8 sps:$4 sm:$0xff]  }
 0x392   : > { %2597 = vmatpush1.bf16.msra.mxu1 %v6077_v19  ;;  %v6161_v19 = vld [vmem:[#allocation10 + $0x530] ss:$8 sps:$4 sm:$0xff]  }
 0x393   : > { %2598 = vmatprep.subr.bf16.mxu1 %v6082_v20  ;;  %v6166_v20 = vld [vmem:[#allocation10 + $0x544] ss:$8 sps:$4 sm:$0xff]  }
 0x396   : > { %2599 = vmatpush1.bf16.msra.mxu1 %v6080_v21  ;;  %v6164_v21 = vld [vmem:[#allocation10 + $0x540] ss:$8 sps:$4 sm:$0xff]  }
 0x397   : > { %2600 = vmatprep.subr.bf16.mxu1 %v6085_v23  ;;  %v6169_v23 = vld [vmem:[#allocation10 + $0x554] ss:$8 sps:$4 sm:$0xff]  }
 0x39a   : > { %2601 = vmatpush1.bf16.msra.mxu1 %v6083_v24  ;;  %v6172_v24 = vld [vmem:[#allocation10 + $0x564] ss:$8 sps:$4 sm:$0xff]  }
 0x39b   : > { %2602 = vmatprep.subr.bf16.mxu1 %v6088_v26  ;;  %v6175_v26 = vld [vmem:[#allocation10 + $0x574] ss:$8 sps:$4 sm:$0xff]  }
 0x39e   : > { %2603 = vmatpush1.bf16.msra.mxu1 %v6086_v27  ;;  %v6173_v27 = vld [vmem:[#allocation10 + $0x570] ss:$8 sps:$4 sm:$0xff]  }
 0x39f   : > { %2604 = vmatprep.subr.bf16.mxu1 %v6091_v30  ;;  %v6178_v30 = vld [vmem:[#allocation10 + $0x584] ss:$8 sps:$4 sm:$0xff]  }
 0x3a2   : > { %2605 = vmatpush1.bf16.msra.mxu1 %v6089_v32  ;;  %v6176_v32 = vld [vmem:[#allocation10 + $0x580] ss:$8 sps:$4 sm:$0xff]  }
 0x3a3   : > { %2606 = vmatprep.subr.bf16.mxu1 %v6094_v33  ;;  %v6181_v33 = vld [vmem:[#allocation10 + $0x594] ss:$8 sps:$4 sm:$0xff]  }
 0x3a6   : > { %2607 = vmatpush1.bf16.msra.mxu1 %v6092_v34  ;;  %v6179_v34 = vld [vmem:[#allocation10 + $0x590] ss:$8 sps:$4 sm:$0xff]  }
 0x3a7   : > { %2608 = vmatprep.subr.bf16.mxu1 %v6097_v35  ;;  %v6184_v35 = vld [vmem:[#allocation10 + $0x5a4] ss:$8 sps:$4 sm:$0xff]  }
 0x3aa   : > { %2609 = vmatpush1.bf16.msra.mxu1 %v6095_v36  ;;  %v6182_v36 = vld [vmem:[#allocation10 + $0x5a0] ss:$8 sps:$4 sm:$0xff]  }
 0x3ab   : > { %2610 = vmatprep.subr.bf16.mxu1 %v6100_v37  ;;  %v6187_v37 = vld [vmem:[#allocation10 + $0x5b4] ss:$8 sps:$4 sm:$0xff]  }
 0x3ae   : > { %2611 = vmatpush1.bf16.msra.mxu1 %v6098_v38  ;;  %v6185_v38 = vld [vmem:[#allocation10 + $0x5b0] ss:$8 sps:$4 sm:$0xff]  }
 0x3af   : > { %2612 = vmatprep.subr.bf16.mxu1 %v6103_v39  ;;  %v6190_v39 = vld [vmem:[#allocation10 + $0x5c4] ss:$8 sps:$4 sm:$0xff]  }
 0x3b2   : > { %2613 = vmatpush1.bf16.msra.mxu1 %v6101_v40  ;;  %v6188_v40 = vld [vmem:[#allocation10 + $0x5c0] ss:$8 sps:$4 sm:$0xff]  }
 0x3b3   : > { %2943 = vmatprep.subr.bf16.mxu1 %v6106_v41  ;;  %v6193_v41 = vld [vmem:[#allocation10 + $0x5d4] ss:$8 sps:$4 sm:$0xff]  }
 0x3b5   : > { %2615 = vmatmul.mubr.bf16.vlgmr.msra.gmra.mrb[4].mxu1 %v7421_v29  ;;  %v6119_v29 = vld [vmem:[#allocation10 + $0x450] ss:$8 sps:$4 sm:$0xff]  }
 0x3b6   : > { %2944 = vmatpush1.bf16.msra.mxu1 %v6104_v42  ;;  %2975 = vmatprep.mubr.bf16.mxu1 %v7438_v55  ;;  %v6122_v55 = vld [vmem:[#allocation10 + $0x460] ss:$8 sps:$4 sm:$0xff]   ;;  %v6191_v42 = vld [vmem:[#allocation10 + $0x5d0] ss:$8 sps:$4 sm:$0xff]  }
 0x3b7   : > { %2945 = vmatprep.subr.bf16.mxu1 %v6109_v43  ;;  %v6196_v43 = vld [vmem:[#allocation10 + $0x5e4] ss:$8 sps:$4 sm:$0xff]  }
 0x3ba   : > { %2946 = vmatpush1.bf16.msra.mxu1 %v6107_v44  ;;  %v6194_v44 = vld [vmem:[#allocation10 + $0x5e0] ss:$8 sps:$4 sm:$0xff]  }
 0x3bb   : > { %2947 = vmatprep.subr.bf16.mxu1 %v6112_v45  ;;  %v6199_v45 = vld [vmem:[#allocation10 + $0x5f4] ss:$8 sps:$4 sm:$0xff]  }
 0x3be   : > { %2948 = vmatpush1.bf16.msra.mxu1 %v6110_v46  ;;  %v6197_v46 = vld [vmem:[#allocation10 + $0x5f0] ss:$8 sps:$4 sm:$0xff]  }
 0x3bf   : > { %2949 = vmatprep.subr.bf16.mxu1 %v6115_v47  ;;  %v905_v47 = vlaneseq }
 0x3c2   : > { %2950 = vmatpush1.bf16.msra.mxu1 %v6113_v48  ;;  %v7468_v48 = vshrl.u32 %v905_v47, 7 }
 0x3c3   : > { %2951 = vmatprep.subr.bf16.mxu1 %v6118_v49  ;;  %v908_v49 = vand.u32 127, %v905_v47 }
 0x3c6   : > { %2952 = vmatpush1.bf16.msra.mxu1 %v6116_v50  ;;  %v5016_v50 = vadd.s32 4294967295, %v7468_v48 }
 0x3c7   : > { %2953 = vmatprep.subr.bf16.mxu1 %v6121_v52 }
 0x3c8   : > { %vm910_vm3 = vcmp.eq.s32.totalorder %v908_v49, %v5016_v50 }
 0x3ca   : > { %2954 = vmatpush1.bf16.msra.mxu1 %v6119_v29 }
 0x3cb   : > { %2955 = vmatprep.subr.bf16.mxu1 %v6124_v54 }
 0x3ce   : > { %2956 = vmatpush1.bf16.msra.mxu1 %v6122_v55 }
 0x3cf   : > { %2957 = vmatprep.subr.bf16.mxu1 %v6127_v56  ;;  %v7472_v56 = vsel %vm910_vm3, 1.0, %v6943_v0 }
 0x3d2   : > { %2958 = vmatpush1.bf16.msra.mxu1 %v6125_v57 }
 0x3d3   : > { %2959 = vmatprep.subr.bf16.mxu1 %v6130_v59 }
 0x3d6   : > { %2960 = vmatpush1.bf16.msra.mxu1 %v6128_v60 }
 0x3d7   : > { %2961 = vmatprep.subr.bf16.mxu1 %v6133_v61  ;;  %v913_v61 = vadd.s32 1, %v7468_v48 }
 0x3d9   : > { %vm914_vm5 = vcmp.eq.s32.totalorder %v908_v49, %v913_v61  ;;  %v6248_v61 = vld [vmem:[#allocation14 + $0x200] ss:$8 sps:$4 sm:$0xff]  }
 0x3da   : > { %2962 = vmatpush1.bf16.msra.mxu1 %v6131_v62 }
 0x3db   : > { %2963 = vmatprep.subr.bf16.mxu1 %v6136_v63  ;;  %v6202_v63 = vld [vmem:[#allocation14 + $0x4] ss:$8 sps:$4 sm:$0xff]  }
 0x3de   : > { %2964 = vmatpush1.bf16.msra.mxu1 %v6134_v1 }
 0x3df   : > { %2965 = vmatprep.subr.bf16.mxu1 %v6139_v2  ;;  %v7479_v2 = vsel %vm914_vm5, 1.0, %v6943_v0 }
 0x3e2   : > { %2966 = vmatpush1.bf16.msra.mxu1 %v6137_v3  ;;  %v6200_v3 = vld [vmem:[#allocation14] ss:$8 sps:$4 sm:$0xff]  }
 0x3e3   : > { %2967 = vmatprep.subr.bf16.mxu1 %v6142_v4 }
 0x3e6   : > { %2968 = vmatpush1.bf16.msra.mxu1 %v6140_v5  ;;  %v6205_v5 = vld [vmem:[#allocation14 + $0x14] ss:$8 sps:$4 sm:$0xff]  }
 0x3e7   : > { %2969 = vmatprep.subr.bf16.mxu1 %v6145_v7 }
 0x3ea   : > { %2970 = vmatpush1.bf16.msra.mxu1 %v6143_v8  ;;  %v6203_v8 = vld [vmem:[#allocation14 + $0x10] ss:$8 sps:$4 sm:$0xff]  }
 0x3eb   : > { %2971 = vmatprep.subr.bf16.mxu1 %v6148_v9  ;;  %v6208_v9 = vld [vmem:[#allocation14 + $0x24] ss:$8 sps:$4 sm:$0xff]  }
 0x3ee   : > { %2972 = vmatpush1.bf16.msra.mxu1 %v6146_v10  ;;  %v6206_v10 = vld [vmem:[#allocation14 + $0x20] ss:$8 sps:$4 sm:$0xff]  }
 0x3ef   : > { %2973 = vmatprep.subr.bf16.mxu1 %v6151_v11  ;;  %v6211_v11 = vld [vmem:[#allocation14 + $0x34] ss:$8 sps:$4 sm:$0xff]  }
 0x3f2   : > { %2974 = vmatpush1.bf16.msra.mxu1 %v6149_v12  ;;  %v6209_v12 = vld [vmem:[#allocation14 + $0x30] ss:$8 sps:$4 sm:$0xff]  }
 0x3f3   : > { %2984 = vmatprep.subr.bf16.mxu1 %v6154_v13  ;;  %v6214_v13 = vld [vmem:[#allocation14 + $0x44] ss:$8 sps:$4 sm:$0xff]  }
 0x3f5   : > { %2976 = vmatmul.mubr.bf16.vlgmr.msra.gmra.mrb[4].mxu1 %v7440_v58  ;;  %v6167_v58 = vld [vmem:[#allocation10 + $0x550] ss:$8 sps:$4 sm:$0xff]  }
 0x3f6   : > { %2985 = vmatpush1.bf16.msra.mxu1 %v6152_v14  ;;  %3016 = vmatprep.mubr.bf16.mxu1 %v7451_v31  ;;  %v6170_v31 = vld [vmem:[#allocation10 + $0x560] ss:$8 sps:$4 sm:$0xff]  }
 0x3f7   : > { %2986 = vmatprep.subr.bf16.mxu1 %v6157_v15  ;;  %v6212_v14 = vld [vmem:[#allocation14 + $0x40] ss:$8 sps:$4 sm:$0xff]   ;;  %v6217_v15 = vld [vmem:[#allocation14 + $0x54] ss:$8 sps:$4 sm:$0xff]  }
 0x3fa   : > { %2987 = vmatpush1.bf16.msra.mxu1 %v6155_v16  ;;  %v6215_v16 = vld [vmem:[#allocation14 + $0x50] ss:$8 sps:$4 sm:$0xff]  }
 0x3fb   : > { %2988 = vmatprep.subr.bf16.mxu1 %v6160_v28  ;;  %v6220_v28 = vld [vmem:[#allocation14 + $0x64] ss:$8 sps:$4 sm:$0xff]  }
 0x3fe   : > { %2989 = vmatpush1.bf16.msra.mxu1 %v6158_v17 }
 0x3ff   : > { %2990 = vmatprep.subr.bf16.mxu1 %v6163_v18 }
 0x402   : > { %2991 = vmatpush1.bf16.msra.mxu1 %v6161_v19 }
 0x403   : > { %2992 = vmatprep.subr.bf16.mxu1 %v6166_v20 }
 0x406   : > { %2993 = vmatpush1.bf16.msra.mxu1 %v6164_v21  ;;  %v6218_v21 = vld [vmem:[#allocation14 + $0x60] ss:$8 sps:$4 sm:$0xff]  }
 0x407   : > { %2994 = vmatprep.subr.bf16.mxu1 %v6169_v23  ;;  %v6223_v23 = vld [vmem:[#allocation14 + $0x74] ss:$8 sps:$4 sm:$0xff]  }
 0x40a   : > { %2995 = vmatpush1.bf16.msra.mxu1 %v6167_v58  ;;  %v6221_v58 = vld [vmem:[#allocation14 + $0x70] ss:$8 sps:$4 sm:$0xff]  }
 0x40b   : > { %2996 = vmatprep.subr.bf16.mxu1 %v6172_v24  ;;  %v6226_v24 = vld [vmem:[#allocation14 + $0x84] ss:$8 sps:$4 sm:$0xff]  }
 0x40e   : > { %2997 = vmatpush1.bf16.msra.mxu1 %v6170_v31  ;;  %v6224_v31 = vld [vmem:[#allocation14 + $0x80] ss:$8 sps:$4 sm:$0xff]  }
 0x40f   : > { %2998 = vmatprep.subr.bf16.mxu1 %v6175_v26  ;;  %v6229_v26 = vld [vmem:[#allocation14 + $0x94] ss:$8 sps:$4 sm:$0xff]  }
 0x412   : > { %2999 = vmatpush1.bf16.msra.mxu1 %v6173_v27  ;;  %v6227_v27 = vld [vmem:[#allocation14 + $0x90] ss:$8 sps:$4 sm:$0xff]  }
 0x413   : > { %3000 = vmatprep.subr.bf16.mxu1 %v6178_v30  ;;  %v6232_v30 = vld [vmem:[#allocation14 + $0xa4] ss:$8 sps:$4 sm:$0xff]  }
 0x416   : > { %3001 = vmatpush1.bf16.msra.mxu1 %v6176_v32  ;;  %v6230_v32 = vld [vmem:[#allocation14 + $0xa0] ss:$8 sps:$4 sm:$0xff]  }
 0x417   : > { %3002 = vmatprep.subr.bf16.mxu1 %v6181_v33  ;;  %v6235_v33 = vld [vmem:[#allocation14 + $0xb4] ss:$8 sps:$4 sm:$0xff]  }
 0x41a   : > { %3003 = vmatpush1.bf16.msra.mxu1 %v6179_v34  ;;  %v6233_v34 = vld [vmem:[#allocation14 + $0xb0] ss:$8 sps:$4 sm:$0xff]  }
 0x41b   : > { %3004 = vmatprep.subr.bf16.mxu1 %v6184_v35  ;;  %v6238_v35 = vld [vmem:[#allocation14 + $0xc4] ss:$8 sps:$4 sm:$0xff]  }
 0x41e   : > { %3005 = vmatpush1.bf16.msra.mxu1 %v6182_v36  ;;  %v6236_v36 = vld [vmem:[#allocation14 + $0xc0] ss:$8 sps:$4 sm:$0xff]  }
 0x41f   : > { %3006 = vmatprep.subr.bf16.mxu1 %v6187_v37  ;;  %v6241_v37 = vld [vmem:[#allocation14 + $0xd4] ss:$8 sps:$4 sm:$0xff]  }
 0x422   : > { %3007 = vmatpush1.bf16.msra.mxu1 %v6185_v38  ;;  %v6239_v38 = vld [vmem:[#allocation14 + $0xd0] ss:$8 sps:$4 sm:$0xff]  }
 0x423   : > { %3008 = vmatprep.subr.bf16.mxu1 %v6190_v39  ;;  %v6244_v39 = vld [vmem:[#allocation14 + $0xe4] ss:$8 sps:$4 sm:$0xff]  }
 0x426   : > { %3009 = vmatpush1.bf16.msra.mxu1 %v6188_v40  ;;  %v6242_v40 = vld [vmem:[#allocation14 + $0xe0] ss:$8 sps:$4 sm:$0xff]  }
 0x427   : > { %3010 = vmatprep.subr.bf16.mxu1 %v6193_v41  ;;  %v6247_v41 = vld [vmem:[#allocation14 + $0xf4] ss:$8 sps:$4 sm:$0xff]  }
 0x42a   : > { %3011 = vmatpush1.bf16.msra.mxu1 %v6191_v42  ;;  %v6245_v42 = vld [vmem:[#allocation14 + $0xf0] ss:$8 sps:$4 sm:$0xff]  }
 0x42b   : > { %3012 = vmatprep.subr.bf16.mxu1 %v6196_v43  ;;  %v6250_v43 = vld [vmem:[#allocation14 + $0x204] ss:$8 sps:$4 sm:$0xff]  }
 0x42e   : > { %3013 = vmatpush1.bf16.msra.mxu1 %v6194_v44  ;;  %v7484_v44 = vsub.s32 0, %v7468_v48 }
 0x42f   : > { %3014 = vmatprep.subr.bf16.mxu1 %v6199_v45  ;;  %v3178_v45 = vld [vmem:[#allocation13] sm:$0x3] }
 0x430   : > { %v3183_v47 = vrot.slane %v3178_v45, %v7484_v44 }
 0x432   : > { %3015 = vmatpush1.bf16.msra.mxu1 %v6197_v46  ;;  %v7487_v46 = vsub.s32 1, %v7468_v48  ;;  %v6251_v48 = vld [vmem:[#allocation14 + $0x210] ss:$8 sps:$4 sm:$0xff]  }
 0x434   : > { %v3187_v50 = vrot.slane %v3178_v45, %v7487_v46  ;;  %v6311_v45 = vld [vmem:[#allocation14 + $0x150] ss:$8 sps:$4 sm:$0xff]  }
 0x435   : > { %3017 = vmatmul.mubr.bf16.vlgmr.msra.gmra.mrb[4].mxu1 %v7456_v6 }
 0x436   : > { %3760 = vmatprep.mubr.f32.mxu1 %v6943_v0 }
 0x448   : > { %v1616_v52 = vpop.f32.mrb[0].mxu1  ;;  %v2317_v29 = vpop.f32.mrb[8].mxu0 }
 0x449   : > { %v1618_v54 = vpop.f32.mrb[1].mxu1  ;;  %v2319_v55 = vpop.f32.mrb[9].mxu0 }
 0x44a   : > { %v1620_v57 = vpop.f32.mrb[2].mxu1  ;;  %v2321_v59 = vpop.f32.mrb[10].mxu0  ;;  %3029 = vmatprep.subr.mxu0 %v1618_v54 }
 0x44b   : > { %v1621_v6 = vpop.f32.mrb[3].mxu1  ;;  %v2322_v60 = vpop.f32.mrb[11].mxu0  ;;  %3030 = vmatpush1.msra.mxu0 %v1616_v52 }
 0x44c   : > { %5309 = vmatmul.mubr.msk.f32.vlgmr.msra.gmra.mrb[6].mxu0 %vm3025_vm4, %v7472_v56 }
 0x44d   : > { %3169 = vmatprep.mubr.f32.mxu0 %v6943_v0 }
 0x508   : > { %v3018_v62 = vpop.f32.mrb[4].mxu1 }
 0x509   : > { %v3020_v1 = vpop.f32.mrb[5].mxu1 }
 0x50a   : > { %v3022_v4 = vpop.f32.mrb[6].mxu1  ;;  %3105 = vmatprep.subr.mxu0 %v3020_v1  ;;  %v6256_v1 = vld [vmem:[#allocation14 + $0x224] ss:$8 sps:$4 sm:$0xff]  }
 0x50b   : > { %v3023_v7 = vpop.f32.mrb[7].mxu1  ;;  %3106 = vmatpush1.msra.mxu0 %v3018_v62  ;;  %v6259_v4 = vld [vmem:[#allocation14 + $0x234] ss:$8 sps:$4 sm:$0xff]  }
 0x50c   : > { %5310 = vmatmul.mubr.msk.f32.vlgmr.msra.gmra.mrb[12].mxu0 %vm3025_vm4, %v7479_v2  ;;  %3388 = vmatprep.subr.bf16.mxu0 %v6202_v63  ;;  %v6253_v63 = vld [vmem:[#allocation14 + $0x214] ss:$8 sps:$4 sm:$0xff]   ;;  %v6262_v7 = vld [vmem:[#allocation14 + $0x244] ss:$8 sps:$4 sm:$0xff]  }
 0x50d   : > { %3389 = vmatpush1.bf16.msra.mxu0 %v6200_v3  ;;  %v6254_v3 = vld [vmem:[#allocation14 + $0x220] ss:$8 sps:$4 sm:$0xff]  }
 0x50e   : > { %3390 = vmatprep.subr.bf16.mxu0 %v6205_v5  ;;  %v6257_v5 = vld [vmem:[#allocation14 + $0x230] ss:$8 sps:$4 sm:$0xff]  }
 0x511   : > { %3391 = vmatpush1.bf16.msra.mxu0 %v6203_v8  ;;  %v6260_v8 = vld [vmem:[#allocation14 + $0x240] ss:$8 sps:$4 sm:$0xff]  }
 0x512   : > { %3392 = vmatprep.subr.bf16.mxu0 %v6208_v9  ;;  %v6265_v9 = vld [vmem:[#allocation14 + $0x254] ss:$8 sps:$4 sm:$0xff]  }
 0x515   : > { %3393 = vmatpush1.bf16.msra.mxu0 %v6206_v10  ;;  %v6263_v10 = vld [vmem:[#allocation14 + $0x250] ss:$8 sps:$4 sm:$0xff]  }
 0x516   : > { %3394 = vmatprep.subr.bf16.mxu0 %v6211_v11  ;;  %v6268_v11 = vld [vmem:[#allocation14 + $0x264] ss:$8 sps:$4 sm:$0xff]  }
 0x519   : > { %3395 = vmatpush1.bf16.msra.mxu0 %v6209_v12  ;;  %v6266_v12 = vld [vmem:[#allocation14 + $0x260] ss:$8 sps:$4 sm:$0xff]  }
 0x51a   : > { %3396 = vmatprep.subr.bf16.mxu0 %v6214_v13  ;;  %v6271_v13 = vld [vmem:[#allocation14 + $0x274] ss:$8 sps:$4 sm:$0xff]  }
 0x51d   : > { %3397 = vmatpush1.bf16.msra.mxu0 %v6212_v14  ;;  %v6269_v14 = vld [vmem:[#allocation14 + $0x270] ss:$8 sps:$4 sm:$0xff]  }
 0x51e   : > { %3398 = vmatprep.subr.bf16.mxu0 %v6217_v15  ;;  %v6274_v15 = vld [vmem:[#allocation14 + $0x284] ss:$8 sps:$4 sm:$0xff]  }
 0x51f   : > { %v3095_v17 = vpop.f32.mrb[6].mxu0 }
 0x520   : > { %v3100_v18 = vadd.f32 %v3095_v17, %v2317_v29  ;;  %v3097_v19 = vpop.f32.mrb[7].mxu0  ;;  %v6275_v17 = vld [vmem:[#allocation14 + $0x290] ss:$8 sps:$4 sm:$0xff]  }
 0x521   : > { %v3101_v20 = vadd.f32 %v3097_v19, %v2319_v55  ;;  %3399 = vmatpush1.bf16.msra.mxu0 %v6215_v16  ;;  %v6272_v16 = vld [vmem:[#allocation14 + $0x280] ss:$8 sps:$4 sm:$0xff]  }
 0x522   : > { %3400 = vmatprep.subr.bf16.mxu0 %v6220_v28  ;;  %v6277_v28 = vld [vmem:[#allocation14 + $0x294] ss:$8 sps:$4 sm:$0xff]   ;;  %v6278_v19 = vld [vmem:[#allocation14 + $0x2a0] ss:$8 sps:$4 sm:$0xff]  }
 0x525   : > { %3401 = vmatpush1.bf16.msra.mxu0 %v6218_v21  ;;  %v6281_v21 = vld [vmem:[#allocation14 + $0x2b0] ss:$8 sps:$4 sm:$0xff]  }
 0x526   : > { %3402 = vmatprep.subr.bf16.mxu0 %v6223_v23  ;;  %v6286_v23 = vld [vmem:[#allocation14 + $0x2c4] ss:$8 sps:$4 sm:$0xff]  }
 0x529   : > { %3403 = vmatpush1.bf16.msra.mxu0 %v6221_v58  ;;  %v6284_v58 = vld [vmem:[#allocation14 + $0x2c0] ss:$8 sps:$4 sm:$0xff]  }
 0x52a   : > { %3404 = vmatprep.subr.bf16.mxu0 %v6226_v24  ;;  %v6289_v24 = vld [vmem:[#allocation14 + $0x2d4] ss:$8 sps:$4 sm:$0xff]  }
 0x52d   : > { %3405 = vmatpush1.bf16.msra.mxu0 %v6224_v31  ;;  %v6287_v31 = vld [vmem:[#allocation14 + $0x2d0] ss:$8 sps:$4 sm:$0xff]  }
 0x52e   : > { %3406 = vmatprep.subr.bf16.mxu0 %v6229_v26  ;;  %v6292_v26 = vld [vmem:[#allocation14 + $0x2e4] ss:$8 sps:$4 sm:$0xff]  }
 0x531   : > { %3407 = vmatpush1.bf16.msra.mxu0 %v6227_v27  ;;  %v6290_v27 = vld [vmem:[#allocation14 + $0x2e0] ss:$8 sps:$4 sm:$0xff]  }
 0x532   : > { %3408 = vmatprep.subr.bf16.mxu0 %v6232_v30  ;;  %v6295_v30 = vld [vmem:[#allocation14 + $0x2f4] ss:$8 sps:$4 sm:$0xff]  }
 0x535   : > { %3409 = vmatpush1.bf16.msra.mxu0 %v6230_v32  ;;  %v6293_v32 = vld [vmem:[#allocation14 + $0x2f0] ss:$8 sps:$4 sm:$0xff]  }
 0x536   : > { %3410 = vmatprep.subr.bf16.mxu0 %v6235_v33  ;;  %v6298_v33 = vld [vmem:[#allocation14 + $0x104] ss:$8 sps:$4 sm:$0xff]  }
 0x539   : > { %3411 = vmatpush1.bf16.msra.mxu0 %v6233_v34  ;;  %v6296_v34 = vld [vmem:[#allocation14 + $0x100] ss:$8 sps:$4 sm:$0xff]  }
 0x53a   : > { %3412 = vmatprep.subr.bf16.mxu0 %v6238_v35  ;;  %v6301_v35 = vld [vmem:[#allocation14 + $0x114] ss:$8 sps:$4 sm:$0xff]  }
 0x53d   : > { %3413 = vmatpush1.bf16.msra.mxu0 %v6236_v36  ;;  %v6299_v36 = vld [vmem:[#allocation14 + $0x110] ss:$8 sps:$4 sm:$0xff]  }
 0x53e   : > { %3414 = vmatprep.subr.bf16.mxu0 %v6241_v37  ;;  %v6304_v37 = vld [vmem:[#allocation14 + $0x124] ss:$8 sps:$4 sm:$0xff]  }
 0x541   : > { %3415 = vmatpush1.bf16.msra.mxu0 %v6239_v38  ;;  %v6302_v38 = vld [vmem:[#allocation14 + $0x120] ss:$8 sps:$4 sm:$0xff]  }
 0x542   : > { %3416 = vmatprep.subr.bf16.mxu0 %v6244_v39  ;;  %v6307_v39 = vld [vmem:[#allocation14 + $0x134] ss:$8 sps:$4 sm:$0xff]  }
 0x545   : > { %3417 = vmatpush1.bf16.msra.mxu0 %v6242_v40  ;;  %v6305_v40 = vld [vmem:[#allocation14 + $0x130] ss:$8 sps:$4 sm:$0xff]  }
 0x546   : > { %3418 = vmatprep.subr.bf16.mxu0 %v6247_v41  ;;  %v6310_v41 = vld [vmem:[#allocation14 + $0x144] ss:$8 sps:$4 sm:$0xff]  }
 0x549   : > { %3419 = vmatpush1.bf16.msra.mxu0 %v6245_v42  ;;  %v6308_v42 = vld [vmem:[#allocation14 + $0x140] ss:$8 sps:$4 sm:$0xff]  }
 0x54a   : > { %3655 = vmatprep.subr.bf16.mxu0 %v6250_v43  ;;  %v6313_v43 = vld [vmem:[#allocation14 + $0x154] ss:$8 sps:$4 sm:$0xff]  }
 0x5df   : > { %v3171_v49 = vpop.f32.mrb[12].mxu0 }
 0x5e0   : > { %v3176_v52 = vadd.f32 %v3171_v49, %v3100_v18  ;;  %v3173_v29 = vpop.f32.mrb[13].mxu0  ;;  %v6280_v18 = vld [vmem:[#allocation14 + $0x2a4] ss:$8 sps:$4 sm:$0xff]   ;;  %v6314_v49 = vld [vmem:[#allocation14 + $0x160] ss:$8 sps:$4 sm:$0xff]  }
 0x5e1   : > { %v3177_v54 = vadd.f32 %v3173_v29, %v3101_v20  ;;  %v6283_v20 = vld [vmem:[#allocation14 + $0x2b4] ss:$8 sps:$4 sm:$0xff]   ;;  %v6322_v29 = vld [vmem:[#allocation14 + $0x184] ss:$8 sps:$4 sm:$0xff]  }
 0x5e2   : > { %v3190_v55 = vadd.f32 %v3183_v47, %v3176_v52  ;;  %v6316_v47 = vld [vmem:[#allocation14 + $0x164] ss:$8 sps:$4 sm:$0xff]   ;;  %v6317_v52 = vld [vmem:[#allocation14 + $0x170] ss:$8 sps:$4 sm:$0xff]  }
 0x5e3   : > { %v3191_v57 = vadd.f32 %v3187_v50, %v3177_v54  ;;  %v6319_v50 = vld [vmem:[#allocation14 + $0x174] ss:$8 sps:$4 sm:$0xff]   ;;  %v6320_v54 = vld [vmem:[#allocation14 + $0x180] ss:$8 sps:$4 sm:$0xff]  }
 0x5e4   : > { %v3192_v59 = vmax.f32 %v3190_v55, 0.0  ;;  %v6325_v55 = vld [vmem:[#allocation14 + $0x194] ss:$8 sps:$4 sm:$0xff]  }
 0x5e5   : > { %v3193_v6 = vmax.f32 %v3191_v57, 0.0  ;;  %v6323_v57 = vld [vmem:[#allocation14 + $0x190] ss:$8 sps:$4 sm:$0xff]  }
 0x5e6   : > { %v7493_v62 = vpack.c.bf16 %v3192_v59, %v3192_v59  ;;  %v6328_v59 = vld [vmem:[#allocation14 + $0x1a4] ss:$8 sps:$4 sm:$0xff]  }
 0x5e7   : > { %v7491_v60 = vpack.c.bf16 %v3193_v6, %v3193_v6  ;;  %v6326_v6 = vld [vmem:[#allocation14 + $0x1a0] ss:$8 sps:$4 sm:$0xff]  }
 0x5e9   : > { %3420 = vmatprep.mubr.bf16.mxu0 %v7491_v60 }
 0x5ea   : > { %3421 = vmatmul.mubr.bf16.vlgmr.msra.gmra.mrb[16].mxu0 %v7493_v62 }
 0x5eb   : > { %3656 = vmatpush1.bf16.msra.mxu0 %v6248_v61  ;;  %3687 = vmatprep.mubr.bf16.mxu0 %v7491_v60  ;;  %v6329_v61 = vld [vmem:[#allocation14 + $0x1b0] ss:$8 sps:$4 sm:$0xff]  }
 0x5ec   : > { %3657 = vmatprep.subr.bf16.mxu0 %v6253_v63  ;;  %v6334_v63 = vld [vmem:[#allocation14 + $0x1c4] ss:$8 sps:$4 sm:$0xff]  }
 0x5ef   : > { %3658 = vmatpush1.bf16.msra.mxu0 %v6251_v48  ;;  %v6332_v48 = vld [vmem:[#allocation14 + $0x1c0] ss:$8 sps:$4 sm:$0xff]  }
 0x5f0   : > { %3659 = vmatprep.subr.bf16.mxu0 %v6256_v1  ;;  %v6337_v1 = vld [vmem:[#allocation14 + $0x1d4] ss:$8 sps:$4 sm:$0xff]  }
 0x5f3   : > { %3660 = vmatpush1.bf16.msra.mxu0 %v6254_v3  ;;  %v6335_v3 = vld [vmem:[#allocation14 + $0x1d0] ss:$8 sps:$4 sm:$0xff]  }
 0x5f4   : > { %3661 = vmatprep.subr.bf16.mxu0 %v6259_v4  ;;  %v6340_v4 = vld [vmem:[#allocation14 + $0x1e4] ss:$8 sps:$4 sm:$0xff]  }
 0x5f7   : > { %3662 = vmatpush1.bf16.msra.mxu0 %v6257_v5  ;;  %v6338_v5 = vld [vmem:[#allocation14 + $0x1e0] ss:$8 sps:$4 sm:$0xff]  }
 0x5f8   : > { %3663 = vmatprep.subr.bf16.mxu0 %v6262_v7  ;;  %v6343_v7 = vld [vmem:[#allocation14 + $0x1f4] ss:$8 sps:$4 sm:$0xff]  }
 0x5fb   : > { %3664 = vmatpush1.bf16.msra.mxu0 %v6260_v8  ;;  %v6341_v8 = vld [vmem:[#allocation14 + $0x1f0] ss:$8 sps:$4 sm:$0xff]  }
 0x5fc   : > { %3665 = vmatprep.subr.bf16.mxu0 %v6265_v9  ;;  %v6346_v9 = vld [vmem:[#allocation17 + $0x4] ss:$8 sps:$4 sm:$0xff]  }
 0x5ff   : > { %3666 = vmatpush1.bf16.msra.mxu0 %v6263_v10  ;;  %v6344_v10 = vld [vmem:[#allocation17] ss:$8 sps:$4 sm:$0xff]  }
 0x600   : > { %3667 = vmatprep.subr.bf16.mxu0 %v6268_v11  ;;  %v6349_v11 = vld [vmem:[#allocation17 + $0x14] ss:$8 sps:$4 sm:$0xff]  }
 0x603   : > { %3668 = vmatpush1.bf16.msra.mxu0 %v6266_v12  ;;  %v893_v12 = vpack.c.bf16 %v7435_v53, %v7435_v53  ;;  %v6359_v53 = vld [vmem:[#allocation17 + $0x50] ss:$8 sps:$4 sm:$0xff]  }
 0x604   : > { %3669 = vmatprep.subr.bf16.mxu0 %v6271_v13  ;;  %v6347_v13 = vld [vmem:[#allocation17 + $0x10] ss:$8 sps:$4 sm:$0xff]  }
 0x607   : > { %3670 = vmatpush1.bf16.msra.mxu0 %v6269_v14  ;;  %v6352_v14 = vld [vmem:[#allocation17 + $0x24] ss:$8 sps:$4 sm:$0xff]  }
 0x608   : > { %3671 = vmatprep.subr.bf16.mxu0 %v6274_v15  ;;  %v6350_v15 = vld [vmem:[#allocation17 + $0x20] ss:$8 sps:$4 sm:$0xff]  }
 0x60b   : > { %3672 = vmatpush1.bf16.msra.mxu0 %v6272_v16  ;;  %v6355_v16 = vld [vmem:[#allocation17 + $0x34] ss:$8 sps:$4 sm:$0xff]  }
 0x60c   : > { %3673 = vmatprep.subr.bf16.mxu0 %v6277_v28  ;;  %v6353_v28 = vld [vmem:[#allocation17 + $0x30] ss:$8 sps:$4 sm:$0xff]  }
 0x60f   : > { %3674 = vmatpush1.bf16.msra.mxu0 %v6275_v17  ;;  %v6358_v17 = vld [vmem:[#allocation17 + $0x44] ss:$8 sps:$4 sm:$0xff]  }
 0x610   : > { %3675 = vmatprep.subr.bf16.mxu0 %v6280_v18  ;;  %v6356_v18 = vld [vmem:[#allocation17 + $0x40] ss:$8 sps:$4 sm:$0xff]  }
 0x613   : > { %3676 = vmatpush1.bf16.msra.mxu0 %v6278_v19  ;;  %v6361_v19 = vld [vmem:[#allocation17 + $0x54] ss:$8 sps:$4 sm:$0xff]  }
 0x614   : > { %3677 = vmatprep.subr.bf16.mxu0 %v6283_v20  ;;  %v6362_v20 = vld [vmem:[#allocation17 + $0x60] ss:$8 sps:$4 sm:$0xff]  }
 0x617   : > { %3678 = vmatpush1.bf16.msra.mxu0 %v6281_v21  ;;  %v6367_v21 = vld [vmem:[#allocation17 + $0x74] ss:$8 sps:$4 sm:$0xff]  }
 0x618   : > { %3679 = vmatprep.subr.bf16.mxu0 %v6286_v23  ;;  %v6365_v23 = vld [vmem:[#allocation17 + $0x70] ss:$8 sps:$4 sm:$0xff]  }
 0x61b   : > { %3680 = vmatpush1.bf16.msra.mxu0 %v6284_v58  ;;  %v6370_v58 = vld [vmem:[#allocation17 + $0x84] ss:$8 sps:$4 sm:$0xff]  }
 0x61c   : > { %3681 = vmatprep.subr.bf16.mxu0 %v6289_v24  ;;  %v6368_v24 = vld [vmem:[#allocation17 + $0x80] ss:$8 sps:$4 sm:$0xff]  }
 0x61f   : > { %3682 = vmatpush1.bf16.msra.mxu0 %v6287_v31  ;;  %v6373_v31 = vld [vmem:[#allocation17 + $0x94] ss:$8 sps:$4 sm:$0xff]  }
 0x620   : > { %3683 = vmatprep.subr.bf16.mxu0 %v6292_v26  ;;  %v6371_v26 = vld [vmem:[#allocation17 + $0x90] ss:$8 sps:$4 sm:$0xff]  }
 0x623   : > { %3684 = vmatpush1.bf16.msra.mxu0 %v6290_v27  ;;  %v6376_v27 = vld [vmem:[#allocation17 + $0xa4] ss:$8 sps:$4 sm:$0xff]  }
 0x624   : > { %3685 = vmatprep.subr.bf16.mxu0 %v6295_v30  ;;  %v6374_v30 = vld [vmem:[#allocation17 + $0xa0] ss:$8 sps:$4 sm:$0xff]  }
 0x627   : > { %3686 = vmatpush1.bf16.msra.mxu0 %v6293_v32  ;;  %v6379_v32 = vld [vmem:[#allocation17 + $0xb4] ss:$8 sps:$4 sm:$0xff]  }
 0x628   : > { %3927 = vmatprep.subr.bf16.mxu0 %v6298_v33  ;;  %v6377_v33 = vld [vmem:[#allocation17 + $0xb0] ss:$8 sps:$4 sm:$0xff]  }
 0x62a   : > { %3688 = vmatmul.mubr.bf16.vlgmr.msra.gmra.mrb[20].mxu0 %v7493_v62 }
 0x62b   : > { %3928 = vmatpush1.bf16.msra.mxu0 %v6296_v34  ;;  %3959 = vmatprep.mubr.bf16.mxu0 %v7491_v60  ;;  %v6331_v60 = vld [vmem:[#allocation14 + $0x1b4] ss:$8 sps:$4 sm:$0xff]   ;;  %v6382_v34 = vld [vmem:[#allocation17 + $0xc4] ss:$8 sps:$4 sm:$0xff]  }
 0x62c   : > { %3929 = vmatprep.subr.bf16.mxu0 %v6301_v35  ;;  %v6380_v35 = vld [vmem:[#allocation17 + $0xc0] ss:$8 sps:$4 sm:$0xff]  }
 0x62f   : > { %3930 = vmatpush1.bf16.msra.mxu0 %v6299_v36  ;;  %v6385_v36 = vld [vmem:[#allocation17 + $0xd4] ss:$8 sps:$4 sm:$0xff]  }
 0x630   : > { %3931 = vmatprep.subr.bf16.mxu0 %v6304_v37  ;;  %v6383_v37 = vld [vmem:[#allocation17 + $0xd0] ss:$8 sps:$4 sm:$0xff]  }
 0x633   : > { %3932 = vmatpush1.bf16.msra.mxu0 %v6302_v38  ;;  %v6388_v38 = vld [vmem:[#allocation17 + $0xe4] ss:$8 sps:$4 sm:$0xff]  }
 0x634   : > { %3933 = vmatprep.subr.bf16.mxu0 %v6307_v39  ;;  %v6386_v39 = vld [vmem:[#allocation17 + $0xe0] ss:$8 sps:$4 sm:$0xff]  }
 0x637   : > { %3934 = vmatpush1.bf16.msra.mxu0 %v6305_v40  ;;  %v6391_v40 = vld [vmem:[#allocation17 + $0xf4] ss:$8 sps:$4 sm:$0xff]  }
 0x638   : > { %3935 = vmatprep.subr.bf16.mxu0 %v6310_v41  ;;  %v6389_v41 = vld [vmem:[#allocation17 + $0xf0] ss:$8 sps:$4 sm:$0xff]  }
 0x63b   : > { %3936 = vmatpush1.bf16.msra.mxu0 %v6308_v42  ;;  %v892_v42 = vpack.c.bf16 %v7432_v51, %v7432_v51 }
 0x63c   : > { %3937 = vmatprep.subr.bf16.mxu0 %v6313_v43 }
 0x63f   : > { %3938 = vmatpush1.bf16.msra.mxu0 %v6311_v45 }
 0x640   : > { %3939 = vmatprep.subr.bf16.mxu0 %v6316_v47 }
 0x643   : > { %3940 = vmatpush1.bf16.msra.mxu0 %v6314_v49 }
 0x644   : > { %3941 = vmatprep.subr.bf16.mxu0 %v6319_v50 }
 0x647   : > { %3942 = vmatpush1.bf16.msra.mxu0 %v6317_v52  ;;  %v6394_v52 = vld [vmem:[#allocation19 + $0x4] ss:$8 sps:$4 sm:$0xff]  }
 0x648   : > { %3943 = vmatprep.subr.bf16.mxu0 %v6322_v29 }
 0x64b   : > { %3944 = vmatpush1.bf16.msra.mxu0 %v6320_v54  ;;  %v6392_v54 = vld [vmem:[#allocation19] ss:$8 sps:$4 sm:$0xff]  }
 0x64c   : > { %3945 = vmatprep.subr.bf16.mxu0 %v6325_v55  ;;  %v7509_v55 = vld [vmem:[%s7385_s4] sm:$0xff] }
 0x64d   : > { %v5410_v51 = vcombine.high %v7509_v55, %v7509_v55 }
 0x64f   : > { %3946 = vmatpush1.bf16.msra.mxu0 %v6323_v57 }
 0x650   : > { %3947 = vmatprep.subr.bf16.mxu0 %v6328_v59  ;;  %v6397_v59 = vld [vmem:[#allocation19 + $0x14] ss:$8 sps:$4 sm:$0xff]  }
 0x653   : > { %3948 = vmatpush1.bf16.msra.mxu0 %v6326_v6 }
 0x654   : > { %3949 = vmatprep.subr.bf16.mxu0 %v6331_v60  ;;  %v6398_v60 = vld [vmem:[#allocation19 + $0x20] ss:$8 sps:$4 sm:$0xff]  }
 0x657   : > { %3950 = vmatpush1.bf16.msra.mxu0 %v6329_v61  ;;  %v6403_v61 = vld [vmem:[#allocation19 + $0x34] ss:$8 sps:$4 sm:$0xff]  }
 0x658   : > { %3951 = vmatprep.subr.bf16.mxu0 %v6334_v63  ;;  %v6401_v63 = vld [vmem:[#allocation19 + $0x30] ss:$8 sps:$4 sm:$0xff]  }
 0x65b   : > { %3952 = vmatpush1.bf16.msra.mxu0 %v6332_v48  ;;  %v6406_v48 = vld [vmem:[#allocation19 + $0x44] ss:$8 sps:$4 sm:$0xff]  }
 0x65c   : > { %3953 = vmatprep.subr.bf16.mxu0 %v6337_v1  ;;  %v6404_v1 = vld [vmem:[#allocation19 + $0x40] ss:$8 sps:$4 sm:$0xff]  }
 0x65f   : > { %3954 = vmatpush1.bf16.msra.mxu0 %v6335_v3  ;;  %v6409_v3 = vld [vmem:[#allocation19 + $0x54] ss:$8 sps:$4 sm:$0xff]  }
 0x660   : > { %3955 = vmatprep.subr.bf16.mxu0 %v6340_v4  ;;  %v6412_v4 = vld [vmem:[#allocation19 + $0x64] ss:$8 sps:$4 sm:$0xff]  }
 0x663   : > { %3956 = vmatpush1.bf16.msra.mxu0 %v6338_v5  ;;  %v6410_v5 = vld [vmem:[#allocation19 + $0x60] ss:$8 sps:$4 sm:$0xff]  }
 0x664   : > { %3957 = vmatprep.subr.bf16.mxu0 %v6343_v7  ;;  %v6415_v7 = vld [vmem:[#allocation19 + $0x74] ss:$8 sps:$4 sm:$0xff]  }
 0x667   : > { %3958 = vmatpush1.bf16.msra.mxu0 %v6341_v8  ;;  %v6413_v8 = vld [vmem:[#allocation19 + $0x70] ss:$8 sps:$4 sm:$0xff]  }
 0x668   : > { %4679 = vmatprep.subr.bf16.mxu0 %v6346_v9  ;;  %v6418_v9 = vld [vmem:[#allocation19 + $0x84] ss:$8 sps:$4 sm:$0xff]  }
 0x66a   : > { %3960 = vmatmul.mubr.bf16.vlgmr.msra.gmra.mrb[24].mxu0 %v7493_v62  ;;  %v6364_v62 = vld [vmem:[#allocation17 + $0x64] ss:$8 sps:$4 sm:$0xff]  }
 0x66b   : > { %4680 = vmatpush1.bf16.msra.mxu0 %v6344_v10  ;;  %4711 = vmatprep.mubr.bf16.mxu0 %v893_v12  ;;  %v6416_v10 = vld [vmem:[#allocation19 + $0x80] ss:$8 sps:$4 sm:$0xff]   ;;  %v6419_v12 = vld [vmem:[#allocation19 + $0x90] ss:$8 sps:$4 sm:$0xff]  }
 0x66c   : > { %4681 = vmatprep.subr.bf16.mxu0 %v6349_v11  ;;  %v6421_v11 = vld [vmem:[#allocation19 + $0x94] ss:$8 sps:$4 sm:$0xff]  }
 0x66f   : > { %4682 = vmatpush1.bf16.msra.mxu0 %v6347_v13  ;;  %v6424_v13 = vld [vmem:[#allocation19 + $0xa4] ss:$8 sps:$4 sm:$0xff]  }
 0x670   : > { %4683 = vmatprep.subr.bf16.mxu0 %v6352_v14  ;;  %v6422_v14 = vld [vmem:[#allocation19 + $0xa0] ss:$8 sps:$4 sm:$0xff]  }
 0x673   : > { %4684 = vmatpush1.bf16.msra.mxu0 %v6350_v15  ;;  %v6427_v15 = vld [vmem:[#allocation19 + $0xb4] ss:$8 sps:$4 sm:$0xff]  }
 0x674   : > { %4685 = vmatprep.subr.bf16.mxu0 %v6355_v16  ;;  %v6425_v16 = vld [vmem:[#allocation19 + $0xb0] ss:$8 sps:$4 sm:$0xff]  }
 0x677   : > { %4686 = vmatpush1.bf16.msra.mxu0 %v6353_v28  ;;  %v6430_v28 = vld [vmem:[#allocation19 + $0xc4] ss:$8 sps:$4 sm:$0xff]  }
 0x678   : > { %4687 = vmatprep.subr.bf16.mxu0 %v6358_v17  ;;  %v6428_v17 = vld [vmem:[#allocation19 + $0xc0] ss:$8 sps:$4 sm:$0xff]  }
 0x67b   : > { %4688 = vmatpush1.bf16.msra.mxu0 %v6356_v18  ;;  %v6433_v18 = vld [vmem:[#allocation19 + $0xd4] ss:$8 sps:$4 sm:$0xff]  }
 0x67c   : > { %4689 = vmatprep.subr.bf16.mxu0 %v6361_v19  ;;  %v6431_v19 = vld [vmem:[#allocation19 + $0xd0] ss:$8 sps:$4 sm:$0xff]  }
 0x67f   : > { %4690 = vmatpush1.bf16.msra.mxu0 %v6359_v53  ;;  %v6436_v53 = vld [vmem:[#allocation19 + $0xe4] ss:$8 sps:$4 sm:$0xff]  }
 0x680   : > { %4691 = vmatprep.subr.bf16.mxu0 %v6364_v62  ;;  %v6434_v62 = vld [vmem:[#allocation19 + $0xe0] ss:$8 sps:$4 sm:$0xff]  }
 0x683   : > { %4692 = vmatpush1.bf16.msra.mxu0 %v6362_v20  ;;  %v6439_v20 = vld [vmem:[#allocation19 + $0xf4] ss:$8 sps:$4 sm:$0xff]  }
 0x684   : > { %4693 = vmatprep.subr.bf16.mxu0 %v6367_v21  ;;  %v6437_v21 = vld [vmem:[#allocation19 + $0xf0] ss:$8 sps:$4 sm:$0xff]  }
 0x687   : > { %4694 = vmatpush1.bf16.msra.mxu0 %v6365_v23  ;;  %v6444_v23 = vld [vmem:[#allocation17 + $0x104] ss:$8 sps:$4 sm:$0xff]  }
 0x688   : > { %4695 = vmatprep.subr.bf16.mxu0 %v6370_v58 }
 0x68b   : > { %4696 = vmatpush1.bf16.msra.mxu0 %v6368_v24  ;;  %v5409_v24 = vcombine.low %v7509_v55, %v7509_v55  ;;  %v6472_v55 = vld [vmem:[#allocation17 + $0x1a0] ss:$8 sps:$4 sm:$0xff]  }
 0x68c   : > { %4697 = vmatprep.subr.bf16.mxu0 %v6373_v31 }
 0x68f   : > { %4698 = vmatpush1.bf16.msra.mxu0 %v6371_v26  ;;  %v6442_v26 = vld [vmem:[#allocation17 + $0x100] ss:$8 sps:$4 sm:$0xff]  }
 0x690   : > { %4699 = vmatprep.subr.bf16.mxu0 %v6376_v27 }
 0x693   : > { %4700 = vmatpush1.bf16.msra.mxu0 %v6374_v30  ;;  %v6447_v30 = vld [vmem:[#allocation17 + $0x114] ss:$8 sps:$4 sm:$0xff]  }
 0x694   : > { %4701 = vmatprep.subr.bf16.mxu0 %v6379_v32  ;;  %v895_v32 = vpack.c.bf16 %v7448_v25, %v7448_v25  ;;  %v6457_v25 = vld [vmem:[#allocation17 + $0x150] ss:$8 sps:$4 sm:$0xff]  }
 0x697   : > { %4702 = vmatpush1.bf16.msra.mxu0 %v6377_v33 }
 0x698   : > { %4703 = vmatprep.subr.bf16.mxu0 %v6382_v34  ;;  %v6445_v34 = vld [vmem:[#allocation17 + $0x110] ss:$8 sps:$4 sm:$0xff]  }
 0x69b   : > { %4704 = vmatpush1.bf16.msra.mxu0 %v6380_v35  ;;  %v6450_v35 = vld [vmem:[#allocation17 + $0x124] ss:$8 sps:$4 sm:$0xff]  }
 0x69c   : > { %4705 = vmatprep.subr.bf16.mxu0 %v6385_v36  ;;  %v6448_v36 = vld [vmem:[#allocation17 + $0x120] ss:$8 sps:$4 sm:$0xff]  }
 0x69f   : > { %4706 = vmatpush1.bf16.msra.mxu0 %v6383_v37  ;;  %v6453_v37 = vld [vmem:[#allocation17 + $0x134] ss:$8 sps:$4 sm:$0xff]  }
 0x6a0   : > { %4707 = vmatprep.subr.bf16.mxu0 %v6388_v38  ;;  %v6451_v38 = vld [vmem:[#allocation17 + $0x130] ss:$8 sps:$4 sm:$0xff]  }
 0x6a3   : > { %4708 = vmatpush1.bf16.msra.mxu0 %v6386_v39  ;;  %v6456_v39 = vld [vmem:[#allocation17 + $0x144] ss:$8 sps:$4 sm:$0xff]  }
 0x6a4   : > { %4709 = vmatprep.subr.bf16.mxu0 %v6391_v40  ;;  %v6454_v40 = vld [vmem:[#allocation17 + $0x140] ss:$8 sps:$4 sm:$0xff]  }
 0x6a7   : > { %4710 = vmatpush1.bf16.msra.mxu0 %v6389_v41  ;;  %v6459_v41 = vld [vmem:[#allocation17 + $0x154] ss:$8 sps:$4 sm:$0xff]  }
 0x6aa   : > { %4712 = vmatmul.mubr.bf16.vlgmr.msra.gmra.mrb[28].mxu0 %v892_v42  ;;  %v6462_v42 = vld [vmem:[#allocation17 + $0x164] ss:$8 sps:$4 sm:$0xff]  }
 0x6bd   : > { %v3422_v43 = vpop.f32.mrb[16].mxu0 }
 0x6be   : > { %v3424_v45 = vpop.f32.mrb[17].mxu0 }
 0x6bf   : > { %v3426_v47 = vpop.f32.mrb[18].mxu0  ;;  %3696 = vmatprep.subr.mxu1 %v3424_v45  ;;  %v6465_v45 = vld [vmem:[#allocation17 + $0x174] ss:$8 sps:$4 sm:$0xff]  }
 0x6c0   : > { %v3427_v49 = vpop.f32.mrb[19].mxu0  ;;  %3697 = vmatpush1.msra.mxu1 %v3422_v43  ;;  %v6460_v43 = vld [vmem:[#allocation17 + $0x160] ss:$8 sps:$4 sm:$0xff]   ;;  %v6463_v47 = vld [vmem:[#allocation17 + $0x170] ss:$8 sps:$4 sm:$0xff]  }
 0x6c1   : > { %5375 = vmatmul.mubr.msk.f32.vlgmr.msra.gmra.mrb[8].mxu1 %vm3025_vm4, %v7472_v56  ;;  %v6400_v56 = vld [vmem:[#allocation19 + $0x24] ss:$8 sps:$4 sm:$0xff]  }
 0x6c2   : > { %4032 = vmatprep.mubr.f32.mxu1 %v6943_v0  ;;  %v6395_v0 = vld [vmem:[#allocation19 + $0x10] ss:$8 sps:$4 sm:$0xff]   ;;  %v6468_v49 = vld [vmem:[#allocation17 + $0x184] ss:$8 sps:$4 sm:$0xff]  }
 0x6fd   : > { %v3689_v50 = vpop.f32.mrb[20].mxu0 }
 0x6fe   : > { %v3691_v29 = vpop.f32.mrb[21].mxu0 }
 0x6ff   : > { %v3693_v57 = vpop.f32.mrb[22].mxu0  ;;  %3968 = vmatprep.subr.mxu1 %v3691_v29  ;;  %v6469_v29 = vld [vmem:[#allocation17 + $0x190] ss:$8 sps:$4 sm:$0xff]  }
 0x700   : > { %v3694_v6 = vpop.f32.mrb[23].mxu0  ;;  %3969 = vmatpush1.msra.mxu1 %v3689_v50  ;;  %v6466_v50 = vld [vmem:[#allocation17 + $0x180] ss:$8 sps:$4 sm:$0xff]   ;;  %v6475_v57 = vld [vmem:[#allocation17 + $0x1b0] ss:$8 sps:$4 sm:$0xff]  }
 0x701   : > { %5408 = vmatmul.mubr.msk.f32.vlgmr.msra.gmra.mrb[10].mxu1 %vm3025_vm4, %v7479_v2  ;;  %4318 = vmatprep.subr.bf16.mxu1 %v6394_v52  ;;  %v6407_v2 = vld [vmem:[#allocation19 + $0x50] ss:$8 sps:$4 sm:$0xff]   ;;  %v6471_v52 = vld [vmem:[#allocation17 + $0x194] ss:$8 sps:$4 sm:$0xff]   ;;  %v6478_v6 = vld [vmem:[#allocation17 + $0x1c0] ss:$8 sps:$4 sm:$0xff]  }
 0x702   : > { %4319 = vmatpush1.bf16.msra.mxu1 %v6392_v54  ;;  %4350 = vmatprep.mubr.bf16.mxu1 %v5410_v51  ;;  %v6474_v54 = vld [vmem:[#allocation17 + $0x1a4] ss:$8 sps:$4 sm:$0xff]   ;;  %v6477_v51 = vld [vmem:[#allocation17 + $0x1b4] ss:$8 sps:$4 sm:$0xff]  }
 0x703   : > { %4320 = vmatprep.subr.bf16.mxu1 %v6397_v59  ;;  %v6480_v59 = vld [vmem:[#allocation17 + $0x1c4] ss:$8 sps:$4 sm:$0xff]  }
 0x706   : > { %4321 = vmatpush1.bf16.msra.mxu1 %v6395_v0  ;;  %v6483_v0 = vld [vmem:[#allocation17 + $0x1d4] ss:$8 sps:$4 sm:$0xff]  }
 0x707   : > { %4322 = vmatprep.subr.bf16.mxu1 %v6400_v56  ;;  %v6481_v56 = vld [vmem:[#allocation17 + $0x1d0] ss:$8 sps:$4 sm:$0xff]  }
 0x70a   : > { %4323 = vmatpush1.bf16.msra.mxu1 %v6398_v60  ;;  %v6486_v60 = vld [vmem:[#allocation17 + $0x1e4] ss:$8 sps:$4 sm:$0xff]  }
 0x70b   : > { %4324 = vmatprep.subr.bf16.mxu1 %v6403_v61  ;;  %v6484_v61 = vld [vmem:[#allocation17 + $0x1e0] ss:$8 sps:$4 sm:$0xff]  }
 0x70e   : > { %4325 = vmatpush1.bf16.msra.mxu1 %v6401_v63  ;;  %v6489_v63 = vld [vmem:[#allocation17 + $0x1f4] ss:$8 sps:$4 sm:$0xff]  }
 0x70f   : > { %4326 = vmatprep.subr.bf16.mxu1 %v6406_v48  ;;  %v6487_v48 = vld [vmem:[#allocation17 + $0x1f0] ss:$8 sps:$4 sm:$0xff]  }
 0x712   : > { %4327 = vmatpush1.bf16.msra.mxu1 %v6404_v1 }
 0x713   : > { %4328 = vmatprep.subr.bf16.mxu1 %v6409_v3 }
 0x716   : > { %4329 = vmatpush1.bf16.msra.mxu1 %v6407_v2  ;;  %v894_v2 = vpack.c.bf16 %v7446_v22, %v7446_v22 }
 0x717   : > { %4330 = vmatprep.subr.bf16.mxu1 %v6412_v4 }
 0x71a   : > { %4331 = vmatpush1.bf16.msra.mxu1 %v6410_v5 }
 0x71b   : > { %4332 = vmatprep.subr.bf16.mxu1 %v6415_v7 }
 0x71e   : > { %4333 = vmatpush1.bf16.msra.mxu1 %v6413_v8 }
 0x71f   : > { %4334 = vmatprep.subr.bf16.mxu1 %v6418_v9 }
 0x722   : > { %4335 = vmatpush1.bf16.msra.mxu1 %v6416_v10 }
 0x723   : > { %4336 = vmatprep.subr.bf16.mxu1 %v6421_v11 }
 0x726   : > { %4337 = vmatpush1.bf16.msra.mxu1 %v6419_v12 }
 0x727   : > { %4338 = vmatprep.subr.bf16.mxu1 %v6424_v13 }
 0x72a   : > { %4339 = vmatpush1.bf16.msra.mxu1 %v6422_v14 }
 0x72b   : > { %4340 = vmatprep.subr.bf16.mxu1 %v6427_v15 }
 0x72e   : > { %4341 = vmatpush1.bf16.msra.mxu1 %v6425_v16 }
 0x72f   : > { %4342 = vmatprep.subr.bf16.mxu1 %v6430_v28 }
 0x732   : > { %4343 = vmatpush1.bf16.msra.mxu1 %v6428_v17 }
 0x733   : > { %4344 = vmatprep.subr.bf16.mxu1 %v6433_v18 }
 0x736   : > { %4345 = vmatpush1.bf16.msra.mxu1 %v6431_v19  ;;  %v4041_v19 = vld [vmem:[#allocation16] sm:$0x3] }
 0x737   : > { %4346 = vmatprep.subr.bf16.mxu1 %v6436_v53  ;;  %v4761_v53 = vld [vmem:[#allocation20] sm:$0x3] }
 0x73a   : > { %4347 = vmatpush1.bf16.msra.mxu1 %v6434_v62  ;;  %v4046_v62 = vrot.slane %v4041_v19, %v7484_v44 }
 0x73b   : > { %4348 = vmatprep.subr.bf16.mxu1 %v6439_v20  ;;  %v4766_v20 = vrot.slane %v4761_v53, %v7484_v44 }
 0x73d   : > { %v7515_v58 = vpop.f32.mrb[24].mxu0 }
 0x73e   : > { %v7519_v31 = vpop.f32.mrb[25].mxu0  ;;  %4349 = vmatpush1.bf16.msra.mxu1 %v6437_v21  ;;  %v4050_v21 = vrot.slane %v4041_v19, %v7487_v46 }
 0x73f   : > { %v3965_v27 = vpop.f32.mrb[26].mxu0  ;;  %4720 = vmatprep.subr.bf16.mxu1 %v6444_v23 }
 0x740   : > { %v3966_v33 = vpop.f32.mrb[27].mxu0 }
 0x741   : > { %4351 = vmatmul.mubr.bf16.vlgmr.msra.gmra.mrb[12].mxu1 %v5409_v24 }
 0x742   : > { %4721 = vmatpush1.bf16.msra.mxu1 %v6442_v26  ;;  %4752 = vmatprep.mubr.bf16.mxu1 %v895_v32 }
 0x743   : > { %4722 = vmatprep.subr.bf16.mxu1 %v6447_v30 }
 0x746   : > { %4723 = vmatpush1.bf16.msra.mxu1 %v6445_v34 }
 0x747   : > { %4724 = vmatprep.subr.bf16.mxu1 %v6450_v35 }
 0x74a   : > { %4725 = vmatpush1.bf16.msra.mxu1 %v6448_v36 }
 0x74b   : > { %4726 = vmatprep.subr.bf16.mxu1 %v6453_v37 }
 0x74e   : > { %4727 = vmatpush1.bf16.msra.mxu1 %v6451_v38 }
 0x74f   : > { %4728 = vmatprep.subr.bf16.mxu1 %v6456_v39 }
 0x752   : > { %4729 = vmatpush1.bf16.msra.mxu1 %v6454_v40 }
 0x753   : > { %4730 = vmatprep.subr.bf16.mxu1 %v6459_v41 }
 0x756   : > { %4731 = vmatpush1.bf16.msra.mxu1 %v6457_v25 }
 0x757   : > { %4732 = vmatprep.subr.bf16.mxu1 %v6462_v42 }
 0x75a   : > { %4733 = vmatpush1.bf16.msra.mxu1 %v6460_v43 }
 0x75b   : > { %4734 = vmatprep.subr.bf16.mxu1 %v6465_v45 }
 0x75e   : > { %4735 = vmatpush1.bf16.msra.mxu1 %v6463_v47 }
 0x75f   : > { %4736 = vmatprep.subr.bf16.mxu1 %v6468_v49 }
 0x762   : > { %4737 = vmatpush1.bf16.msra.mxu1 %v6466_v50 }
 0x763   : > { %4738 = vmatprep.subr.bf16.mxu1 %v6471_v52 }
 0x766   : > { %4739 = vmatpush1.bf16.msra.mxu1 %v6469_v29 }
 0x767   : > { %4740 = vmatprep.subr.bf16.mxu1 %v6474_v54 }
 0x76a   : > { %4741 = vmatpush1.bf16.msra.mxu1 %v6472_v55 }
 0x76b   : > { %4742 = vmatprep.subr.bf16.mxu1 %v6477_v51 }
 0x76e   : > { %4743 = vmatpush1.bf16.msra.mxu1 %v6475_v57 }
 0x76f   : > { %4744 = vmatprep.subr.bf16.mxu1 %v6480_v59 }
 0x772   : > { %4745 = vmatpush1.bf16.msra.mxu1 %v6478_v6 }
 0x773   : > { %4746 = vmatprep.subr.bf16.mxu1 %v6483_v0 }
 0x776   : > { %4747 = vmatpush1.bf16.msra.mxu1 %v6481_v56 }
 0x777   : > { %4748 = vmatprep.subr.bf16.mxu1 %v6486_v60 }
 0x77a   : > { %4749 = vmatpush1.bf16.msra.mxu1 %v6484_v61 }
 0x77b   : > { %4750 = vmatprep.subr.bf16.mxu1 %v6489_v63 }
 0x77d   : > { %v4713_v1 = vpop.f32.mrb[28].mxu0 }
 0x77e   : > { %v4715_v3 = vpop.f32.mrb[29].mxu0  ;;  %4751 = vmatpush1.bf16.msra.mxu1 %v6487_v48 }
 0x77f   : > { %v4717_v4 = vpop.f32.mrb[30].mxu0 }
 0x780   : > { %v4718_v5 = vpop.f32.mrb[31].mxu0 }
 0x781   : > { %4753 = vmatmul.mubr.bf16.vlgmr.msra.gmra.mrb[16].mxu1 %v894_v2 }
 0x794   : > { %v3762_v7 = vpop.f32.mrb[8].mxu1 }
 0x795   : > { %v3962_v8 = vadd.f32 %v7515_v58, %v3762_v7  ;;  %v3764_v9 = vpop.f32.mrb[9].mxu1  ;;  %v4770_v58 = vrot.slane %v4761_v53, %v7487_v46 }
 0x796   : > { %v3964_v10 = vadd.f32 %v7519_v31, %v3764_v9 }
 0x7d4   : > { %v4034_v11 = vpop.f32.mrb[10].mxu1 }
 0x7d5   : > { %v4039_v12 = vadd.f32 %v4034_v11, %v3962_v8  ;;  %v4036_v13 = vpop.f32.mrb[11].mxu1 }
 0x7d6   : > { %v4040_v14 = vadd.f32 %v4036_v13, %v3964_v10 }
 0x7d7   : > { %v4053_v30 = vadd.f32 %v4046_v62, %v4039_v12 }
 0x7d8   : > { %v4054_v34 = vadd.f32 %v4050_v21, %v4040_v14 }
 0x814   : > { %v4352_v15 = vpop.f32.mrb[12].mxu1 }
 0x815   : > { %v4714_v16 = vadd.f32 %v4713_v1, %v4352_v15  ;;  %v4354_v28 = vpop.f32.mrb[13].mxu1 }
 0x816   : > { %v4716_v17 = vadd.f32 %v4715_v3, %v4354_v28  ;;  %v4356_v18 = vpop.f32.mrb[14].mxu1 }
 0x817   : > { %v4357_v22 = vpop.f32.mrb[15].mxu1 }
 0x854   : > { %v4754_v23 = vpop.f32.mrb[16].mxu1 }
 0x855   : > { %v4755_v24 = vadd.f32 %v4754_v23, %v4714_v16  ;;  %v4756_v31 = vpop.f32.mrb[17].mxu1 }
 0x856   : > { %v4757_v26 = vadd.f32 %v4756_v31, %v4716_v17  ;;  %v4758_v27 = vpop.f32.mrb[18].mxu1 }
 0x857   : > { %v4773_v32 = vadd.f32 %v4766_v20, %v4755_v24  ;;  %v4759_v33 = vpop.f32.mrb[19].mxu1 }
 0x858   : > { %v4774_v35 = vadd.f32 %v4770_v58, %v4757_v26 }
 0x859   : > { %v4775_v44 = vadd.f32 %v4773_v32, %v4053_v30 }
 0x85a   : > { %v4776_v36 = vadd.f32 %v4774_v35, %v4054_v34 }
 0x85b   : > { %4777 = vst [vmem:[%s603_s1] sm:$0xff] %v4775_v44 }
 0x85c   : > { %4778 = vst [vmem:[%s603_s1 + $0x8] sm:$0xff] %v4776_v36 }
 0x85d   : > { %6844 = shalt.err (!%p6841_p4)
}
 0x85e   : > { %s6845_s20 = scalar_lea.hbm %s7536_s7, 256  ;;  %s6849_s4 = scalar_lea.hbm %s7645_s28, 512 }
 0x85f   : > { %p6846_p1 = scmp.ne.s32.totalorder %s7536_s7, %s6845_s20  ;;  %p6850_p0 = scmp.lt.u32.totalorder %s7536_s7, %s7645_s28 }
 0x860   : > { %p6851_p10 = scmp.lt.u32.totalorder %s6849_s4, %s6845_s20  ;;  %p6853_p9 = scmp.lt.u32.totalorder %s6845_s20, %s7536_s7 }
 0x861   : > { %p6847_p3 = pnand %p6846_p1, %p7646_p8 }
 0x862   : > { %p6852_p11 = por %p6851_p10, %p6850_p0 }
 0x863   : > { %p6848_p13 = pneg %p6847_p3 }
 0x864   : > { %p6854_p6 = por %p6853_p9, %p6852_p11 }
 0x866   : > { %p6855_p2 = pnand %p6854_p6, %p6848_p13 }
 0x868   : > { %6858 = shalt.err (!%p6855_p2)
}
 0x869   : > { %5653 = dma.vmem_to_hbm [thread:$0]  (%p7646_p8), %s7538_s5, 256, %s7536_s7, %s4780_s30  }
 0x86a PF: > { %s4806_s1 = sand.u32 1, %s6913_s21   ;;  %p7647_p12 = scmp.ne.s32.totalorder %s7624_s29, 0 }
 0x86b   : > { %p7648_p5 = scmp.ge.s32.totalorder %s6925_s24, 2  ;;  %s4807_s16 = scalar_lea.sflag [#allocation4], %s4806_s1 }
 0x86d   : > { %p5694_p7 = pnand %p7648_p5, %p7647_p12 }
 0x86f   : > { %6908 = dma.done.wait (!%p5694_p7), %s4807_s16, 256  }
 0x870   : > { %6910 = vsyncadd (!%p5694_p7), %s4807_s16, 4294967040  ;;  %p33_p4 = scmp.ge.s32.totalorder %s7264_s13, 4   ;;  %s7649_s21 = smov %s6917_s22 }
 0x871   : > { %s7650_s22 = smov %s6921_s23  ;;  %s7651_s23 = smov %s7275_s18 }
 0x872   : > { %s7652_s24 = smov %s7264_s13  ;;  %35 = sbr.rel (!%p33_p4) target bundleno = 22 (0x16), region = 172 }
 0x879   :  { %4812 = vsyncpa [#allocation3], 1 }
 0x87a   :  { %4814 = vsyncpa [#allocation3 + $0x1], 1 }
 0x87b   :  { %4815 = vsyncpa [#allocation6], 1 }
 0x87c   :  { %4817 = vsyncpa [#allocation6 + $0x1], 1 }
 0x87d   :  { %4818 = vsyncpa [#allocation9], 1 }
 0x87e   :  { %4819 = vsyncpa [#allocation12], 1 }
 0x87f   :  { %4820 = vsyncpa [#allocation15], 1 }
 0x880   :  { %4821 = vsyncpa [#allocation18], 1 }
 0x881   :  { %4822 = vsyncpa [#allocation21], 1 }
 0x882   :  { %4823 = vsyncpa [#allocation4], 1 }
 0x883   :  { %4825 = vsyncpa [#allocation4 + $0x1], 1 }

</bundles_post_ra>
